<compile_context>
chip_gen: v6e
topology: v6e:2x2x1
jax: 0.10.0
libtpu: 0.0.40
codegen_flags: <defaults>
</compile_context>

<pallas_src>
import numpy as np
import jax
import jax.numpy as jnp
from jax.experimental import pallas as pl
from jax.experimental.pallas import tpu as pltpu

# ----------------------------- config (args) ---------------------------------
B, S = 2, 8
N_WORDS, N_FEATS = 100, 20
N_EMBED = 32              # args.n_embed
N_FEAT_EMBED = 50         # args.n_feat_embed == n_char_embed (tag feature)
N_LSTM_HIDDEN = 32        # args.n_lstm_hidden
N_LSTM_LAYERS = 1         # single BiLSTM layer
N_MLP_ARC = 64            # args.n_mlp_arc
IN_DIM = N_EMBED + N_FEAT_EMBED


# --------------------------- fully fused kernel -------------------------------
def fused_kernel(lens_ref,                 # SMEM (B,) int32 (scalar prefetch)
                 x_ref,                    # (S*B, I) f32, time-major rows (t*B+b)
                 wih_ref,                  # (I, 8H)   [w_ih_f | w_ih_b]
                 whhf_ref, whhb_ref,       # (H, 4H) each
                 bcat_ref,                 # (1, 8H)   [b_f | b_b]
                 wdh_ref,                  # (2H, 2M)  [wd | wh]
                 bdh_ref,                  # (1, 2M)
                 wmain_ref,                # (M, M)
                 wbias_ref,                # (1, M)
                 out_ref,                  # (B, S, S)
                 gih_sc,                   # VMEM (S*B, 8H) input-hidden gates
                 hf_sc, hb_sc):            # VMEM (B*S, H) each, batch-major rows
    B_ = out_ref.shape[0]
    S_ = out_ref.shape[1]
    H_ = whhf_ref.shape[0]
    M_ = wmain_ref.shape[0]

    # ---- 1. input-hidden gates for BOTH directions, all timesteps, one matmul
    gih_sc[...] = (jnp.dot(x_ref[...], wih_ref[...],
                           preferred_element_type=jnp.float32) + bcat_ref[...])

    # per-batch lengths as a (B, 1) vector built from the SMEM scalars
    iota_b = jax.lax.broadcasted_iota(jnp.int32, (B_, 1), 0)
    lens_vec = jnp.zeros((B_, 1), jnp.int32)
    for b in range(B_):
        lens_vec = jnp.where(iota_b == b, lens_ref[b], lens_vec)

    whh_f = whhf_ref[...]
    whh_b = whhb_ref[...]

    # ---- 2. recurrent BiLSTM loop: fwd at time t, bwd at time S-1-t ----------
    def step(t, carry):
        h_f, c_f, h_b, c_b = carry
        tb = S_ - 1 - t

        # forward direction at time t
        g_rows = gih_sc[pl.ds(t * B_, B_), :]                         # (B, 8H)
        g_f = g_rows[:, 0:4 * H_] + jnp.dot(
            h_f, whh_f, preferred_element_type=jnp.float32)           # (B, 4H)
        i_f = jax.nn.sigmoid(g_f[:, 0:H_])                 # PyTorch order i,f,g,o
        f_f = jax.nn.sigmoid(g_f[:, H_:2 * H_])
        gg_f = jnp.tanh(g_f[:, 2 * H_:3 * H_])
        o_f = jax.nn.sigmoid(g_f[:, 3 * H_:4 * H_])
        c_f_n = f_f * c_f + i_f * gg_f
        h_f_n = o_f * jnp.tanh(c_f_n)
        h_f_store = jnp.where(t < lens_vec, h_f_n, 0.0)     # pad outputs -> 0

        # backward direction at time tb (packed sequence: freeze carry on pads)
        g_rows_b = gih_sc[pl.ds(tb * B_, B_), :]
        g_b = g_rows_b[:, 4 * H_:8 * H_] + jnp.dot(
            h_b, whh_b, preferred_element_type=jnp.float32)
        i_b = jax.nn.sigmoid(g_b[:, 0:H_])
        f_b = jax.nn.sigmoid(g_b[:, H_:2 * H_])
        gg_b = jnp.tanh(g_b[:, 2 * H_:3 * H_])
        o_b = jax.nn.sigmoid(g_b[:, 3 * H_:4 * H_])
        c_b_c = f_b * c_b + i_b * gg_b
        h_b_c = o_b * jnp.tanh(c_b_c)
        valid_b = tb < lens_vec                                       # (B, 1)
        c_b_n = jnp.where(valid_b, c_b_c, c_b)
        h_b_n = jnp.where(valid_b, h_b_c, h_b)
        h_b_store = jnp.where(valid_b, h_b_c, 0.0)

        # store hidden states batch-major (row = b*S + time)
        for b in range(B_):
            hf_sc[pl.ds(b * S_ + t, 1), :] = h_f_store[b:b + 1, :]
            hb_sc[pl.ds(b * S_ + tb, 1), :] = h_b_store[b:b + 1, :]

        return h_f_n, c_f_n, h_b_n, c_b_n

    z = jnp.zeros((B_, H_), jnp.float32)
    jax.lax.fori_loop(0, S_, step, (z, z, z, z), unroll=True)

    # ---- 3. fused arc_d|arc_h MLP + biaffine + head-column masking -----------
    col = jax.lax.broadcasted_iota(jnp.int32, (1, S_), 1)
    for b in range(B_):
        xb = jnp.concatenate([hf_sc[b * S_:(b + 1) * S_, :],
                              hb_sc[b * S_:(b + 1) * S_, :]], axis=-1)    # (S, 2H)
        proj = jnp.dot(xb, wdh_ref[...],
                       preferred_element_type=jnp.float32) + bdh_ref[...]  # (S, 2M)
        arc_d = proj[:, 0:M_]
        arc_h = proj[:, M_:2 * M_]
        tmp = jnp.dot(arc_d, wmain_ref[...], preferred_element_type=jnp.float32)
        s = jax.lax.dot_general(tmp, arc_h, (((1,), (1,)), ((), ())),
                                preferred_element_type=jnp.float32)         # (S, S)
        # bias_x term: depends only on the head token -> row broadcast over deps
        s = s + jax.lax.dot_general(wbias_ref[...], arc_h,
                                    (((1,), (1,)), ((), ())),
                                    preferred_element_type=jnp.float32)     # (1, S)
        # masked_fill_(~mask.unsqueeze(1), -inf): mask padded head columns
        s = jnp.where(col < lens_ref[b], s, -jnp.inf)
        out_ref[b] = s


# ----------------------------- forward (glue + kernel) ------------------------
def forward(params, words, feats):
    mask = words != 0
    lens = mask.sum(1).astype(jnp.int32)                    # (B,)

    # Embedding lookups (gathers) stay in plain JAX glue.
    word_e = jnp.take(params["word_embed"], words, axis=0)  # (B, S, N_EMBED)
    feat_e = jnp.take(params["feat_embed"], feats, axis=0)  # (B, S, N_FEAT_EMBED)
    embed = jnp.concatenate([word_e, feat_e], axis=-1)      # (B, S, I)
    # dropout_input / dropout_lstm: eval mode -> identity.
    B_, S_, I_ = embed.shape
    H = params["w_hh_f"].shape[0]
    M = params["w_biaf_main"].shape[0]

    # time-major rows (t*B + b): the kernel reads "all batches at time t"
    x2 = jnp.transpose(embed, (1, 0, 2)).reshape(S_ * B_, I_)

    # fuse weights for lane-dense MXU matmuls
    wih_cat = jnp.concatenate([params["w_ih_f"], params["w_ih_b"]], axis=1)  # (I, 8H)
    b_cat = jnp.concatenate([params["b_f"], params["b_b"]], axis=1)          # (1, 8H)
    wdh = jnp.concatenate([params["wd"], params["wh"]], axis=1)              # (2H, 2M)
    bdh = jnp.concatenate([params["bd"], params["bh"]], axis=1)              # (1, 2M)

    grid_spec = pltpu.PrefetchScalarGridSpec(
        num_scalar_prefetch=1,
        grid=(1,),
        in_specs=[
            pl.BlockSpec((S_ * B_, I_), lambda i, l: (0, 0)),
            pl.BlockSpec((I_, 8 * H), lambda i, l: (0, 0)),
            pl.BlockSpec((H, 4 * H), lambda i, l: (0, 0)),
            pl.BlockSpec((H, 4 * H), lambda i, l: (0, 0)),
            pl.BlockSpec((1, 8 * H), lambda i, l: (0, 0)),
            pl.BlockSpec((2 * H, 2 * M), lambda i, l: (0, 0)),
            pl.BlockSpec((1, 2 * M), lambda i, l: (0, 0)),
            pl.BlockSpec((M, M), lambda i, l: (0, 0)),
            pl.BlockSpec((1, M), lambda i, l: (0, 0)),
        ],
        out_specs=pl.BlockSpec((B_, S_, S_), lambda i, l: (0, 0, 0)),
        scratch_shapes=[
            pltpu.VMEM((S_ * B_, 8 * H), jnp.float32),   # input-hidden gates
            pltpu.VMEM((B_ * S_, H), jnp.float32),       # forward hidden states
            pltpu.VMEM((B_ * S_, H), jnp.float32),       # backward hidden states
        ],
    )

    return pl.pallas_call(
        fused_kernel,
        out_shape=jax.ShapeDtypeStruct((B_, S_, S_), jnp.float32),
        grid_spec=grid_spec,
        compiler_params=pltpu.CompilerParams(
            dimension_semantics=("arbitrary",)),
    )(lens, x2, wih_cat, params["w_hh_f"], params["w_hh_b"], b_cat,
      wdh, bdh, params["w_biaf_main"], params["w_biaf_bias"])


# ----------------------------- pure-JAX reference -----------------------------
def lstm_dir_ref(x_tbm, w_ih, w_hh, b):
    H = w_hh.shape[0]
    B_ = x_tbm.shape[1]

    def step(carry, xt):
        h, c = carry
        gates = xt @ w_ih + h @ w_hh + b
        i = jax.nn.sigmoid(gates[:, :H]); f = jax.nn.sigmoid(gates[:, H:2 * H])
        g = jnp.tanh(gates[:, 2 * H:3 * H]); o = jax.nn.sigmoid(gates[:, 3 * H:])
        c = f * c + i * g
        h = o * jnp.tanh(c)
        return (h, c), h

    init = (jnp.zeros((B_, H), jnp.float32), jnp.zeros((B_, H), jnp.float32))
    _, hs = jax.lax.scan(step, init, x_tbm)
    return hs


def forward_ref(params, words, feats):
    mask = words != 0
    lens = mask.sum(1)
    word_e = jnp.take(params["word_embed"], words, axis=0)
    feat_e = jnp.take(params["feat_embed"], feats, axis=0)
    embed = jnp.concatenate([word_e, feat_e], axis=-1)

    h_f = jnp.transpose(lstm_dir_ref(jnp.transpose(embed, (1, 0, 2)),
                                     params["w_ih_f"], params["w_hh_f"], params["b_f"]),
                        (1, 0, 2))
    t_idx = jnp.arange(S)[None, :]
    rev_idx = jnp.where(t_idx < lens[:, None], lens[:, None] - 1 - t_idx, t_idx)
    embed_rev = jnp.take_along_axis(embed, rev_idx[:, :, None], axis=1)
    h_b = jnp.transpose(lstm_dir_ref(jnp.transpose(embed_rev, (1, 0, 2)),
                                     params["w_ih_b"], params["w_hh_b"], params["b_b"]),
                        (1, 0, 2))
    h_b = jnp.take_along_axis(h_b, rev_idx[:, :, None], axis=1)
    h = jnp.concatenate([h_f, h_b], axis=-1) * mask[:, :, None].astype(jnp.float32)

    arc_d = h @ params["wd"] + params["bd"]
    arc_h = h @ params["wh"] + params["bh"]
    s = jnp.einsum("bxi,ij,byj->bxy", arc_d, params["w_biaf_main"], arc_h)
    s = s + jnp.einsum("oi,byi->boy", params["w_biaf_bias"], arc_h)
    s = jnp.where(mask[:, None, :], s, -jnp.inf)
    return s


# ----------------------------- main -------------------------------------------
if __name__ == "__main__":
    key = jax.random.PRNGKey(0)
    ks = jax.random.split(key, 16)
    scale = 0.1
    H = N_LSTM_HIDDEN

    params = {
        "word_embed": scale * jax.random.normal(ks[0], (N_WORDS, N_EMBED), jnp.float32),
        "feat_embed": scale * jax.random.normal(ks[1], (N_FEATS, N_FEAT_EMBED), jnp.float32),
        # LSTM forward direction (transposed PyTorch layout: (in, 4H), (H, 4H))
        "w_ih_f": scale * jax.random.normal(ks[2], (IN_DIM, 4 * H), jnp.float32),
        "w_hh_f": scale * jax.random.normal(ks[3], (H, 4 * H), jnp.float32),
        "b_f":    scale * jax.random.normal(ks[4], (1, 4 * H), jnp.float32),  # b_ih + b_hh
        # LSTM backward direction
        "w_ih_b": scale * jax.random.normal(ks[5], (IN_DIM, 4 * H), jnp.float32),
        "w_hh_b": scale * jax.random.normal(ks[6], (H, 4 * H), jnp.float32),
        "b_b":    scale * jax.random.normal(ks[7], (1, 4 * H), jnp.float32),
        # MLPs (transposed PyTorch Linear weights)
        "wd": scale * jax.random.normal(ks[8], (2 * H, N_MLP_ARC), jnp.float32),
        "bd": scale * jax.random.normal(ks[9], (1, N_MLP_ARC), jnp.float32),
        "wh": scale * jax.random.normal(ks[10], (2 * H, N_MLP_ARC), jnp.float32),
        "bh": scale * jax.random.normal(ks[11], (1, N_MLP_ARC), jnp.float32),
        # Biaffine weight (n_out=1, bias_x=True, bias_y=False): (M+1, M) split in two
        "w_biaf_main": scale * jax.random.normal(ks[12], (N_MLP_ARC, N_MLP_ARC), jnp.float32),
        "w_biaf_bias": scale * jax.random.normal(ks[13], (1, N_MLP_ARC), jnp.float32),
    }
    # TODO(synk): n_lstm_layers > 1 (stacked BiLSTM) not implemented; single layer used.
    # TODO(synk): bf16 weights/activations for MXU (perf item) skipped at this toy size.

    # inputs: padding (word id 0) at the end of sequence 1
    words = jax.random.randint(ks[14], (B, S), 1, N_WORDS, dtype=jnp.int32)
    lens = jnp.array([S, S - 2], jnp.int32)
    words = jnp.where(jnp.arange(S)[None, :] < lens[:, None], words, 0)
    feats = jax.random.randint(ks[15], (B, S), 0, N_FEATS, dtype=jnp.int32)

    s_arc = forward(params, words, feats)
    s_arc = jax.block_until_ready(s_arc)

    s_ref = jax.block_until_ready(forward_ref(params, words, feats))
    np.testing.assert_allclose(np.asarray(s_arc), np.asarray(s_ref),
                               rtol=5e-3, atol=5e-3)
    assert s_arc.shape == (B, S, S)
    print("KERNEL_OK")
</pallas_src>

<mosaic_0001>
module attributes {stable_mosaic.version = 11 : i64} {
  func.func @fused_kernel(%arg0: i32, %arg1: memref<2xi32, #tpu.memory_space<smem>>, %arg2: memref<16x82xf32, #tpu.memory_space<vmem>>, %arg3: memref<82x256xf32, #tpu.memory_space<vmem>>, %arg4: memref<32x128xf32, #tpu.memory_space<vmem>>, %arg5: memref<32x128xf32, #tpu.memory_space<vmem>>, %arg6: memref<1x256xf32, #tpu.memory_space<vmem>>, %arg7: memref<64x128xf32, #tpu.memory_space<vmem>>, %arg8: memref<1x128xf32, #tpu.memory_space<vmem>>, %arg9: memref<64x64xf32, #tpu.memory_space<vmem>>, %arg10: memref<1x64xf32, #tpu.memory_space<vmem>>, %arg11: memref<2x8x8xf32, #tpu.memory_space<vmem>>, %arg12: memref<16x256xf32, #tpu.memory_space<vmem>>, %arg13: memref<16x32xf32, #tpu.memory_space<vmem>>, %arg14: memref<16x32xf32, #tpu.memory_space<vmem>>) attributes {dimension_semantics = [#tpu.dimension_semantics<arbitrary>], iteration_bounds = array<i64: 1>, scalar_prefetch = 1 : i64, scratch_operands = 3 : i64, tpu.core_type = #tpu.core_type<tc>, window_params = [{pipeline_mode = #tpu.pipeline_mode<synchronous>, transform_indices = @transform_0, window_bounds = array<i64: 16, 82>}, {pipeline_mode = #tpu.pipeline_mode<synchronous>, transform_indices = @transform_1, window_bounds = array<i64: 82, 256>}, {pipeline_mode = #tpu.pipeline_mode<synchronous>, transform_indices = @transform_2, window_bounds = array<i64: 32, 128>}, {pipeline_mode = #tpu.pipeline_mode<synchronous>, transform_indices = @transform_3, window_bounds = array<i64: 32, 128>}, {pipeline_mode = #tpu.pipeline_mode<synchronous>, transform_indices = @transform_4, window_bounds = array<i64: 1, 256>}, {pipeline_mode = #tpu.pipeline_mode<synchronous>, transform_indices = @transform_5, window_bounds = array<i64: 64, 128>}, {pipeline_mode = #tpu.pipeline_mode<synchronous>, transform_indices = @transform_6, window_bounds = array<i64: 1, 128>}, {pipeline_mode = #tpu.pipeline_mode<synchronous>, transform_indices = @transform_7, window_bounds = array<i64: 64, 64>}, {pipeline_mode = #tpu.pipeline_mode<synchronous>, transform_indices = @transform_8, window_bounds = array<i64: 1, 64>}, {pipeline_mode = #tpu.pipeline_mode<synchronous>, transform_indices = @transform_9, window_bounds = array<i64: 2, 8, 8>}]} {
    %c0 = arith.constant 0 : index
    %c0_0 = arith.constant 0 : index
    %0 = vector.load %arg2[%c0, %c0_0] : memref<16x82xf32, #tpu.memory_space<vmem>>, vector<16x82xf32>
    %c0_1 = arith.constant 0 : index
    %c0_2 = arith.constant 0 : index
    %1 = vector.load %arg3[%c0_1, %c0_2] : memref<82x256xf32, #tpu.memory_space<vmem>>, vector<82x256xf32>
    %cst = arith.constant dense<0.000000e+00> : vector<16x256xf32>
    %2 = tpu.matmul %0, %1, %cst {dimension_numbers = #tpu.dot_dimension_numbers<[1], [0], [0], [1], [0, 0, 1, 1], [], []>} : vector<16x82xf32>, vector<82x256xf32>, vector<16x256xf32> -> vector<16x256xf32>
    %c0_3 = arith.constant 0 : index
    %c0_4 = arith.constant 0 : index
    %3 = vector.load %arg6[%c0_3, %c0_4] : memref<1x256xf32, #tpu.memory_space<vmem>>, vector<1x256xf32>
    %4 = vector.broadcast %3 : vector<1x256xf32> to vector<16x256xf32>
    %5 = arith.addf %2, %4 : vector<16x256xf32>
    %c0_5 = arith.constant 0 : index
    %c0_6 = arith.constant 0 : index
    %6 = vector.load %arg12[%c0_5, %c0_6] : memref<16x256xf32, #tpu.memory_space<vmem>>, vector<16x256xf32>
    tpu.vector_store %arg12[%c0_5, %c0_6], %5 {strides = array<i32>} : memref<16x256xf32, #tpu.memory_space<vmem>>, vector<16x256xf32>,
    %7 = tpu.iota {dimensions = array<i32: 0>} : vector<2x1xi32>
    %c0_i32 = arith.constant 0 : i32
    %8 = vector.broadcast %c0_i32 : i32 to vector<2x1xi32>
    %c0_i32_7 = arith.constant 0 : i32
    %9 = vector.broadcast %c0_i32_7 : i32 to vector<2x1xi32>
    %10 = arith.cmpi eq, %7, %9 : vector<2x1xi32>
    %c0_8 = arith.constant 0 : index
    %11 = memref.load %arg1[%c0_8] : memref<2xi32, #tpu.memory_space<smem>>
    %12 = vector.broadcast %11 : i32 to vector<2x1xi32>
    %13 = arith.select %10, %12, %8 : vector<2x1xi1>, vector<2x1xi32>
    %c1_i32 = arith.constant 1 : i32
    %14 = vector.broadcast %c1_i32 : i32 to vector<2x1xi32>
    %15 = arith.cmpi eq, %7, %14 : vector<2x1xi32>
    %c1 = arith.constant 1 : index
    %16 = memref.load %arg1[%c1] : memref<2xi32, #tpu.memory_space<smem>>
    %17 = vector.broadcast %16 : i32 to vector<2x1xi32>
    %18 = arith.select %15, %17, %13 : vector<2x1xi1>, vector<2x1xi32>
    %c0_9 = arith.constant 0 : index
    %c0_10 = arith.constant 0 : index
    %19 = vector.load %arg4[%c0_9, %c0_10] : memref<32x128xf32, #tpu.memory_space<vmem>>, vector<32x128xf32>
    %c0_11 = arith.constant 0 : index
    %c0_12 = arith.constant 0 : index
    %20 = vector.load %arg5[%c0_11, %c0_12] : memref<32x128xf32, #tpu.memory_space<vmem>>, vector<32x128xf32>
    %cst_13 = arith.constant 0.000000e+00 : f32
    %21 = vector.broadcast %cst_13 : f32 to vector<2x32xf32>
    %c0_i32_14 = arith.constant 0 : i32
    %c7_i32 = arith.constant 7 : i32
    %22 = arith.subi %c7_i32, %c0_i32_14 : i32
    %c2_i32 = arith.constant 2 : i32
    %23 = arith.muli %c0_i32_14, %c2_i32 : i32
    %24 = arith.index_cast %23 : i32 to index
    %c0_15 = arith.constant 0 : index
    %25 = vector.load %arg12[%24, %c0_15] : memref<16x256xf32, #tpu.memory_space<vmem>>, vector<2x256xf32>
    %26 = vector.extract_strided_slice %25 {offsets = [0, 0], sizes = [2, 128], strides = [1, 1]} : vector<2x256xf32> to vector<2x128xf32>
    %cst_16 = arith.constant dense<0.000000e+00> : vector<2x128xf32>
    %27 = tpu.matmul %21, %19, %cst_16 {dimension_numbers = #tpu.dot_dimension_numbers<[1], [0], [0], [1], [0, 0, 1, 1], [], []>} : vector<2x32xf32>, vector<32x128xf32>, vector<2x128xf32> -> vector<2x128xf32>
    %28 = arith.addf %26, %27 : vector<2x128xf32>
    %29 = vector.extract_strided_slice %28 {offsets = [0, 0], sizes = [2, 32], strides = [1, 1]} : vector<2x128xf32> to vector<2x32xf32>
    %30 = arith.negf %29 : vector<2x32xf32>
    %31 = math.exp %30 : vector<2x32xf32>
    %cst_17 = arith.constant 1.000000e+00 : f32
    %32 = vector.broadcast %cst_17 : f32 to vector<2x32xf32>
    %33 = arith.addf %32, %31 : vector<2x32xf32>
    %34 = arith.divf %32, %33 : vector<2x32xf32>
    %35 = vector.extract_strided_slice %28 {offsets = [0, 32], sizes = [2, 32], strides = [1, 1]} : vector<2x128xf32> to vector<2x32xf32>
    %36 = arith.negf %35 : vector<2x32xf32>
    %37 = math.exp %36 : vector<2x32xf32>
    %cst_18 = arith.constant 1.000000e+00 : f32
    %38 = vector.broadcast %cst_18 : f32 to vector<2x32xf32>
    %39 = arith.addf %38, %37 : vector<2x32xf32>
    %40 = arith.divf %38, %39 : vector<2x32xf32>
    %41 = vector.extract_strided_slice %28 {offsets = [0, 64], sizes = [2, 32], strides = [1, 1]} : vector<2x128xf32> to vector<2x32xf32>
    %42 = math.tanh %41 : vector<2x32xf32>
    %43 = vector.extract_strided_slice %28 {offsets = [0, 96], sizes = [2, 32], strides = [1, 1]} : vector<2x128xf32> to vector<2x32xf32>
    %44 = arith.negf %43 : vector<2x32xf32>
    %45 = math.exp %44 : vector<2x32xf32>
    %cst_19 = arith.constant 1.000000e+00 : f32
    %46 = vector.broadcast %cst_19 : f32 to vector<2x32xf32>
    %47 = arith.addf %46, %45 : vector<2x32xf32>
    %48 = arith.divf %46, %47 : vector<2x32xf32>
    %49 = arith.mulf %40, %21 : vector<2x32xf32>
    %50 = arith.mulf %34, %42 : vector<2x32xf32>
    %51 = arith.addf %49, %50 : vector<2x32xf32>
    %52 = math.tanh %51 : vector<2x32xf32>
    %53 = arith.mulf %48, %52 : vector<2x32xf32>
    %54 = vector.broadcast %c0_i32_14 : i32 to vector<2x1xi32>
    %55 = arith.cmpi slt, %54, %18 : vector<2x1xi32>
    %cst_20 = arith.constant 0.000000e+00 : f32
    %56 = vector.shape_cast %55 : vector<2x1xi1> to vector<2x1xi1>
    %57 = vector.broadcast %56 : vector<2x1xi1> to vector<2x32xi1>
    %58 = vector.broadcast %cst_20 : f32 to vector<2x32xf32>
    %59 = arith.select %57, %53, %58 : vector<2x32xi1>, vector<2x32xf32>
    %c2_i32_21 = arith.constant 2 : i32
    %60 = arith.muli %22, %c2_i32_21 : i32
    %61 = arith.index_cast %60 : i32 to index
    %c0_22 = arith.constant 0 : index
    %62 = vector.load %arg12[%61, %c0_22] : memref<16x256xf32, #tpu.memory_space<vmem>>, vector<2x256xf32>
    %63 = vector.extract_strided_slice %62 {offsets = [0, 128], sizes = [2, 128], strides = [1, 1]} : vector<2x256xf32> to vector<2x128xf32>
    %cst_23 = arith.constant dense<0.000000e+00> : vector<2x128xf32>
    %64 = tpu.matmul %21, %20, %cst_23 {dimension_numbers = #tpu.dot_dimension_numbers<[1], [0], [0], [1], [0, 0, 1, 1], [], []>} : vector<2x32xf32>, vector<32x128xf32>, vector<2x128xf32> -> vector<2x128xf32>
    %65 = arith.addf %63, %64 : vector<2x128xf32>
    %66 = vector.extract_strided_slice %65 {offsets = [0, 0], sizes = [2, 32], strides = [1, 1]} : vector<2x128xf32> to vector<2x32xf32>
    %67 = arith.negf %66 : vector<2x32xf32>
    %68 = math.exp %67 : vector<2x32xf32>
    %cst_24 = arith.constant 1.000000e+00 : f32
    %69 = vector.broadcast %cst_24 : f32 to vector<2x32xf32>
    %70 = arith.addf %69, %68 : vector<2x32xf32>
    %71 = arith.divf %69, %70 : vector<2x32xf32>
    %72 = vector.extract_strided_slice %65 {offsets = [0, 32], sizes = [2, 32], strides = [1, 1]} : vector<2x128xf32> to vector<2x32xf32>
    %73 = arith.negf %72 : vector<2x32xf32>
    %74 = math.exp %73 : vector<2x32xf32>
    %cst_25 = arith.constant 1.000000e+00 : f32
    %75 = vector.broadcast %cst_25 : f32 to vector<2x32xf32>
    %76 = arith.addf %75, %74 : vector<2x32xf32>
    %77 = arith.divf %75, %76 : vector<2x32xf32>
    %78 = vector.extract_strided_slice %65 {offsets = [0, 64], sizes = [2, 32], strides = [1, 1]} : vector<2x128xf32> to vector<2x32xf32>
    %79 = math.tanh %78 : vector<2x32xf32>
    %80 = vector.extract_strided_slice %65 {offsets = [0, 96], sizes = [2, 32], strides = [1, 1]} : vector<2x128xf32> to vector<2x32xf32>
    %81 = arith.negf %80 : vector<2x32xf32>
    %82 = math.exp %81 : vector<2x32xf32>
    %cst_26 = arith.constant 1.000000e+00 : f32
    %83 = vector.broadcast %cst_26 : f32 to vector<2x32xf32>
    %84 = arith.addf %83, %82 : vector<2x32xf32>
    %85 = arith.divf %83, %84 : vector<2x32xf32>
    %86 = arith.mulf %77, %21 : vector<2x32xf32>
    %87 = arith.mulf %71, %79 : vector<2x32xf32>
    %88 = arith.addf %86, %87 : vector<2x32xf32>
    %89 = math.tanh %88 : vector<2x32xf32>
    %90 = arith.mulf %85, %89 : vector<2x32xf32>
    %91 = vector.broadcast %22 : i32 to vector<2x1xi32>
    %92 = arith.cmpi slt, %91, %18 : vector<2x1xi32>
    %93 = vector.shape_cast %92 : vector<2x1xi1> to vector<2x1xi1>
    %94 = vector.broadcast %93 : vector<2x1xi1> to vector<2x32xi1>
    %95 = arith.select %94, %88, %21 : vector<2x32xi1>, vector<2x32xf32>
    %96 = vector.shape_cast %92 : vector<2x1xi1> to vector<2x1xi1>
    %97 = vector.broadcast %96 : vector<2x1xi1> to vector<2x32xi1>
    %98 = arith.select %97, %90, %21 : vector<2x32xi1>, vector<2x32xf32>
    %cst_27 = arith.constant 0.000000e+00 : f32
    %99 = vector.shape_cast %92 : vector<2x1xi1> to vector<2x1xi1>
    %100 = vector.broadcast %99 : vector<2x1xi1> to vector<2x32xi1>
    %101 = vector.broadcast %cst_27 : f32 to vector<2x32xf32>
    %102 = arith.select %100, %90, %101 : vector<2x32xi1>, vector<2x32xf32>
    %103 = vector.extract_strided_slice %59 {offsets = [0, 0], sizes = [1, 32], strides = [1, 1]} : vector<2x32xf32> to vector<1x32xf32>
    %c0_i32_28 = arith.constant 0 : i32
    %104 = arith.addi %c0_i32_28, %c0_i32_14 : i32
    %105 = arith.index_cast %104 : i32 to index
    %c0_29 = arith.constant 0 : index
    %106 = vector.load %arg13[%105, %c0_29] : memref<16x32xf32, #tpu.memory_space<vmem>>, vector<1x32xf32>
    tpu.vector_store %arg13[%105, %c0_29], %103 {strides = array<i32>} : memref<16x32xf32, #tpu.memory_space<vmem>>, vector<1x32xf32>,
    %107 = vector.extract_strided_slice %102 {offsets = [0, 0], sizes = [1, 32], strides = [1, 1]} : vector<2x32xf32> to vector<1x32xf32>
    %c0_i32_30 = arith.constant 0 : i32
    %108 = arith.addi %c0_i32_30, %22 : i32
    %109 = arith.index_cast %108 : i32 to index
    %c0_31 = arith.constant 0 : index
    %110 = vector.load %arg14[%109, %c0_31] : memref<16x32xf32, #tpu.memory_space<vmem>>, vector<1x32xf32>
    tpu.vector_store %arg14[%109, %c0_31], %107 {strides = array<i32>} : memref<16x32xf32, #tpu.memory_space<vmem>>, vector<1x32xf32>,
    %111 = vector.extract_strided_slice %59 {offsets = [1, 0], sizes = [1, 32], strides = [1, 1]} : vector<2x32xf32> to vector<1x32xf32>
    %c8_i32 = arith.constant 8 : i32
    %112 = arith.addi %c8_i32, %c0_i32_14 : i32
    %113 = arith.index_cast %112 : i32 to index
    %c0_32 = arith.constant 0 : index
    %114 = vector.load %arg13[%113, %c0_32] : memref<16x32xf32, #tpu.memory_space<vmem>>, vector<1x32xf32>
    tpu.vector_store %arg13[%113, %c0_32], %111 {strides = array<i32>} : memref<16x32xf32, #tpu.memory_space<vmem>>, vector<1x32xf32>,
    %115 = vector.extract_strided_slice %102 {offsets = [1, 0], sizes = [1, 32], strides = [1, 1]} : vector<2x32xf32> to vector<1x32xf32>
    %c8_i32_33 = arith.constant 8 : i32
    %116 = arith.addi %c8_i32_33, %22 : i32
    %117 = arith.index_cast %116 : i32 to index
    %c0_34 = arith.constant 0 : index
    %118 = vector.load %arg14[%117, %c0_34] : memref<16x32xf32, #tpu.memory_space<vmem>>, vector<1x32xf32>
    tpu.vector_store %arg14[%117, %c0_34], %115 {strides = array<i32>} : memref<16x32xf32, #tpu.memory_space<vmem>>, vector<1x32xf32>,
    %c1_i32_35 = arith.constant 1 : i32
    %c7_i32_36 = arith.constant 7 : i32
    %119 = arith.subi %c7_i32_36, %c1_i32_35 : i32
    %c2_i32_37 = arith.constant 2 : i32
    %120 = arith.muli %c1_i32_35, %c2_i32_37 : i32
    %121 = arith.index_cast %120 : i32 to index
    %c0_38 = arith.constant 0 : index
    %122 = vector.load %arg12[%121, %c0_38] : memref<16x256xf32, #tpu.memory_space<vmem>>, vector<2x256xf32>
    %123 = vector.extract_strided_slice %122 {offsets = [0, 0], sizes = [2, 128], strides = [1, 1]} : vector<2x256xf32> to vector<2x128xf32>
    %cst_39 = arith.constant dense<0.000000e+00> : vector<2x128xf32>
    %124 = tpu.matmul %53, %19, %cst_39 {dimension_numbers = #tpu.dot_dimension_numbers<[1], [0], [0], [1], [0, 0, 1, 1], [], []>} : vector<2x32xf32>, vector<32x128xf32>, vector<2x128xf32> -> vector<2x128xf32>
    %125 = arith.addf %123, %124 : vector<2x128xf32>
    %126 = vector.extract_strided_slice %125 {offsets = [0, 0], sizes = [2, 32], strides = [1, 1]} : vector<2x128xf32> to vector<2x32xf32>
    %127 = arith.negf %126 : vector<2x32xf32>
    %128 = math.exp %127 : vector<2x32xf32>
    %cst_40 = arith.constant 1.000000e+00 : f32
    %129 = vector.broadcast %cst_40 : f32 to vector<2x32xf32>
    %130 = arith.addf %129, %128 : vector<2x32xf32>
    %131 = arith.divf %129, %130 : vector<2x32xf32>
    %132 = vector.extract_strided_slice %125 {offsets = [0, 32], sizes = [2, 32], strides = [1, 1]} : vector<2x128xf32> to vector<2x32xf32>
    %133 = arith.negf %132 : vector<2x32xf32>
    %134 = math.exp %133 : vector<2x32xf32>
    %cst_41 = arith.constant 1.000000e+00 : f32
    %135 = vector.broadcast %cst_41 : f32 to vector<2x32xf32>
    %136 = arith.addf %135, %134 : vector<2x32xf32>
    %137 = arith.divf %135, %136 : vector<2x32xf32>
    %138 = vector.extract_strided_slice %125 {offsets = [0, 64], sizes = [2, 32], strides = [1, 1]} : vector<2x128xf32> to vector<2x32xf32>
    %139 = math.tanh %138 : vector<2x32xf32>
    %140 = vector.extract_strided_slice %125 {offsets = [0, 96], sizes = [2, 32], strides = [1, 1]} : vector<2x128xf32> to vector<2x32xf32>
    %141 = arith.negf %140 : vector<2x32xf32>
    %142 = math.exp %141 : vector<2x32xf32>
    %cst_42 = arith.constant 1.000000e+00 : f32
    %143 = vector.broadcast %cst_42 : f32 to vector<2x32xf32>
    %144 = arith.addf %143, %142 : vector<2x32xf32>
    %145 = arith.divf %143, %144 : vector<2x32xf32>
    %146 = arith.mulf %137, %51 : vector<2x32xf32>
    %147 = arith.mulf %131, %139 : vector<2x32xf32>
    %148 = arith.addf %146, %147 : vector<2x32xf32>
    %149 = math.tanh %148 : vector<2x32xf32>
    %150 = arith.mulf %145, %149 : vector<2x32xf32>
    %151 = vector.broadcast %c1_i32_35 : i32 to vector<2x1xi32>
    %152 = arith.cmpi slt, %151, %18 : vector<2x1xi32>
    %cst_43 = arith.constant 0.000000e+00 : f32
    %153 = vector.shape_cast %152 : vector<2x1xi1> to vector<2x1xi1>
    %154 = vector.broadcast %153 : vector<2x1xi1> to vector<2x32xi1>
    %155 = vector.broadcast %cst_43 : f32 to vector<2x32xf32>
    %156 = arith.select %154, %150, %155 : vector<2x32xi1>, vector<2x32xf32>
    %c2_i32_44 = arith.constant 2 : i32
    %157 = arith.muli %119, %c2_i32_44 : i32
    %158 = arith.index_cast %157 : i32 to index
    %c0_45 = arith.constant 0 : index
    %159 = vector.load %arg12[%158, %c0_45] : memref<16x256xf32, #tpu.memory_space<vmem>>, vector<2x256xf32>
    %160 = vector.extract_strided_slice %159 {offsets = [0, 128], sizes = [2, 128], strides = [1, 1]} : vector<2x256xf32> to vector<2x128xf32>
    %cst_46 = arith.constant dense<0.000000e+00> : vector<2x128xf32>
    %161 = tpu.matmul %98, %20, %cst_46 {dimension_numbers = #tpu.dot_dimension_numbers<[1], [0], [0], [1], [0, 0, 1, 1], [], []>} : vector<2x32xf32>, vector<32x128xf32>, vector<2x128xf32> -> vector<2x128xf32>
    %162 = arith.addf %160, %161 : vector<2x128xf32>
    %163 = vector.extract_strided_slice %162 {offsets = [0, 0], sizes = [2, 32], strides = [1, 1]} : vector<2x128xf32> to vector<2x32xf32>
    %164 = arith.negf %163 : vector<2x32xf32>
    %165 = math.exp %164 : vector<2x32xf32>
    %cst_47 = arith.constant 1.000000e+00 : f32
    %166 = vector.broadcast %cst_47 : f32 to vector<2x32xf32>
    %167 = arith.addf %166, %165 : vector<2x32xf32>
    %168 = arith.divf %166, %167 : vector<2x32xf32>
    %169 = vector.extract_strided_slice %162 {offsets = [0, 32], sizes = [2, 32], strides = [1, 1]} : vector<2x128xf32> to vector<2x32xf32>
    %170 = arith.negf %169 : vector<2x32xf32>
    %171 = math.exp %170 : vector<2x32xf32>
    %cst_48 = arith.constant 1.000000e+00 : f32
    %172 = vector.broadcast %cst_48 : f32 to vector<2x32xf32>
    %173 = arith.addf %172, %171 : vector<2x32xf32>
    %174 = arith.divf %172, %173 : vector<2x32xf32>
    %175 = vector.extract_strided_slice %162 {offsets = [0, 64], sizes = [2, 32], strides = [1, 1]} : vector<2x128xf32> to vector<2x32xf32>
    %176 = math.tanh %175 : vector<2x32xf32>
    %177 = vector.extract_strided_slice %162 {offsets = [0, 96], sizes = [2, 32], strides = [1, 1]} : vector<2x128xf32> to vector<2x32xf32>
    %178 = arith.negf %177 : vector<2x32xf32>
    %179 = math.exp %178 : vector<2x32xf32>
    %cst_49 = arith.constant 1.000000e+00 : f32
    %180 = vector.broadcast %cst_49 : f32 to vector<2x32xf32>
    %181 = arith.addf %180, %179 : vector<2x32xf32>
    %182 = arith.divf %180, %181 : vector<2x32xf32>
    %183 = arith.mulf %174, %95 : vector<2x32xf32>
    %184 = arith.mulf %168, %176 : vector<2x32xf32>
    %185 = arith.addf %183, %184 : vector<2x32xf32>
    %186 = math.tanh %185 : vector<2x32xf32>
    %187 = arith.mulf %182, %186 : vector<2x32xf32>
    %188 = vector.broadcast %119 : i32 to vector<2x1xi32>
    %189 = arith.cmpi slt, %188, %18 : vector<2x1xi32>
    %190 = vector.shape_cast %189 : vector<2x1xi1> to vector<2x1xi1>
    %191 = vector.broadcast %190 : vector<2x1xi1> to vector<2x32xi1>
    %192 = arith.select %191, %185, %95 : vector<2x32xi1>, vector<2x32xf32>
    %193 = vector.shape_cast %189 : vector<2x1xi1> to vector<2x1xi1>
    %194 = vector.broadcast %193 : vector<2x1xi1> to vector<2x32xi1>
    %195 = arith.select %194, %187, %98 : vector<2x32xi1>, vector<2x32xf32>
    %cst_50 = arith.constant 0.000000e+00 : f32
    %196 = vector.shape_cast %189 : vector<2x1xi1> to vector<2x1xi1>
    %197 = vector.broadcast %196 : vector<2x1xi1> to vector<2x32xi1>
    %198 = vector.broadcast %cst_50 : f32 to vector<2x32xf32>
    %199 = arith.select %197, %187, %198 : vector<2x32xi1>, vector<2x32xf32>
    %200 = vector.extract_strided_slice %156 {offsets = [0, 0], sizes = [1, 32], strides = [1, 1]} : vector<2x32xf32> to vector<1x32xf32>
    %c0_i32_51 = arith.constant 0 : i32
    %201 = arith.addi %c0_i32_51, %c1_i32_35 : i32
    %202 = arith.index_cast %201 : i32 to index
    %c0_52 = arith.constant 0 : index
    %203 = vector.load %arg13[%202, %c0_52] : memref<16x32xf32, #tpu.memory_space<vmem>>, vector<1x32xf32>
    tpu.vector_store %arg13[%202, %c0_52], %200 {strides = array<i32>} : memref<16x32xf32, #tpu.memory_space<vmem>>, vector<1x32xf32>,
    %204 = vector.extract_strided_slice %199 {offsets = [0, 0], sizes = [1, 32], strides = [1, 1]} : vector<2x32xf32> to vector<1x32xf32>
    %c0_i32_53 = arith.constant 0 : i32
    %205 = arith.addi %c0_i32_53, %119 : i32
    %206 = arith.index_cast %205 : i32 to index
    %c0_54 = arith.constant 0 : index
    %207 = vector.load %arg14[%206, %c0_54] : memref<16x32xf32, #tpu.memory_space<vmem>>, vector<1x32xf32>
    tpu.vector_store %arg14[%206, %c0_54], %204 {strides = array<i32>} : memref<16x32xf32, #tpu.memory_space<vmem>>, vector<1x32xf32>,
    %208 = vector.extract_strided_slice %156 {offsets = [1, 0], sizes = [1, 32], strides = [1, 1]} : vector<2x32xf32> to vector<1x32xf32>
    %c8_i32_55 = arith.constant 8 : i32
    %209 = arith.addi %c8_i32_55, %c1_i32_35 : i32
    %210 = arith.index_cast %209 : i32 to index
    %c0_56 = arith.constant 0 : index
    %211 = vector.load %arg13[%210, %c0_56] : memref<16x32xf32, #tpu.memory_space<vmem>>, vector<1x32xf32>
    tpu.vector_store %arg13[%210, %c0_56], %208 {strides = array<i32>} : memref<16x32xf32, #tpu.memory_space<vmem>>, vector<1x32xf32>,
    %212 = vector.extract_strided_slice %199 {offsets = [1, 0], sizes = [1, 32], strides = [1, 1]} : vector<2x32xf32> to vector<1x32xf32>
    %c8_i32_57 = arith.constant 8 : i32
    %213 = arith.addi %c8_i32_57, %119 : i32
    %214 = arith.index_cast %213 : i32 to index
    %c0_58 = arith.constant 0 : index
    %215 = vector.load %arg14[%214, %c0_58] : memref<16x32xf32, #tpu.memory_space<vmem>>, vector<1x32xf32>
    tpu.vector_store %arg14[%214, %c0_58], %212 {strides = array<i32>} : memref<16x32xf32, #tpu.memory_space<vmem>>, vector<1x32xf32>,
    %c2_i32_59 = arith.constant 2 : i32
    %c7_i32_60 = arith.constant 7 : i32
    %216 = arith.subi %c7_i32_60, %c2_i32_59 : i32
    %c2_i32_61 = arith.constant 2 : i32
    %217 = arith.muli %c2_i32_59, %c2_i32_61 : i32
    %218 = arith.index_cast %217 : i32 to index
    %c0_62 = arith.constant 0 : index
    %219 = vector.load %arg12[%218, %c0_62] : memref<16x256xf32, #tpu.memory_space<vmem>>, vector<2x256xf32>
    %220 = vector.extract_strided_slice %219 {offsets = [0, 0], sizes = [2, 128], strides = [1, 1]} : vector<2x256xf32> to vector<2x128xf32>
    %cst_63 = arith.constant dense<0.000000e+00> : vector<2x128xf32>
    %221 = tpu.matmul %150, %19, %cst_63 {dimension_numbers = #tpu.dot_dimension_numbers<[1], [0], [0], [1], [0, 0, 1, 1], [], []>} : vector<2x32xf32>, vector<32x128xf32>, vector<2x128xf32> -> vector<2x128xf32>
    %222 = arith.addf %220, %221 : vector<2x128xf32>
    %223 = vector.extract_strided_slice %222 {offsets = [0, 0], sizes = [2, 32], strides = [1, 1]} : vector<2x128xf32> to vector<2x32xf32>
    %224 = arith.negf %223 : vector<2x32xf32>
    %225 = math.exp %224 : vector<2x32xf32>
    %cst_64 = arith.constant 1.000000e+00 : f32
    %226 = vector.broadcast %cst_64 : f32 to vector<2x32xf32>
    %227 = arith.addf %226, %225 : vector<2x32xf32>
    %228 = arith.divf %226, %227 : vector<2x32xf32>
    %229 = vector.extract_strided_slice %222 {offsets = [0, 32], sizes = [2, 32], strides = [1, 1]} : vector<2x128xf32> to vector<2x32xf32>
    %230 = arith.negf %229 : vector<2x32xf32>
    %231 = math.exp %230 : vector<2x32xf32>
    %cst_65 = arith.constant 1.000000e+00 : f32
    %232 = vector.broadcast %cst_65 : f32 to vector<2x32xf32>
    %233 = arith.addf %232, %231 : vector<2x32xf32>
    %234 = arith.divf %232, %233 : vector<2x32xf32>
    %235 = vector.extract_strided_slice %222 {offsets = [0, 64], sizes = [2, 32], strides = [1, 1]} : vector<2x128xf32> to vector<2x32xf32>
    %236 = math.tanh %235 : vector<2x32xf32>
    %237 = vector.extract_strided_slice %222 {offsets = [0, 96], sizes = [2, 32], strides = [1, 1]} : vector<2x128xf32> to vector<2x32xf32>
    %238 = arith.negf %237 : vector<2x32xf32>
    %239 = math.exp %238 : vector<2x32xf32>
    %cst_66 = arith.constant 1.000000e+00 : f32
    %240 = vector.broadcast %cst_66 : f32 to vector<2x32xf32>
    %241 = arith.addf %240, %239 : vector<2x32xf32>
    %242 = arith.divf %240, %241 : vector<2x32xf32>
    %243 = arith.mulf %234, %148 : vector<2x32xf32>
    %244 = arith.mulf %228, %236 : vector<2x32xf32>
    %245 = arith.addf %243, %244 : vector<2x32xf32>
    %246 = math.tanh %245 : vector<2x32xf32>
    %247 = arith.mulf %242, %246 : vector<2x32xf32>
    %248 = vector.broadcast %c2_i32_59 : i32 to vector<2x1xi32>
    %249 = arith.cmpi slt, %248, %18 : vector<2x1xi32>
    %cst_67 = arith.constant 0.000000e+00 : f32
    %250 = vector.shape_cast %249 : vector<2x1xi1> to vector<2x1xi1>
    %251 = vector.broadcast %250 : vector<2x1xi1> to vector<2x32xi1>
    %252 = vector.broadcast %cst_67 : f32 to vector<2x32xf32>
    %253 = arith.select %251, %247, %252 : vector<2x32xi1>, vector<2x32xf32>
    %c2_i32_68 = arith.constant 2 : i32
    %254 = arith.muli %216, %c2_i32_68 : i32
    %255 = arith.index_cast %254 : i32 to index
    %c0_69 = arith.constant 0 : index
    %256 = vector.load %arg12[%255, %c0_69] : memref<16x256xf32, #tpu.memory_space<vmem>>, vector<2x256xf32>
    %257 = vector.extract_strided_slice %256 {offsets = [0, 128], sizes = [2, 128], strides = [1, 1]} : vector<2x256xf32> to vector<2x128xf32>
    %cst_70 = arith.constant dense<0.000000e+00> : vector<2x128xf32>
    %258 = tpu.matmul %195, %20, %cst_70 {dimension_numbers = #tpu.dot_dimension_numbers<[1], [0], [0], [1], [0, 0, 1, 1], [], []>} : vector<2x32xf32>, vector<32x128xf32>, vector<2x128xf32> -> vector<2x128xf32>
    %259 = arith.addf %257, %258 : vector<2x128xf32>
    %260 = vector.extract_strided_slice %259 {offsets = [0, 0], sizes = [2, 32], strides = [1, 1]} : vector<2x128xf32> to vector<2x32xf32>
    %261 = arith.negf %260 : vector<2x32xf32>
    %262 = math.exp %261 : vector<2x32xf32>
    %cst_71 = arith.constant 1.000000e+00 : f32
    %263 = vector.broadcast %cst_71 : f32 to vector<2x32xf32>
    %264 = arith.addf %263, %262 : vector<2x32xf32>
    %265 = arith.divf %263, %264 : vector<2x32xf32>
    %266 = vector.extract_strided_slice %259 {offsets = [0, 32], sizes = [2, 32], strides = [1, 1]} : vector<2x128xf32> to vector<2x32xf32>
    %267 = arith.negf %266 : vector<2x32xf32>
    %268 = math.exp %267 : vector<2x32xf32>
    %cst_72 = arith.constant 1.000000e+00 : f32
    %269 = vector.broadcast %cst_72 : f32 to vector<2x32xf32>
    %270 = arith.addf %269, %268 : vector<2x32xf32>
    %271 = arith.divf %269, %270 : vector<2x32xf32>
    %272 = vector.extract_strided_slice %259 {offsets = [0, 64], sizes = [2, 32], strides = [1, 1]} : vector<2x128xf32> to vector<2x32xf32>
    %273 = math.tanh %272 : vector<2x32xf32>
    %274 = vector.extract_strided_slice %259 {offsets = [0, 96], sizes = [2, 32], strides = [1, 1]} : vector<2x128xf32> to vector<2x32xf32>
    %275 = arith.negf %274 : vector<2x32xf32>
    %276 = math.exp %275 : vector<2x32xf32>
    %cst_73 = arith.constant 1.000000e+00 : f32
    %277 = vector.broadcast %cst_73 : f32 to vector<2x32xf32>
    %278 = arith.addf %277, %276 : vector<2x32xf32>
    %279 = arith.divf %277, %278 : vector<2x32xf32>
    %280 = arith.mulf %271, %192 : vector<2x32xf32>
    %281 = arith.mulf %265, %273 : vector<2x32xf32>
    %282 = arith.addf %280, %281 : vector<2x32xf32>
    %283 = math.tanh %282 : vector<2x32xf32>
    %284 = arith.mulf %279, %283 : vector<2x32xf32>
    %285 = vector.broadcast %216 : i32 to vector<2x1xi32>
    %286 = arith.cmpi slt, %285, %18 : vector<2x1xi32>
    %287 = vector.shape_cast %286 : vector<2x1xi1> to vector<2x1xi1>
    %288 = vector.broadcast %287 : vector<2x1xi1> to vector<2x32xi1>
    %289 = arith.select %288, %282, %192 : vector<2x32xi1>, vector<2x32xf32>
    %290 = vector.shape_cast %286 : vector<2x1xi1> to vector<2x1xi1>
    %291 = vector.broadcast %290 : vector<2x1xi1> to vector<2x32xi1>
    %292 = arith.select %291, %284, %195 : vector<2x32xi1>, vector<2x32xf32>
    %cst_74 = arith.constant 0.000000e+00 : f32
    %293 = vector.shape_cast %286 : vector<2x1xi1> to vector<2x1xi1>
    %294 = vector.broadcast %293 : vector<2x1xi1> to vector<2x32xi1>
    %295 = vector.broadcast %cst_74 : f32 to vector<2x32xf32>
    %296 = arith.select %294, %284, %295 : vector<2x32xi1>, vector<2x32xf32>
    %297 = vector.extract_strided_slice %253 {offsets = [0, 0], sizes = [1, 32], strides = [1, 1]} : vector<2x32xf32> to vector<1x32xf32>
    %c0_i32_75 = arith.constant 0 : i32
    %298 = arith.addi %c0_i32_75, %c2_i32_59 : i32
    %299 = arith.index_cast %298 : i32 to index
    %c0_76 = arith.constant 0 : index
    %300 = vector.load %arg13[%299, %c0_76] : memref<16x32xf32, #tpu.memory_space<vmem>>, vector<1x32xf32>
    tpu.vector_store %arg13[%299, %c0_76], %297 {strides = array<i32>} : memref<16x32xf32, #tpu.memory_space<vmem>>, vector<1x32xf32>,
    %301 = vector.extract_strided_slice %296 {offsets = [0, 0], sizes = [1, 32], strides = [1, 1]} : vector<2x32xf32> to vector<1x32xf32>
    %c0_i32_77 = arith.constant 0 : i32
    %302 = arith.addi %c0_i32_77, %216 : i32
    %303 = arith.index_cast %302 : i32 to index
    %c0_78 = arith.constant 0 : index
    %304 = vector.load %arg14[%303, %c0_78] : memref<16x32xf32, #tpu.memory_space<vmem>>, vector<1x32xf32>
    tpu.vector_store %arg14[%303, %c0_78], %301 {strides = array<i32>} : memref<16x32xf32, #tpu.memory_space<vmem>>, vector<1x32xf32>,
    %305 = vector.extract_strided_slice %253 {offsets = [1, 0], sizes = [1, 32], strides = [1, 1]} : vector<2x32xf32> to vector<1x32xf32>
    %c8_i32_79 = arith.constant 8 : i32
    %306 = arith.addi %c8_i32_79, %c2_i32_59 : i32
    %307 = arith.index_cast %306 : i32 to index
    %c0_80 = arith.constant 0 : index
    %308 = vector.load %arg13[%307, %c0_80] : memref<16x32xf32, #tpu.memory_space<vmem>>, vector<1x32xf32>
    tpu.vector_store %arg13[%307, %c0_80], %305 {strides = array<i32>} : memref<16x32xf32, #tpu.memory_space<vmem>>, vector<1x32xf32>,
    %309 = vector.extract_strided_slice %296 {offsets = [1, 0], sizes = [1, 32], strides = [1, 1]} : vector<2x32xf32> to vector<1x32xf32>
    %c8_i32_81 = arith.constant 8 : i32
    %310 = arith.addi %c8_i32_81, %216 : i32
    %311 = arith.index_cast %310 : i32 to index
    %c0_82 = arith.constant 0 : index
    %312 = vector.load %arg14[%311, %c0_82] : memref<16x32xf32, #tpu.memory_space<vmem>>, vector<1x32xf32>
    tpu.vector_store %arg14[%311, %c0_82], %309 {strides = array<i32>} : memref<16x32xf32, #tpu.memory_space<vmem>>, vector<1x32xf32>,
    %c3_i32 = arith.constant 3 : i32
    %c7_i32_83 = arith.constant 7 : i32
    %313 = arith.subi %c7_i32_83, %c3_i32 : i32
    %c2_i32_84 = arith.constant 2 : i32
    %314 = arith.muli %c3_i32, %c2_i32_84 : i32
    %315 = arith.index_cast %314 : i32 to index
    %c0_85 = arith.constant 0 : index
    %316 = vector.load %arg12[%315, %c0_85] : memref<16x256xf32, #tpu.memory_space<vmem>>, vector<2x256xf32>
    %317 = vector.extract_strided_slice %316 {offsets = [0, 0], sizes = [2, 128], strides = [1, 1]} : vector<2x256xf32> to vector<2x128xf32>
    %cst_86 = arith.constant dense<0.000000e+00> : vector<2x128xf32>
    %318 = tpu.matmul %247, %19, %cst_86 {dimension_numbers = #tpu.dot_dimension_numbers<[1], [0], [0], [1], [0, 0, 1, 1], [], []>} : vector<2x32xf32>, vector<32x128xf32>, vector<2x128xf32> -> vector<2x128xf32>
    %319 = arith.addf %317, %318 : vector<2x128xf32>
    %320 = vector.extract_strided_slice %319 {offsets = [0, 0], sizes = [2, 32], strides = [1, 1]} : vector<2x128xf32> to vector<2x32xf32>
    %321 = arith.negf %320 : vector<2x32xf32>
    %322 = math.exp %321 : vector<2x32xf32>
    %cst_87 = arith.constant 1.000000e+00 : f32
    %323 = vector.broadcast %cst_87 : f32 to vector<2x32xf32>
    %324 = arith.addf %323, %322 : vector<2x32xf32>
    %325 = arith.divf %323, %324 : vector<2x32xf32>
    %326 = vector.extract_strided_slice %319 {offsets = [0, 32], sizes = [2, 32], strides = [1, 1]} : vector<2x128xf32> to vector<2x32xf32>
    %327 = arith.negf %326 : vector<2x32xf32>
    %328 = math.exp %327 : vector<2x32xf32>
    %cst_88 = arith.constant 1.000000e+00 : f32
    %329 = vector.broadcast %cst_88 : f32 to vector<2x32xf32>
    %330 = arith.addf %329, %328 : vector<2x32xf32>
    %331 = arith.divf %329, %330 : vector<2x32xf32>
    %332 = vector.extract_strided_slice %319 {offsets = [0, 64], sizes = [2, 32], strides = [1, 1]} : vector<2x128xf32> to vector<2x32xf32>
    %333 = math.tanh %332 : vector<2x32xf32>
    %334 = vector.extract_strided_slice %319 {offsets = [0, 96], sizes = [2, 32], strides = [1, 1]} : vector<2x128xf32> to vector<2x32xf32>
    %335 = arith.negf %334 : vector<2x32xf32>
    %336 = math.exp %335 : vector<2x32xf32>
    %cst_89 = arith.constant 1.000000e+00 : f32
    %337 = vector.broadcast %cst_89 : f32 to vector<2x32xf32>
    %338 = arith.addf %337, %336 : vector<2x32xf32>
    %339 = arith.divf %337, %338 : vector<2x32xf32>
    %340 = arith.mulf %331, %245 : vector<2x32xf32>
    %341 = arith.mulf %325, %333 : vector<2x32xf32>
    %342 = arith.addf %340, %341 : vector<2x32xf32>
    %343 = math.tanh %342 : vector<2x32xf32>
    %344 = arith.mulf %339, %343 : vector<2x32xf32>
    %345 = vector.broadcast %c3_i32 : i32 to vector<2x1xi32>
    %346 = arith.cmpi slt, %345, %18 : vector<2x1xi32>
    %cst_90 = arith.constant 0.000000e+00 : f32
    %347 = vector.shape_cast %346 : vector<2x1xi1> to vector<2x1xi1>
    %348 = vector.broadcast %347 : vector<2x1xi1> to vector<2x32xi1>
    %349 = vector.broadcast %cst_90 : f32 to vector<2x32xf32>
    %350 = arith.select %348, %344, %349 : vector<2x32xi1>, vector<2x32xf32>
    %c2_i32_91 = arith.constant 2 : i32
    %351 = arith.muli %313, %c2_i32_91 : i32
    %352 = arith.index_cast %351 : i32 to index
    %c0_92 = arith.constant 0 : index
    %353 = vector.load %arg12[%352, %c0_92] : memref<16x256xf32, #tpu.memory_space<vmem>>, vector<2x256xf32>
    %354 = vector.extract_strided_slice %353 {offsets = [0, 128], sizes = [2, 128], strides = [1, 1]} : vector<2x256xf32> to vector<2x128xf32>
    %cst_93 = arith.constant dense<0.000000e+00> : vector<2x128xf32>
    %355 = tpu.matmul %292, %20, %cst_93 {dimension_numbers = #tpu.dot_dimension_numbers<[1], [0], [0], [1], [0, 0, 1, 1], [], []>} : vector<2x32xf32>, vector<32x128xf32>, vector<2x128xf32> -> vector<2x128xf32>
    %356 = arith.addf %354, %355 : vector<2x128xf32>
    %357 = vector.extract_strided_slice %356 {offsets = [0, 0], sizes = [2, 32], strides = [1, 1]} : vector<2x128xf32> to vector<2x32xf32>
    %358 = arith.negf %357 : vector<2x32xf32>
    %359 = math.exp %358 : vector<2x32xf32>
    %cst_94 = arith.constant 1.000000e+00 : f32
    %360 = vector.broadcast %cst_94 : f32 to vector<2x32xf32>
    %361 = arith.addf %360, %359 : vector<2x32xf32>
    %362 = arith.divf %360, %361 : vector<2x32xf32>
    %363 = vector.extract_strided_slice %356 {offsets = [0, 32], sizes = [2, 32], strides = [1, 1]} : vector<2x128xf32> to vector<2x32xf32>
    %364 = arith.negf %363 : vector<2x32xf32>
    %365 = math.exp %364 : vector<2x32xf32>
    %cst_95 = arith.constant 1.000000e+00 : f32
    %366 = vector.broadcast %cst_95 : f32 to vector<2x32xf32>
    %367 = arith.addf %366, %365 : vector<2x32xf32>
    %368 = arith.divf %366, %367 : vector<2x32xf32>
    %369 = vector.extract_strided_slice %356 {offsets = [0, 64], sizes = [2, 32], strides = [1, 1]} : vector<2x128xf32> to vector<2x32xf32>
    %370 = math.tanh %369 : vector<2x32xf32>
    %371 = vector.extract_strided_slice %356 {offsets = [0, 96], sizes = [2, 32], strides = [1, 1]} : vector<2x128xf32> to vector<2x32xf32>
    %372 = arith.negf %371 : vector<2x32xf32>
    %373 = math.exp %372 : vector<2x32xf32>
    %cst_96 = arith.constant 1.000000e+00 : f32
    %374 = vector.broadcast %cst_96 : f32 to vector<2x32xf32>
    %375 = arith.addf %374, %373 : vector<2x32xf32>
    %376 = arith.divf %374, %375 : vector<2x32xf32>
    %377 = arith.mulf %368, %289 : vector<2x32xf32>
    %378 = arith.mulf %362, %370 : vector<2x32xf32>
    %379 = arith.addf %377, %378 : vector<2x32xf32>
    %380 = math.tanh %379 : vector<2x32xf32>
    %381 = arith.mulf %376, %380 : vector<2x32xf32>
    %382 = vector.broadcast %313 : i32 to vector<2x1xi32>
    %383 = arith.cmpi slt, %382, %18 : vector<2x1xi32>
    %384 = vector.shape_cast %383 : vector<2x1xi1> to vector<2x1xi1>
    %385 = vector.broadcast %384 : vector<2x1xi1> to vector<2x32xi1>
    %386 = arith.select %385, %379, %289 : vector<2x32xi1>, vector<2x32xf32>
    %387 = vector.shape_cast %383 : vector<2x1xi1> to vector<2x1xi1>
    %388 = vector.broadcast %387 : vector<2x1xi1> to vector<2x32xi1>
    %389 = arith.select %388, %381, %292 : vector<2x32xi1>, vector<2x32xf32>
    %cst_97 = arith.constant 0.000000e+00 : f32
    %390 = vector.shape_cast %383 : vector<2x1xi1> to vector<2x1xi1>
    %391 = vector.broadcast %390 : vector<2x1xi1> to vector<2x32xi1>
    %392 = vector.broadcast %cst_97 : f32 to vector<2x32xf32>
    %393 = arith.select %391, %381, %392 : vector<2x32xi1>, vector<2x32xf32>
    %394 = vector.extract_strided_slice %350 {offsets = [0, 0], sizes = [1, 32], strides = [1, 1]} : vector<2x32xf32> to vector<1x32xf32>
    %c0_i32_98 = arith.constant 0 : i32
    %395 = arith.addi %c0_i32_98, %c3_i32 : i32
    %396 = arith.index_cast %395 : i32 to index
    %c0_99 = arith.constant 0 : index
    %397 = vector.load %arg13[%396, %c0_99] : memref<16x32xf32, #tpu.memory_space<vmem>>, vector<1x32xf32>
    tpu.vector_store %arg13[%396, %c0_99], %394 {strides = array<i32>} : memref<16x32xf32, #tpu.memory_space<vmem>>, vector<1x32xf32>,
    %398 = vector.extract_strided_slice %393 {offsets = [0, 0], sizes = [1, 32], strides = [1, 1]} : vector<2x32xf32> to vector<1x32xf32>
    %c0_i32_100 = arith.constant 0 : i32
    %399 = arith.addi %c0_i32_100, %313 : i32
    %400 = arith.index_cast %399 : i32 to index
    %c0_101 = arith.constant 0 : index
    %401 = vector.load %arg14[%400, %c0_101] : memref<16x32xf32, #tpu.memory_space<vmem>>, vector<1x32xf32>
    tpu.vector_store %arg14[%400, %c0_101], %398 {strides = array<i32>} : memref<16x32xf32, #tpu.memory_space<vmem>>, vector<1x32xf32>,
    %402 = vector.extract_strided_slice %350 {offsets = [1, 0], sizes = [1, 32], strides = [1, 1]} : vector<2x32xf32> to vector<1x32xf32>
    %c8_i32_102 = arith.constant 8 : i32
    %403 = arith.addi %c8_i32_102, %c3_i32 : i32
    %404 = arith.index_cast %403 : i32 to index
    %c0_103 = arith.constant 0 : index
    %405 = vector.load %arg13[%404, %c0_103] : memref<16x32xf32, #tpu.memory_space<vmem>>, vector<1x32xf32>
    tpu.vector_store %arg13[%404, %c0_103], %402 {strides = array<i32>} : memref<16x32xf32, #tpu.memory_space<vmem>>, vector<1x32xf32>,
    %406 = vector.extract_strided_slice %393 {offsets = [1, 0], sizes = [1, 32], strides = [1, 1]} : vector<2x32xf32> to vector<1x32xf32>
    %c8_i32_104 = arith.constant 8 : i32
    %407 = arith.addi %c8_i32_104, %313 : i32
    %408 = arith.index_cast %407 : i32 to index
    %c0_105 = arith.constant 0 : index
    %409 = vector.load %arg14[%408, %c0_105] : memref<16x32xf32, #tpu.memory_space<vmem>>, vector<1x32xf32>
    tpu.vector_store %arg14[%408, %c0_105], %406 {strides = array<i32>} : memref<16x32xf32, #tpu.memory_space<vmem>>, vector<1x32xf32>,
    %c4_i32 = arith.constant 4 : i32
    %c7_i32_106 = arith.constant 7 : i32
    %410 = arith.subi %c7_i32_106, %c4_i32 : i32
    %c2_i32_107 = arith.constant 2 : i32
    %411 = arith.muli %c4_i32, %c2_i32_107 : i32
    %412 = arith.index_cast %411 : i32 to index
    %c0_108 = arith.constant 0 : index
    %413 = vector.load %arg12[%412, %c0_108] : memref<16x256xf32, #tpu.memory_space<vmem>>, vector<2x256xf32>
    %414 = vector.extract_strided_slice %413 {offsets = [0, 0], sizes = [2, 128], strides = [1, 1]} : vector<2x256xf32> to vector<2x128xf32>
    %cst_109 = arith.constant dense<0.000000e+00> : vector<2x128xf32>
    %415 = tpu.matmul %344, %19, %cst_109 {dimension_numbers = #tpu.dot_dimension_numbers<[1], [0], [0], [1], [0, 0, 1, 1], [], []>} : vector<2x32xf32>, vector<32x128xf32>, vector<2x128xf32> -> vector<2x128xf32>
    %416 = arith.addf %414, %415 : vector<2x128xf32>
    %417 = vector.extract_strided_slice %416 {offsets = [0, 0], sizes = [2, 32], strides = [1, 1]} : vector<2x128xf32> to vector<2x32xf32>
    %418 = arith.negf %417 : vector<2x32xf32>
    %419 = math.exp %418 : vector<2x32xf32>
    %cst_110 = arith.constant 1.000000e+00 : f32
    %420 = vector.broadcast %cst_110 : f32 to vector<2x32xf32>
    %421 = arith.addf %420, %419 : vector<2x32xf32>
    %422 = arith.divf %420, %421 : vector<2x32xf32>
    %423 = vector.extract_strided_slice %416 {offsets = [0, 32], sizes = [2, 32], strides = [1, 1]} : vector<2x128xf32> to vector<2x32xf32>
    %424 = arith.negf %423 : vector<2x32xf32>
    %425 = math.exp %424 : vector<2x32xf32>
    %cst_111 = arith.constant 1.000000e+00 : f32
    %426 = vector.broadcast %cst_111 : f32 to vector<2x32xf32>
    %427 = arith.addf %426, %425 : vector<2x32xf32>
    %428 = arith.divf %426, %427 : vector<2x32xf32>
    %429 = vector.extract_strided_slice %416 {offsets = [0, 64], sizes = [2, 32], strides = [1, 1]} : vector<2x128xf32> to vector<2x32xf32>
    %430 = math.tanh %429 : vector<2x32xf32>
    %431 = vector.extract_strided_slice %416 {offsets = [0, 96], sizes = [2, 32], strides = [1, 1]} : vector<2x128xf32> to vector<2x32xf32>
    %432 = arith.negf %431 : vector<2x32xf32>
    %433 = math.exp %432 : vector<2x32xf32>
    %cst_112 = arith.constant 1.000000e+00 : f32
    %434 = vector.broadcast %cst_112 : f32 to vector<2x32xf32>
    %435 = arith.addf %434, %433 : vector<2x32xf32>
    %436 = arith.divf %434, %435 : vector<2x32xf32>
    %437 = arith.mulf %428, %342 : vector<2x32xf32>
    %438 = arith.mulf %422, %430 : vector<2x32xf32>
    %439 = arith.addf %437, %438 : vector<2x32xf32>
    %440 = math.tanh %439 : vector<2x32xf32>
    %441 = arith.mulf %436, %440 : vector<2x32xf32>
    %442 = vector.broadcast %c4_i32 : i32 to vector<2x1xi32>
    %443 = arith.cmpi slt, %442, %18 : vector<2x1xi32>
    %cst_113 = arith.constant 0.000000e+00 : f32
    %444 = vector.shape_cast %443 : vector<2x1xi1> to vector<2x1xi1>
    %445 = vector.broadcast %444 : vector<2x1xi1> to vector<2x32xi1>
    %446 = vector.broadcast %cst_113 : f32 to vector<2x32xf32>
    %447 = arith.select %445, %441, %446 : vector<2x32xi1>, vector<2x32xf32>
    %c2_i32_114 = arith.constant 2 : i32
    %448 = arith.muli %410, %c2_i32_114 : i32
    %449 = arith.index_cast %448 : i32 to index
    %c0_115 = arith.constant 0 : index
    %450 = vector.load %arg12[%449, %c0_115] : memref<16x256xf32, #tpu.memory_space<vmem>>, vector<2x256xf32>
    %451 = vector.extract_strided_slice %450 {offsets = [0, 128], sizes = [2, 128], strides = [1, 1]} : vector<2x256xf32> to vector<2x128xf32>
    %cst_116 = arith.constant dense<0.000000e+00> : vector<2x128xf32>
    %452 = tpu.matmul %389, %20, %cst_116 {dimension_numbers = #tpu.dot_dimension_numbers<[1], [0], [0], [1], [0, 0, 1, 1], [], []>} : vector<2x32xf32>, vector<32x128xf32>, vector<2x128xf32> -> vector<2x128xf32>
    %453 = arith.addf %451, %452 : vector<2x128xf32>
    %454 = vector.extract_strided_slice %453 {offsets = [0, 0], sizes = [2, 32], strides = [1, 1]} : vector<2x128xf32> to vector<2x32xf32>
    %455 = arith.negf %454 : vector<2x32xf32>
    %456 = math.exp %455 : vector<2x32xf32>
    %cst_117 = arith.constant 1.000000e+00 : f32
    %457 = vector.broadcast %cst_117 : f32 to vector<2x32xf32>
    %458 = arith.addf %457, %456 : vector<2x32xf32>
    %459 = arith.divf %457, %458 : vector<2x32xf32>
    %460 = vector.extract_strided_slice %453 {offsets = [0, 32], sizes = [2, 32], strides = [1, 1]} : vector<2x128xf32> to vector<2x32xf32>
    %461 = arith.negf %460 : vector<2x32xf32>
    %462 = math.exp %461 : vector<2x32xf32>
    %cst_118 = arith.constant 1.000000e+00 : f32
    %463 = vector.broadcast %cst_118 : f32 to vector<2x32xf32>
    %464 = arith.addf %463, %462 : vector<2x32xf32>
    %465 = arith.divf %463, %464 : vector<2x32xf32>
    %466 = vector.extract_strided_slice %453 {offsets = [0, 64], sizes = [2, 32], strides = [1, 1]} : vector<2x128xf32> to vector<2x32xf32>
    %467 = math.tanh %466 : vector<2x32xf32>
    %468 = vector.extract_strided_slice %453 {offsets = [0, 96], sizes = [2, 32], strides = [1, 1]} : vector<2x128xf32> to vector<2x32xf32>
    %469 = arith.negf %468 : vector<2x32xf32>
    %470 = math.exp %469 : vector<2x32xf32>
    %cst_119 = arith.constant 1.000000e+00 : f32
    %471 = vector.broadcast %cst_119 : f32 to vector<2x32xf32>
    %472 = arith.addf %471, %470 : vector<2x32xf32>
    %473 = arith.divf %471, %472 : vector<2x32xf32>
    %474 = arith.mulf %465, %386 : vector<2x32xf32>
    %475 = arith.mulf %459, %467 : vector<2x32xf32>
    %476 = arith.addf %474, %475 : vector<2x32xf32>
    %477 = math.tanh %476 : vector<2x32xf32>
    %478 = arith.mulf %473, %477 : vector<2x32xf32>
    %479 = vector.broadcast %410 : i32 to vector<2x1xi32>
    %480 = arith.cmpi slt, %479, %18 : vector<2x1xi32>
    %481 = vector.shape_cast %480 : vector<2x1xi1> to vector<2x1xi1>
    %482 = vector.broadcast %481 : vector<2x1xi1> to vector<2x32xi1>
    %483 = arith.select %482, %476, %386 : vector<2x32xi1>, vector<2x32xf32>
    %484 = vector.shape_cast %480 : vector<2x1xi1> to vector<2x1xi1>
    %485 = vector.broadcast %484 : vector<2x1xi1> to vector<2x32xi1>
    %486 = arith.select %485, %478, %389 : vector<2x32xi1>, vector<2x32xf32>
    %cst_120 = arith.constant 0.000000e+00 : f32
    %487 = vector.shape_cast %480 : vector<2x1xi1> to vector<2x1xi1>
    %488 = vector.broadcast %487 : vector<2x1xi1> to vector<2x32xi1>
    %489 = vector.broadcast %cst_120 : f32 to vector<2x32xf32>
    %490 = arith.select %488, %478, %489 : vector<2x32xi1>, vector<2x32xf32>
    %491 = vector.extract_strided_slice %447 {offsets = [0, 0], sizes = [1, 32], strides = [1, 1]} : vector<2x32xf32> to vector<1x32xf32>
    %c0_i32_121 = arith.constant 0 : i32
    %492 = arith.addi %c0_i32_121, %c4_i32 : i32
    %493 = arith.index_cast %492 : i32 to index
    %c0_122 = arith.constant 0 : index
    %494 = vector.load %arg13[%493, %c0_122] : memref<16x32xf32, #tpu.memory_space<vmem>>, vector<1x32xf32>
    tpu.vector_store %arg13[%493, %c0_122], %491 {strides = array<i32>} : memref<16x32xf32, #tpu.memory_space<vmem>>, vector<1x32xf32>,
    %495 = vector.extract_strided_slice %490 {offsets = [0, 0], sizes = [1, 32], strides = [1, 1]} : vector<2x32xf32> to vector<1x32xf32>
    %c0_i32_123 = arith.constant 0 : i32
    %496 = arith.addi %c0_i32_123, %410 : i32
    %497 = arith.index_cast %496 : i32 to index
    %c0_124 = arith.constant 0 : index
    %498 = vector.load %arg14[%497, %c0_124] : memref<16x32xf32, #tpu.memory_space<vmem>>, vector<1x32xf32>
    tpu.vector_store %arg14[%497, %c0_124], %495 {strides = array<i32>} : memref<16x32xf32, #tpu.memory_space<vmem>>, vector<1x32xf32>,
    %499 = vector.extract_strided_slice %447 {offsets = [1, 0], sizes = [1, 32], strides = [1, 1]} : vector<2x32xf32> to vector<1x32xf32>
    %c8_i32_125 = arith.constant 8 : i32
    %500 = arith.addi %c8_i32_125, %c4_i32 : i32
    %501 = arith.index_cast %500 : i32 to index
    %c0_126 = arith.constant 0 : index
    %502 = vector.load %arg13[%501, %c0_126] : memref<16x32xf32, #tpu.memory_space<vmem>>, vector<1x32xf32>
    tpu.vector_store %arg13[%501, %c0_126], %499 {strides = array<i32>} : memref<16x32xf32, #tpu.memory_space<vmem>>, vector<1x32xf32>,
    %503 = vector.extract_strided_slice %490 {offsets = [1, 0], sizes = [1, 32], strides = [1, 1]} : vector<2x32xf32> to vector<1x32xf32>
    %c8_i32_127 = arith.constant 8 : i32
    %504 = arith.addi %c8_i32_127, %410 : i32
    %505 = arith.index_cast %504 : i32 to index
    %c0_128 = arith.constant 0 : index
    %506 = vector.load %arg14[%505, %c0_128] : memref<16x32xf32, #tpu.memory_space<vmem>>, vector<1x32xf32>
    tpu.vector_store %arg14[%505, %c0_128], %503 {strides = array<i32>} : memref<16x32xf32, #tpu.memory_space<vmem>>, vector<1x32xf32>,
    %c5_i32 = arith.constant 5 : i32
    %c7_i32_129 = arith.constant 7 : i32
    %507 = arith.subi %c7_i32_129, %c5_i32 : i32
    %c2_i32_130 = arith.constant 2 : i32
    %508 = arith.muli %c5_i32, %c2_i32_130 : i32
    %509 = arith.index_cast %508 : i32 to index
    %c0_131 = arith.constant 0 : index
    %510 = vector.load %arg12[%509, %c0_131] : memref<16x256xf32, #tpu.memory_space<vmem>>, vector<2x256xf32>
    %511 = vector.extract_strided_slice %510 {offsets = [0, 0], sizes = [2, 128], strides = [1, 1]} : vector<2x256xf32> to vector<2x128xf32>
    %cst_132 = arith.constant dense<0.000000e+00> : vector<2x128xf32>
    %512 = tpu.matmul %441, %19, %cst_132 {dimension_numbers = #tpu.dot_dimension_numbers<[1], [0], [0], [1], [0, 0, 1, 1], [], []>} : vector<2x32xf32>, vector<32x128xf32>, vector<2x128xf32> -> vector<2x128xf32>
    %513 = arith.addf %511, %512 : vector<2x128xf32>
    %514 = vector.extract_strided_slice %513 {offsets = [0, 0], sizes = [2, 32], strides = [1, 1]} : vector<2x128xf32> to vector<2x32xf32>
    %515 = arith.negf %514 : vector<2x32xf32>
    %516 = math.exp %515 : vector<2x32xf32>
    %cst_133 = arith.constant 1.000000e+00 : f32
    %517 = vector.broadcast %cst_133 : f32 to vector<2x32xf32>
    %518 = arith.addf %517, %516 : vector<2x32xf32>
    %519 = arith.divf %517, %518 : vector<2x32xf32>
    %520 = vector.extract_strided_slice %513 {offsets = [0, 32], sizes = [2, 32], strides = [1, 1]} : vector<2x128xf32> to vector<2x32xf32>
    %521 = arith.negf %520 : vector<2x32xf32>
    %522 = math.exp %521 : vector<2x32xf32>
    %cst_134 = arith.constant 1.000000e+00 : f32
    %523 = vector.broadcast %cst_134 : f32 to vector<2x32xf32>
    %524 = arith.addf %523, %522 : vector<2x32xf32>
    %525 = arith.divf %523, %524 : vector<2x32xf32>
    %526 = vector.extract_strided_slice %513 {offsets = [0, 64], sizes = [2, 32], strides = [1, 1]} : vector<2x128xf32> to vector<2x32xf32>
    %527 = math.tanh %526 : vector<2x32xf32>
    %528 = vector.extract_strided_slice %513 {offsets = [0, 96], sizes = [2, 32], strides = [1, 1]} : vector<2x128xf32> to vector<2x32xf32>
    %529 = arith.negf %528 : vector<2x32xf32>
    %530 = math.exp %529 : vector<2x32xf32>
    %cst_135 = arith.constant 1.000000e+00 : f32
    %531 = vector.broadcast %cst_135 : f32 to vector<2x32xf32>
    %532 = arith.addf %531, %530 : vector<2x32xf32>
    %533 = arith.divf %531, %532 : vector<2x32xf32>
    %534 = arith.mulf %525, %439 : vector<2x32xf32>
    %535 = arith.mulf %519, %527 : vector<2x32xf32>
    %536 = arith.addf %534, %535 : vector<2x32xf32>
    %537 = math.tanh %536 : vector<2x32xf32>
    %538 = arith.mulf %533, %537 : vector<2x32xf32>
    %539 = vector.broadcast %c5_i32 : i32 to vector<2x1xi32>
    %540 = arith.cmpi slt, %539, %18 : vector<2x1xi32>
    %cst_136 = arith.constant 0.000000e+00 : f32
    %541 = vector.shape_cast %540 : vector<2x1xi1> to vector<2x1xi1>
    %542 = vector.broadcast %541 : vector<2x1xi1> to vector<2x32xi1>
    %543 = vector.broadcast %cst_136 : f32 to vector<2x32xf32>
    %544 = arith.select %542, %538, %543 : vector<2x32xi1>, vector<2x32xf32>
    %c2_i32_137 = arith.constant 2 : i32
    %545 = arith.muli %507, %c2_i32_137 : i32
    %546 = arith.index_cast %545 : i32 to index
    %c0_138 = arith.constant 0 : index
    %547 = vector.load %arg12[%546, %c0_138] : memref<16x256xf32, #tpu.memory_space<vmem>>, vector<2x256xf32>
    %548 = vector.extract_strided_slice %547 {offsets = [0, 128], sizes = [2, 128], strides = [1, 1]} : vector<2x256xf32> to vector<2x128xf32>
    %cst_139 = arith.constant dense<0.000000e+00> : vector<2x128xf32>
    %549 = tpu.matmul %486, %20, %cst_139 {dimension_numbers = #tpu.dot_dimension_numbers<[1], [0], [0], [1], [0, 0, 1, 1], [], []>} : vector<2x32xf32>, vector<32x128xf32>, vector<2x128xf32> -> vector<2x128xf32>
    %550 = arith.addf %548, %549 : vector<2x128xf32>
    %551 = vector.extract_strided_slice %550 {offsets = [0, 0], sizes = [2, 32], strides = [1, 1]} : vector<2x128xf32> to vector<2x32xf32>
    %552 = arith.negf %551 : vector<2x32xf32>
    %553 = math.exp %552 : vector<2x32xf32>
    %cst_140 = arith.constant 1.000000e+00 : f32
    %554 = vector.broadcast %cst_140 : f32 to vector<2x32xf32>
    %555 = arith.addf %554, %553 : vector<2x32xf32>
    %556 = arith.divf %554, %555 : vector<2x32xf32>
    %557 = vector.extract_strided_slice %550 {offsets = [0, 32], sizes = [2, 32], strides = [1, 1]} : vector<2x128xf32> to vector<2x32xf32>
    %558 = arith.negf %557 : vector<2x32xf32>
    %559 = math.exp %558 : vector<2x32xf32>
    %cst_141 = arith.constant 1.000000e+00 : f32
    %560 = vector.broadcast %cst_141 : f32 to vector<2x32xf32>
    %561 = arith.addf %560, %559 : vector<2x32xf32>
    %562 = arith.divf %560, %561 : vector<2x32xf32>
    %563 = vector.extract_strided_slice %550 {offsets = [0, 64], sizes = [2, 32], strides = [1, 1]} : vector<2x128xf32> to vector<2x32xf32>
    %564 = math.tanh %563 : vector<2x32xf32>
    %565 = vector.extract_strided_slice %550 {offsets = [0, 96], sizes = [2, 32], strides = [1, 1]} : vector<2x128xf32> to vector<2x32xf32>
    %566 = arith.negf %565 : vector<2x32xf32>
    %567 = math.exp %566 : vector<2x32xf32>
    %cst_142 = arith.constant 1.000000e+00 : f32
    %568 = vector.broadcast %cst_142 : f32 to vector<2x32xf32>
    %569 = arith.addf %568, %567 : vector<2x32xf32>
    %570 = arith.divf %568, %569 : vector<2x32xf32>
    %571 = arith.mulf %562, %483 : vector<2x32xf32>
    %572 = arith.mulf %556, %564 : vector<2x32xf32>
    %573 = arith.addf %571, %572 : vector<2x32xf32>
    %574 = math.tanh %573 : vector<2x32xf32>
    %575 = arith.mulf %570, %574 : vector<2x32xf32>
    %576 = vector.broadcast %507 : i32 to vector<2x1xi32>
    %577 = arith.cmpi slt, %576, %18 : vector<2x1xi32>
    %578 = vector.shape_cast %577 : vector<2x1xi1> to vector<2x1xi1>
    %579 = vector.broadcast %578 : vector<2x1xi1> to vector<2x32xi1>
    %580 = arith.select %579, %573, %483 : vector<2x32xi1>, vector<2x32xf32>
    %581 = vector.shape_cast %577 : vector<2x1xi1> to vector<2x1xi1>
    %582 = vector.broadcast %581 : vector<2x1xi1> to vector<2x32xi1>
    %583 = arith.select %582, %575, %486 : vector<2x32xi1>, vector<2x32xf32>
    %cst_143 = arith.constant 0.000000e+00 : f32
    %584 = vector.shape_cast %577 : vector<2x1xi1> to vector<2x1xi1>
    %585 = vector.broadcast %584 : vector<2x1xi1> to vector<2x32xi1>
    %586 = vector.broadcast %cst_143 : f32 to vector<2x32xf32>
    %587 = arith.select %585, %575, %586 : vector<2x32xi1>, vector<2x32xf32>
    %588 = vector.extract_strided_slice %544 {offsets = [0, 0], sizes = [1, 32], strides = [1, 1]} : vector<2x32xf32> to vector<1x32xf32>
    %c0_i32_144 = arith.constant 0 : i32
    %589 = arith.addi %c0_i32_144, %c5_i32 : i32
    %590 = arith.index_cast %589 : i32 to index
    %c0_145 = arith.constant 0 : index
    %591 = vector.load %arg13[%590, %c0_145] : memref<16x32xf32, #tpu.memory_space<vmem>>, vector<1x32xf32>
    tpu.vector_store %arg13[%590, %c0_145], %588 {strides = array<i32>} : memref<16x32xf32, #tpu.memory_space<vmem>>, vector<1x32xf32>,
    %592 = vector.extract_strided_slice %587 {offsets = [0, 0], sizes = [1, 32], strides = [1, 1]} : vector<2x32xf32> to vector<1x32xf32>
    %c0_i32_146 = arith.constant 0 : i32
    %593 = arith.addi %c0_i32_146, %507 : i32
    %594 = arith.index_cast %593 : i32 to index
    %c0_147 = arith.constant 0 : index
    %595 = vector.load %arg14[%594, %c0_147] : memref<16x32xf32, #tpu.memory_space<vmem>>, vector<1x32xf32>
    tpu.vector_store %arg14[%594, %c0_147], %592 {strides = array<i32>} : memref<16x32xf32, #tpu.memory_space<vmem>>, vector<1x32xf32>,
    %596 = vector.extract_strided_slice %544 {offsets = [1, 0], sizes = [1, 32], strides = [1, 1]} : vector<2x32xf32> to vector<1x32xf32>
    %c8_i32_148 = arith.constant 8 : i32
    %597 = arith.addi %c8_i32_148, %c5_i32 : i32
    %598 = arith.index_cast %597 : i32 to index
    %c0_149 = arith.constant 0 : index
    %599 = vector.load %arg13[%598, %c0_149] : memref<16x32xf32, #tpu.memory_space<vmem>>, vector<1x32xf32>
    tpu.vector_store %arg13[%598, %c0_149], %596 {strides = array<i32>} : memref<16x32xf32, #tpu.memory_space<vmem>>, vector<1x32xf32>,
    %600 = vector.extract_strided_slice %587 {offsets = [1, 0], sizes = [1, 32], strides = [1, 1]} : vector<2x32xf32> to vector<1x32xf32>
    %c8_i32_150 = arith.constant 8 : i32
    %601 = arith.addi %c8_i32_150, %507 : i32
    %602 = arith.index_cast %601 : i32 to index
    %c0_151 = arith.constant 0 : index
    %603 = vector.load %arg14[%602, %c0_151] : memref<16x32xf32, #tpu.memory_space<vmem>>, vector<1x32xf32>
    tpu.vector_store %arg14[%602, %c0_151], %600 {strides = array<i32>} : memref<16x32xf32, #tpu.memory_space<vmem>>, vector<1x32xf32>,
    %c6_i32 = arith.constant 6 : i32
    %c7_i32_152 = arith.constant 7 : i32
    %604 = arith.subi %c7_i32_152, %c6_i32 : i32
    %c2_i32_153 = arith.constant 2 : i32
    %605 = arith.muli %c6_i32, %c2_i32_153 : i32
    %606 = arith.index_cast %605 : i32 to index
    %c0_154 = arith.constant 0 : index
    %607 = vector.load %arg12[%606, %c0_154] : memref<16x256xf32, #tpu.memory_space<vmem>>, vector<2x256xf32>
    %608 = vector.extract_strided_slice %607 {offsets = [0, 0], sizes = [2, 128], strides = [1, 1]} : vector<2x256xf32> to vector<2x128xf32>
    %cst_155 = arith.constant dense<0.000000e+00> : vector<2x128xf32>
    %609 = tpu.matmul %538, %19, %cst_155 {dimension_numbers = #tpu.dot_dimension_numbers<[1], [0], [0], [1], [0, 0, 1, 1], [], []>} : vector<2x32xf32>, vector<32x128xf32>, vector<2x128xf32> -> vector<2x128xf32>
    %610 = arith.addf %608, %609 : vector<2x128xf32>
    %611 = vector.extract_strided_slice %610 {offsets = [0, 0], sizes = [2, 32], strides = [1, 1]} : vector<2x128xf32> to vector<2x32xf32>
    %612 = arith.negf %611 : vector<2x32xf32>
    %613 = math.exp %612 : vector<2x32xf32>
    %cst_156 = arith.constant 1.000000e+00 : f32
    %614 = vector.broadcast %cst_156 : f32 to vector<2x32xf32>
    %615 = arith.addf %614, %613 : vector<2x32xf32>
    %616 = arith.divf %614, %615 : vector<2x32xf32>
    %617 = vector.extract_strided_slice %610 {offsets = [0, 32], sizes = [2, 32], strides = [1, 1]} : vector<2x128xf32> to vector<2x32xf32>
    %618 = arith.negf %617 : vector<2x32xf32>
    %619 = math.exp %618 : vector<2x32xf32>
    %cst_157 = arith.constant 1.000000e+00 : f32
    %620 = vector.broadcast %cst_157 : f32 to vector<2x32xf32>
    %621 = arith.addf %620, %619 : vector<2x32xf32>
    %622 = arith.divf %620, %621 : vector<2x32xf32>
    %623 = vector.extract_strided_slice %610 {offsets = [0, 64], sizes = [2, 32], strides = [1, 1]} : vector<2x128xf32> to vector<2x32xf32>
    %624 = math.tanh %623 : vector<2x32xf32>
    %625 = vector.extract_strided_slice %610 {offsets = [0, 96], sizes = [2, 32], strides = [1, 1]} : vector<2x128xf32> to vector<2x32xf32>
    %626 = arith.negf %625 : vector<2x32xf32>
    %627 = math.exp %626 : vector<2x32xf32>
    %cst_158 = arith.constant 1.000000e+00 : f32
    %628 = vector.broadcast %cst_158 : f32 to vector<2x32xf32>
    %629 = arith.addf %628, %627 : vector<2x32xf32>
    %630 = arith.divf %628, %629 : vector<2x32xf32>
    %631 = arith.mulf %622, %536 : vector<2x32xf32>
    %632 = arith.mulf %616, %624 : vector<2x32xf32>
    %633 = arith.addf %631, %632 : vector<2x32xf32>
    %634 = math.tanh %633 : vector<2x32xf32>
    %635 = arith.mulf %630, %634 : vector<2x32xf32>
    %636 = vector.broadcast %c6_i32 : i32 to vector<2x1xi32>
    %637 = arith.cmpi slt, %636, %18 : vector<2x1xi32>
    %cst_159 = arith.constant 0.000000e+00 : f32
    %638 = vector.shape_cast %637 : vector<2x1xi1> to vector<2x1xi1>
    %639 = vector.broadcast %638 : vector<2x1xi1> to vector<2x32xi1>
    %640 = vector.broadcast %cst_159 : f32 to vector<2x32xf32>
    %641 = arith.select %639, %635, %640 : vector<2x32xi1>, vector<2x32xf32>
    %c2_i32_160 = arith.constant 2 : i32
    %642 = arith.muli %604, %c2_i32_160 : i32
    %643 = arith.index_cast %642 : i32 to index
    %c0_161 = arith.constant 0 : index
    %644 = vector.load %arg12[%643, %c0_161] : memref<16x256xf32, #tpu.memory_space<vmem>>, vector<2x256xf32>
    %645 = vector.extract_strided_slice %644 {offsets = [0, 128], sizes = [2, 128], strides = [1, 1]} : vector<2x256xf32> to vector<2x128xf32>
    %cst_162 = arith.constant dense<0.000000e+00> : vector<2x128xf32>
    %646 = tpu.matmul %583, %20, %cst_162 {dimension_numbers = #tpu.dot_dimension_numbers<[1], [0], [0], [1], [0, 0, 1, 1], [], []>} : vector<2x32xf32>, vector<32x128xf32>, vector<2x128xf32> -> vector<2x128xf32>
    %647 = arith.addf %645, %646 : vector<2x128xf32>
    %648 = vector.extract_strided_slice %647 {offsets = [0, 0], sizes = [2, 32], strides = [1, 1]} : vector<2x128xf32> to vector<2x32xf32>
    %649 = arith.negf %648 : vector<2x32xf32>
    %650 = math.exp %649 : vector<2x32xf32>
    %cst_163 = arith.constant 1.000000e+00 : f32
    %651 = vector.broadcast %cst_163 : f32 to vector<2x32xf32>
    %652 = arith.addf %651, %650 : vector<2x32xf32>
    %653 = arith.divf %651, %652 : vector<2x32xf32>
    %654 = vector.extract_strided_slice %647 {offsets = [0, 32], sizes = [2, 32], strides = [1, 1]} : vector<2x128xf32> to vector<2x32xf32>
    %655 = arith.negf %654 : vector<2x32xf32>
    %656 = math.exp %655 : vector<2x32xf32>
    %cst_164 = arith.constant 1.000000e+00 : f32
    %657 = vector.broadcast %cst_164 : f32 to vector<2x32xf32>
    %658 = arith.addf %657, %656 : vector<2x32xf32>
    %659 = arith.divf %657, %658 : vector<2x32xf32>
    %660 = vector.extract_strided_slice %647 {offsets = [0, 64], sizes = [2, 32], strides = [1, 1]} : vector<2x128xf32> to vector<2x32xf32>
    %661 = math.tanh %660 : vector<2x32xf32>
    %662 = vector.extract_strided_slice %647 {offsets = [0, 96], sizes = [2, 32], strides = [1, 1]} : vector<2x128xf32> to vector<2x32xf32>
    %663 = arith.negf %662 : vector<2x32xf32>
    %664 = math.exp %663 : vector<2x32xf32>
    %cst_165 = arith.constant 1.000000e+00 : f32
    %665 = vector.broadcast %cst_165 : f32 to vector<2x32xf32>
    %666 = arith.addf %665, %664 : vector<2x32xf32>
    %667 = arith.divf %665, %666 : vector<2x32xf32>
    %668 = arith.mulf %659, %580 : vector<2x32xf32>
    %669 = arith.mulf %653, %661 : vector<2x32xf32>
    %670 = arith.addf %668, %669 : vector<2x32xf32>
    %671 = math.tanh %670 : vector<2x32xf32>
    %672 = arith.mulf %667, %671 : vector<2x32xf32>
    %673 = vector.broadcast %604 : i32 to vector<2x1xi32>
    %674 = arith.cmpi slt, %673, %18 : vector<2x1xi32>
    %675 = vector.shape_cast %674 : vector<2x1xi1> to vector<2x1xi1>
    %676 = vector.broadcast %675 : vector<2x1xi1> to vector<2x32xi1>
    %677 = arith.select %676, %670, %580 : vector<2x32xi1>, vector<2x32xf32>
    %678 = vector.shape_cast %674 : vector<2x1xi1> to vector<2x1xi1>
    %679 = vector.broadcast %678 : vector<2x1xi1> to vector<2x32xi1>
    %680 = arith.select %679, %672, %583 : vector<2x32xi1>, vector<2x32xf32>
    %cst_166 = arith.constant 0.000000e+00 : f32
    %681 = vector.shape_cast %674 : vector<2x1xi1> to vector<2x1xi1>
    %682 = vector.broadcast %681 : vector<2x1xi1> to vector<2x32xi1>
    %683 = vector.broadcast %cst_166 : f32 to vector<2x32xf32>
    %684 = arith.select %682, %672, %683 : vector<2x32xi1>, vector<2x32xf32>
    %685 = vector.extract_strided_slice %641 {offsets = [0, 0], sizes = [1, 32], strides = [1, 1]} : vector<2x32xf32> to vector<1x32xf32>
    %c0_i32_167 = arith.constant 0 : i32
    %686 = arith.addi %c0_i32_167, %c6_i32 : i32
    %687 = arith.index_cast %686 : i32 to index
    %c0_168 = arith.constant 0 : index
    %688 = vector.load %arg13[%687, %c0_168] : memref<16x32xf32, #tpu.memory_space<vmem>>, vector<1x32xf32>
    tpu.vector_store %arg13[%687, %c0_168], %685 {strides = array<i32>} : memref<16x32xf32, #tpu.memory_space<vmem>>, vector<1x32xf32>,
    %689 = vector.extract_strided_slice %684 {offsets = [0, 0], sizes = [1, 32], strides = [1, 1]} : vector<2x32xf32> to vector<1x32xf32>
    %c0_i32_169 = arith.constant 0 : i32
    %690 = arith.addi %c0_i32_169, %604 : i32
    %691 = arith.index_cast %690 : i32 to index
    %c0_170 = arith.constant 0 : index
    %692 = vector.load %arg14[%691, %c0_170] : memref<16x32xf32, #tpu.memory_space<vmem>>, vector<1x32xf32>
    tpu.vector_store %arg14[%691, %c0_170], %689 {strides = array<i32>} : memref<16x32xf32, #tpu.memory_space<vmem>>, vector<1x32xf32>,
    %693 = vector.extract_strided_slice %641 {offsets = [1, 0], sizes = [1, 32], strides = [1, 1]} : vector<2x32xf32> to vector<1x32xf32>
    %c8_i32_171 = arith.constant 8 : i32
    %694 = arith.addi %c8_i32_171, %c6_i32 : i32
    %695 = arith.index_cast %694 : i32 to index
    %c0_172 = arith.constant 0 : index
    %696 = vector.load %arg13[%695, %c0_172] : memref<16x32xf32, #tpu.memory_space<vmem>>, vector<1x32xf32>
    tpu.vector_store %arg13[%695, %c0_172], %693 {strides = array<i32>} : memref<16x32xf32, #tpu.memory_space<vmem>>, vector<1x32xf32>,
    %697 = vector.extract_strided_slice %684 {offsets = [1, 0], sizes = [1, 32], strides = [1, 1]} : vector<2x32xf32> to vector<1x32xf32>
    %c8_i32_173 = arith.constant 8 : i32
    %698 = arith.addi %c8_i32_173, %604 : i32
    %699 = arith.index_cast %698 : i32 to index
    %c0_174 = arith.constant 0 : index
    %700 = vector.load %arg14[%699, %c0_174] : memref<16x32xf32, #tpu.memory_space<vmem>>, vector<1x32xf32>
    tpu.vector_store %arg14[%699, %c0_174], %697 {strides = array<i32>} : memref<16x32xf32, #tpu.memory_space<vmem>>, vector<1x32xf32>,
    %c7_i32_175 = arith.constant 7 : i32
    %c7_i32_176 = arith.constant 7 : i32
    %701 = arith.subi %c7_i32_176, %c7_i32_175 : i32
    %c2_i32_177 = arith.constant 2 : i32
    %702 = arith.muli %c7_i32_175, %c2_i32_177 : i32
    %703 = arith.index_cast %702 : i32 to index
    %c0_178 = arith.constant 0 : index
    %704 = vector.load %arg12[%703, %c0_178] : memref<16x256xf32, #tpu.memory_space<vmem>>, vector<2x256xf32>
    %705 = vector.extract_strided_slice %704 {offsets = [0, 0], sizes = [2, 128], strides = [1, 1]} : vector<2x256xf32> to vector<2x128xf32>
    %cst_179 = arith.constant dense<0.000000e+00> : vector<2x128xf32>
    %706 = tpu.matmul %635, %19, %cst_179 {dimension_numbers = #tpu.dot_dimension_numbers<[1], [0], [0], [1], [0, 0, 1, 1], [], []>} : vector<2x32xf32>, vector<32x128xf32>, vector<2x128xf32> -> vector<2x128xf32>
    %707 = arith.addf %705, %706 : vector<2x128xf32>
    %708 = vector.extract_strided_slice %707 {offsets = [0, 0], sizes = [2, 32], strides = [1, 1]} : vector<2x128xf32> to vector<2x32xf32>
    %709 = arith.negf %708 : vector<2x32xf32>
    %710 = math.exp %709 : vector<2x32xf32>
    %cst_180 = arith.constant 1.000000e+00 : f32
    %711 = vector.broadcast %cst_180 : f32 to vector<2x32xf32>
    %712 = arith.addf %711, %710 : vector<2x32xf32>
    %713 = arith.divf %711, %712 : vector<2x32xf32>
    %714 = vector.extract_strided_slice %707 {offsets = [0, 32], sizes = [2, 32], strides = [1, 1]} : vector<2x128xf32> to vector<2x32xf32>
    %715 = arith.negf %714 : vector<2x32xf32>
    %716 = math.exp %715 : vector<2x32xf32>
    %cst_181 = arith.constant 1.000000e+00 : f32
    %717 = vector.broadcast %cst_181 : f32 to vector<2x32xf32>
    %718 = arith.addf %717, %716 : vector<2x32xf32>
    %719 = arith.divf %717, %718 : vector<2x32xf32>
    %720 = vector.extract_strided_slice %707 {offsets = [0, 64], sizes = [2, 32], strides = [1, 1]} : vector<2x128xf32> to vector<2x32xf32>
    %721 = math.tanh %720 : vector<2x32xf32>
    %722 = vector.extract_strided_slice %707 {offsets = [0, 96], sizes = [2, 32], strides = [1, 1]} : vector<2x128xf32> to vector<2x32xf32>
    %723 = arith.negf %722 : vector<2x32xf32>
    %724 = math.exp %723 : vector<2x32xf32>
    %cst_182 = arith.constant 1.000000e+00 : f32
    %725 = vector.broadcast %cst_182 : f32 to vector<2x32xf32>
    %726 = arith.addf %725, %724 : vector<2x32xf32>
    %727 = arith.divf %725, %726 : vector<2x32xf32>
    %728 = arith.mulf %719, %633 : vector<2x32xf32>
    %729 = arith.mulf %713, %721 : vector<2x32xf32>
    %730 = arith.addf %728, %729 : vector<2x32xf32>
    %731 = math.tanh %730 : vector<2x32xf32>
    %732 = arith.mulf %727, %731 : vector<2x32xf32>
    %733 = vector.broadcast %c7_i32_175 : i32 to vector<2x1xi32>
    %734 = arith.cmpi slt, %733, %18 : vector<2x1xi32>
    %cst_183 = arith.constant 0.000000e+00 : f32
    %735 = vector.shape_cast %734 : vector<2x1xi1> to vector<2x1xi1>
    %736 = vector.broadcast %735 : vector<2x1xi1> to vector<2x32xi1>
    %737 = vector.broadcast %cst_183 : f32 to vector<2x32xf32>
    %738 = arith.select %736, %732, %737 : vector<2x32xi1>, vector<2x32xf32>
    %c2_i32_184 = arith.constant 2 : i32
    %739 = arith.muli %701, %c2_i32_184 : i32
    %740 = arith.index_cast %739 : i32 to index
    %c0_185 = arith.constant 0 : index
    %741 = vector.load %arg12[%740, %c0_185] : memref<16x256xf32, #tpu.memory_space<vmem>>, vector<2x256xf32>
    %742 = vector.extract_strided_slice %741 {offsets = [0, 128], sizes = [2, 128], strides = [1, 1]} : vector<2x256xf32> to vector<2x128xf32>
    %cst_186 = arith.constant dense<0.000000e+00> : vector<2x128xf32>
    %743 = tpu.matmul %680, %20, %cst_186 {dimension_numbers = #tpu.dot_dimension_numbers<[1], [0], [0], [1], [0, 0, 1, 1], [], []>} : vector<2x32xf32>, vector<32x128xf32>, vector<2x128xf32> -> vector<2x128xf32>
    %744 = arith.addf %742, %743 : vector<2x128xf32>
    %745 = vector.extract_strided_slice %744 {offsets = [0, 0], sizes = [2, 32], strides = [1, 1]} : vector<2x128xf32> to vector<2x32xf32>
    %746 = arith.negf %745 : vector<2x32xf32>
    %747 = math.exp %746 : vector<2x32xf32>
    %cst_187 = arith.constant 1.000000e+00 : f32
    %748 = vector.broadcast %cst_187 : f32 to vector<2x32xf32>
    %749 = arith.addf %748, %747 : vector<2x32xf32>
    %750 = arith.divf %748, %749 : vector<2x32xf32>
    %751 = vector.extract_strided_slice %744 {offsets = [0, 32], sizes = [2, 32], strides = [1, 1]} : vector<2x128xf32> to vector<2x32xf32>
    %752 = arith.negf %751 : vector<2x32xf32>
    %753 = math.exp %752 : vector<2x32xf32>
    %cst_188 = arith.constant 1.000000e+00 : f32
    %754 = vector.broadcast %cst_188 : f32 to vector<2x32xf32>
    %755 = arith.addf %754, %753 : vector<2x32xf32>
    %756 = arith.divf %754, %755 : vector<2x32xf32>
    %757 = vector.extract_strided_slice %744 {offsets = [0, 64], sizes = [2, 32], strides = [1, 1]} : vector<2x128xf32> to vector<2x32xf32>
    %758 = math.tanh %757 : vector<2x32xf32>
    %759 = vector.extract_strided_slice %744 {offsets = [0, 96], sizes = [2, 32], strides = [1, 1]} : vector<2x128xf32> to vector<2x32xf32>
    %760 = arith.negf %759 : vector<2x32xf32>
    %761 = math.exp %760 : vector<2x32xf32>
    %cst_189 = arith.constant 1.000000e+00 : f32
    %762 = vector.broadcast %cst_189 : f32 to vector<2x32xf32>
    %763 = arith.addf %762, %761 : vector<2x32xf32>
    %764 = arith.divf %762, %763 : vector<2x32xf32>
    %765 = arith.mulf %756, %677 : vector<2x32xf32>
    %766 = arith.mulf %750, %758 : vector<2x32xf32>
    %767 = arith.addf %765, %766 : vector<2x32xf32>
    %768 = math.tanh %767 : vector<2x32xf32>
    %769 = arith.mulf %764, %768 : vector<2x32xf32>
    %770 = vector.broadcast %701 : i32 to vector<2x1xi32>
    %771 = arith.cmpi slt, %770, %18 : vector<2x1xi32>
    %772 = vector.shape_cast %771 : vector<2x1xi1> to vector<2x1xi1>
    %773 = vector.broadcast %772 : vector<2x1xi1> to vector<2x32xi1>
    %774 = arith.select %773, %767, %677 : vector<2x32xi1>, vector<2x32xf32>
    %775 = vector.shape_cast %771 : vector<2x1xi1> to vector<2x1xi1>
    %776 = vector.broadcast %775 : vector<2x1xi1> to vector<2x32xi1>
    %777 = arith.select %776, %769, %680 : vector<2x32xi1>, vector<2x32xf32>
    %cst_190 = arith.constant 0.000000e+00 : f32
    %778 = vector.shape_cast %771 : vector<2x1xi1> to vector<2x1xi1>
    %779 = vector.broadcast %778 : vector<2x1xi1> to vector<2x32xi1>
    %780 = vector.broadcast %cst_190 : f32 to vector<2x32xf32>
    %781 = arith.select %779, %769, %780 : vector<2x32xi1>, vector<2x32xf32>
    %782 = vector.extract_strided_slice %738 {offsets = [0, 0], sizes = [1, 32], strides = [1, 1]} : vector<2x32xf32> to vector<1x32xf32>
    %c0_i32_191 = arith.constant 0 : i32
    %783 = arith.addi %c0_i32_191, %c7_i32_175 : i32
    %784 = arith.index_cast %783 : i32 to index
    %c0_192 = arith.constant 0 : index
    %785 = vector.load %arg13[%784, %c0_192] : memref<16x32xf32, #tpu.memory_space<vmem>>, vector<1x32xf32>
    tpu.vector_store %arg13[%784, %c0_192], %782 {strides = array<i32>} : memref<16x32xf32, #tpu.memory_space<vmem>>, vector<1x32xf32>,
    %786 = vector.extract_strided_slice %781 {offsets = [0, 0], sizes = [1, 32], strides = [1, 1]} : vector<2x32xf32> to vector<1x32xf32>
    %c0_i32_193 = arith.constant 0 : i32
    %787 = arith.addi %c0_i32_193, %701 : i32
    %788 = arith.index_cast %787 : i32 to index
    %c0_194 = arith.constant 0 : index
    %789 = vector.load %arg14[%788, %c0_194] : memref<16x32xf32, #tpu.memory_space<vmem>>, vector<1x32xf32>
    tpu.vector_store %arg14[%788, %c0_194], %786 {strides = array<i32>} : memref<16x32xf32, #tpu.memory_space<vmem>>, vector<1x32xf32>,
    %790 = vector.extract_strided_slice %738 {offsets = [1, 0], sizes = [1, 32], strides = [1, 1]} : vector<2x32xf32> to vector<1x32xf32>
    %c8_i32_195 = arith.constant 8 : i32
    %791 = arith.addi %c8_i32_195, %c7_i32_175 : i32
    %792 = arith.index_cast %791 : i32 to index
    %c0_196 = arith.constant 0 : index
    %793 = vector.load %arg13[%792, %c0_196] : memref<16x32xf32, #tpu.memory_space<vmem>>, vector<1x32xf32>
    tpu.vector_store %arg13[%792, %c0_196], %790 {strides = array<i32>} : memref<16x32xf32, #tpu.memory_space<vmem>>, vector<1x32xf32>,
    %794 = vector.extract_strided_slice %781 {offsets = [1, 0], sizes = [1, 32], strides = [1, 1]} : vector<2x32xf32> to vector<1x32xf32>
    %c8_i32_197 = arith.constant 8 : i32
    %795 = arith.addi %c8_i32_197, %701 : i32
    %796 = arith.index_cast %795 : i32 to index
    %c0_198 = arith.constant 0 : index
    %797 = vector.load %arg14[%796, %c0_198] : memref<16x32xf32, #tpu.memory_space<vmem>>, vector<1x32xf32>
    tpu.vector_store %arg14[%796, %c0_198], %794 {strides = array<i32>} : memref<16x32xf32, #tpu.memory_space<vmem>>, vector<1x32xf32>,
    %c8_i32_199 = arith.constant 8 : i32
    %798 = tpu.iota {dimensions = array<i32: 1>} : vector<1x8xi32>
    %c0_200 = arith.constant 0 : index
    %c0_201 = arith.constant 0 : index
    %799 = vector.load %arg13[%c0_200, %c0_201] : memref<16x32xf32, #tpu.memory_space<vmem>>, vector<8x32xf32>
    %c0_202 = arith.constant 0 : index
    %c0_203 = arith.constant 0 : index
    %800 = vector.load %arg14[%c0_202, %c0_203] : memref<16x32xf32, #tpu.memory_space<vmem>>, vector<8x32xf32>
    %801 = tpu.concatenate %799, %800 in 1 : vector<8x32xf32>, vector<8x32xf32> -> vector<8x64xf32>
    %c0_204 = arith.constant 0 : index
    %c0_205 = arith.constant 0 : index
    %802 = vector.load %arg7[%c0_204, %c0_205] : memref<64x128xf32, #tpu.memory_space<vmem>>, vector<64x128xf32>
    %cst_206 = arith.constant dense<0.000000e+00> : vector<8x128xf32>
    %803 = tpu.matmul %801, %802, %cst_206 {dimension_numbers = #tpu.dot_dimension_numbers<[1], [0], [0], [1], [0, 0, 1, 1], [], []>} : vector<8x64xf32>, vector<64x128xf32>, vector<8x128xf32> -> vector<8x128xf32>
    %c0_207 = arith.constant 0 : index
    %c0_208 = arith.constant 0 : index
    %804 = vector.load %arg8[%c0_207, %c0_208] : memref<1x128xf32, #tpu.memory_space<vmem>>, vector<1x128xf32>
    %805 = vector.broadcast %804 : vector<1x128xf32> to vector<8x128xf32>
    %806 = arith.addf %803, %805 : vector<8x128xf32>
    %807 = vector.extract_strided_slice %806 {offsets = [0, 0], sizes = [8, 64], strides = [1, 1]} : vector<8x128xf32> to vector<8x64xf32>
    %808 = vector.extract_strided_slice %806 {offsets = [0, 64], sizes = [8, 64], strides = [1, 1]} : vector<8x128xf32> to vector<8x64xf32>
    %c0_209 = arith.constant 0 : index
    %c0_210 = arith.constant 0 : index
    %809 = vector.load %arg9[%c0_209, %c0_210] : memref<64x64xf32, #tpu.memory_space<vmem>>, vector<64x64xf32>
    %cst_211 = arith.constant dense<0.000000e+00> : vector<8x64xf32>
    %810 = tpu.matmul %807, %809, %cst_211 {dimension_numbers = #tpu.dot_dimension_numbers<[1], [0], [0], [1], [0, 0, 1, 1], [], []>} : vector<8x64xf32>, vector<64x64xf32>, vector<8x64xf32> -> vector<8x64xf32>
    %cst_212 = arith.constant dense<0.000000e+00> : vector<8x8xf32>
    %811 = tpu.matmul %810, %808, %cst_212 {dimension_numbers = #tpu.dot_dimension_numbers<[1], [1], [0], [0], [0, 0, 1, 0], [], []>} : vector<8x64xf32>, vector<8x64xf32>, vector<8x8xf32> -> vector<8x8xf32>
    %c0_213 = arith.constant 0 : index
    %c0_214 = arith.constant 0 : index
    %812 = vector.load %arg10[%c0_213, %c0_214] : memref<1x64xf32, #tpu.memory_space<vmem>>, vector<1x64xf32>
    %cst_215 = arith.constant dense<0.000000e+00> : vector<1x8xf32>
    %813 = tpu.matmul %812, %808, %cst_215 {dimension_numbers = #tpu.dot_dimension_numbers<[1], [1], [0], [0], [0, 0, 1, 0], [], []>} : vector<1x64xf32>, vector<8x64xf32>, vector<1x8xf32> -> vector<1x8xf32>
    %814 = vector.broadcast %813 : vector<1x8xf32> to vector<8x8xf32>
    %815 = arith.addf %811, %814 : vector<8x8xf32>
    %c0_216 = arith.constant 0 : index
    %816 = memref.load %arg1[%c0_216] : memref<2xi32, #tpu.memory_space<smem>>
    %817 = vector.broadcast %816 : i32 to vector<1x8xi32>
    %818 = arith.cmpi slt, %798, %817 : vector<1x8xi32>
    %cst_217 = arith.constant 0xFF800000 : f32
    %819 = vector.shape_cast %818 : vector<1x8xi1> to vector<1x8xi1>
    %820 = vector.broadcast %819 : vector<1x8xi1> to vector<8x8xi1>
    %821 = vector.broadcast %cst_217 : f32 to vector<8x8xf32>
    %822 = arith.select %820, %815, %821 : vector<8x8xi1>, vector<8x8xf32>
    %c0_218 = arith.constant 0 : index
    %c0_219 = arith.constant 0 : index
    %c0_220 = arith.constant 0 : index
    %823 = vector.load %arg11[%c0_218, %c0_219, %c0_220] : memref<2x8x8xf32, #tpu.memory_space<vmem>>, vector<1x8x8xf32>
    %824 = vector.shape_cast %823 : vector<1x8x8xf32> to vector<8x8xf32>
    %825 = vector.shape_cast %822 : vector<8x8xf32> to vector<1x8x8xf32>
    tpu.vector_store %arg11[%c0_218, %c0_219, %c0_220], %825 {strides = array<i32>} : memref<2x8x8xf32, #tpu.memory_space<vmem>>, vector<1x8x8xf32>,
    %c8 = arith.constant 8 : index
    %c0_221 = arith.constant 0 : index
    %826 = vector.load %arg13[%c8, %c0_221] : memref<16x32xf32, #tpu.memory_space<vmem>>, vector<8x32xf32>
    %c8_222 = arith.constant 8 : index
    %c0_223 = arith.constant 0 : index
    %827 = vector.load %arg14[%c8_222, %c0_223] : memref<16x32xf32, #tpu.memory_space<vmem>>, vector<8x32xf32>
    %828 = tpu.concatenate %826, %827 in 1 : vector<8x32xf32>, vector<8x32xf32> -> vector<8x64xf32>
    %c0_224 = arith.constant 0 : index
    %c0_225 = arith.constant 0 : index
    %829 = vector.load %arg7[%c0_224, %c0_225] : memref<64x128xf32, #tpu.memory_space<vmem>>, vector<64x128xf32>
    %cst_226 = arith.constant dense<0.000000e+00> : vector<8x128xf32>
    %830 = tpu.matmul %828, %829, %cst_226 {dimension_numbers = #tpu.dot_dimension_numbers<[1], [0], [0], [1], [0, 0, 1, 1], [], []>} : vector<8x64xf32>, vector<64x128xf32>, vector<8x128xf32> -> vector<8x128xf32>
    %c0_227 = arith.constant 0 : index
    %c0_228 = arith.constant 0 : index
    %831 = vector.load %arg8[%c0_227, %c0_228] : memref<1x128xf32, #tpu.memory_space<vmem>>, vector<1x128xf32>
    %832 = vector.broadcast %831 : vector<1x128xf32> to vector<8x128xf32>
    %833 = arith.addf %830, %832 : vector<8x128xf32>
    %834 = vector.extract_strided_slice %833 {offsets = [0, 0], sizes = [8, 64], strides = [1, 1]} : vector<8x128xf32> to vector<8x64xf32>
    %835 = vector.extract_strided_slice %833 {offsets = [0, 64], sizes = [8, 64], strides = [1, 1]} : vector<8x128xf32> to vector<8x64xf32>
    %c0_229 = arith.constant 0 : index
    %c0_230 = arith.constant 0 : index
    %836 = vector.load %arg9[%c0_229, %c0_230] : memref<64x64xf32, #tpu.memory_space<vmem>>, vector<64x64xf32>
    %cst_231 = arith.constant dense<0.000000e+00> : vector<8x64xf32>
    %837 = tpu.matmul %834, %836, %cst_231 {dimension_numbers = #tpu.dot_dimension_numbers<[1], [0], [0], [1], [0, 0, 1, 1], [], []>} : vector<8x64xf32>, vector<64x64xf32>, vector<8x64xf32> -> vector<8x64xf32>
    %cst_232 = arith.constant dense<0.000000e+00> : vector<8x8xf32>
    %838 = tpu.matmul %837, %835, %cst_232 {dimension_numbers = #tpu.dot_dimension_numbers<[1], [1], [0], [0], [0, 0, 1, 0], [], []>} : vector<8x64xf32>, vector<8x64xf32>, vector<8x8xf32> -> vector<8x8xf32>
    %c0_233 = arith.constant 0 : index
    %c0_234 = arith.constant 0 : index
    %839 = vector.load %arg10[%c0_233, %c0_234] : memref<1x64xf32, #tpu.memory_space<vmem>>, vector<1x64xf32>
    %cst_235 = arith.constant dense<0.000000e+00> : vector<1x8xf32>
    %840 = tpu.matmul %839, %835, %cst_235 {dimension_numbers = #tpu.dot_dimension_numbers<[1], [1], [0], [0], [0, 0, 1, 0], [], []>} : vector<1x64xf32>, vector<8x64xf32>, vector<1x8xf32> -> vector<1x8xf32>
    %841 = vector.broadcast %840 : vector<1x8xf32> to vector<8x8xf32>
    %842 = arith.addf %838, %841 : vector<8x8xf32>
    %c1_236 = arith.constant 1 : index
    %843 = memref.load %arg1[%c1_236] : memref<2xi32, #tpu.memory_space<smem>>
    %844 = vector.broadcast %843 : i32 to vector<1x8xi32>
    %845 = arith.cmpi slt, %798, %844 : vector<1x8xi32>
    %cst_237 = arith.constant 0xFF800000 : f32
    %846 = vector.shape_cast %845 : vector<1x8xi1> to vector<1x8xi1>
    %847 = vector.broadcast %846 : vector<1x8xi1> to vector<8x8xi1>
    %848 = vector.broadcast %cst_237 : f32 to vector<8x8xf32>
    %849 = arith.select %847, %842, %848 : vector<8x8xi1>, vector<8x8xf32>
    %c1_238 = arith.constant 1 : index
    %c0_239 = arith.constant 0 : index
    %c0_240 = arith.constant 0 : index
    %850 = vector.load %arg11[%c1_238, %c0_239, %c0_240] : memref<2x8x8xf32, #tpu.memory_space<vmem>>, vector<1x8x8xf32>
    %851 = vector.shape_cast %850 : vector<1x8x8xf32> to vector<8x8xf32>
    %852 = vector.shape_cast %849 : vector<8x8xf32> to vector<1x8x8xf32>
    tpu.vector_store %arg11[%c1_238, %c0_239, %c0_240], %852 {strides = array<i32>} : memref<2x8x8xf32, #tpu.memory_space<vmem>>, vector<1x8x8xf32>,
    return
  }
  func.func @transform_0(%arg0: i32, %arg1: memref<2xi32, #tpu.memory_space<smem>>) -> (i32, i32) {
    %c0_i32 = arith.constant 0 : i32
    %c0_i32_0 = arith.constant 0 : i32
    %c0_i32_1 = arith.constant 0 : i32
    return %c0_i32, %c0_i32_0 : i32, i32
  }
  func.func @transform_1(%arg0: i32, %arg1: memref<2xi32, #tpu.memory_space<smem>>) -> (i32, i32) {
    %c0_i32 = arith.constant 0 : i32
    %c0_i32_0 = arith.constant 0 : i32
    %c0_i32_1 = arith.constant 0 : i32
    return %c0_i32, %c0_i32_0 : i32, i32
  }
  func.func @transform_2(%arg0: i32, %arg1: memref<2xi32, #tpu.memory_space<smem>>) -> (i32, i32) {
    %c0_i32 = arith.constant 0 : i32
    %c0_i32_0 = arith.constant 0 : i32
    %c0_i32_1 = arith.constant 0 : i32
    return %c0_i32, %c0_i32_0 : i32, i32
  }
  func.func @transform_3(%arg0: i32, %arg1: memref<2xi32, #tpu.memory_space<smem>>) -> (i32, i32) {
    %c0_i32 = arith.constant 0 : i32
    %c0_i32_0 = arith.constant 0 : i32
    %c0_i32_1 = arith.constant 0 : i32
    return %c0_i32, %c0_i32_0 : i32, i32
  }
  func.func @transform_4(%arg0: i32, %arg1: memref<2xi32, #tpu.memory_space<smem>>) -> (i32, i32) {
    %c0_i32 = arith.constant 0 : i32
    %c0_i32_0 = arith.constant 0 : i32
    %c0_i32_1 = arith.constant 0 : i32
    return %c0_i32, %c0_i32_0 : i32, i32
  }
  func.func @transform_5(%arg0: i32, %arg1: memref<2xi32, #tpu.memory_space<smem>>) -> (i32, i32) {
    %c0_i32 = arith.constant 0 : i32
    %c0_i32_0 = arith.constant 0 : i32
    %c0_i32_1 = arith.constant 0 : i32
    return %c0_i32, %c0_i32_0 : i32, i32
  }
  func.func @transform_6(%arg0: i32, %arg1: memref<2xi32, #tpu.memory_space<smem>>) -> (i32, i32) {
    %c0_i32 = arith.constant 0 : i32
    %c0_i32_0 = arith.constant 0 : i32
    %c0_i32_1 = arith.constant 0 : i32
    return %c0_i32, %c0_i32_0 : i32, i32
  }
  func.func @transform_7(%arg0: i32, %arg1: memref<2xi32, #tpu.memory_space<smem>>) -> (i32, i32) {
    %c0_i32 = arith.constant 0 : i32
    %c0_i32_0 = arith.constant 0 : i32
    %c0_i32_1 = arith.constant 0 : i32
    return %c0_i32, %c0_i32_0 : i32, i32
  }
  func.func @transform_8(%arg0: i32, %arg1: memref<2xi32, #tpu.memory_space<smem>>) -> (i32, i32) {
    %c0_i32 = arith.constant 0 : i32
    %c0_i32_0 = arith.constant 0 : i32
    %c0_i32_1 = arith.constant 0 : i32
    return %c0_i32, %c0_i32_0 : i32, i32
  }
  func.func @transform_9(%arg0: i32, %arg1: memref<2xi32, #tpu.memory_space<smem>>) -> (i32, i32, i32) {
    %c0_i32 = arith.constant 0 : i32
    %c0_i32_0 = arith.constant 0 : i32
    %c0_i32_1 = arith.constant 0 : i32
    %c0_i32_2 = arith.constant 0 : i32
    return %c0_i32, %c0_i32_0, %c0_i32_1 : i32, i32, i32
  }
}

</mosaic_0001>

<bundles_post_ra>
// kernel: tpu_custom_call.1
= control target key start
LH: loop header
LB: loop body
LE: loop exit
PB: predicated region body
PF: predicated region fallthrough
CT: control target
= control target key end

     0   :  { %s3600_s13 = smov [#allocation6]   ;;  %s4336_s0 = inlined_call_operand.hbm [shape: s32[2], index: 0, kind: input, shape index: {}]   ;;  %s4337_s1 = inlined_call_operand.hbm [shape: f32[16,82], index: 1, kind: input, shape index: {}]   ;;  %s4338_s2 = inlined_call_operand.hbm [shape: f32[82,256], index: 2, kind: input, shape index: {}]   ;;  %s4339_s3 = inlined_call_operand.hbm [shape: f32[32,128], index: 3, kind: input, shape index: {}]   ;;  %s4340_s4 = inlined_call_operand.hbm [shape: f32[32,128], index: 4, kind: input, shape index: {}]   ;;  %s4341_s5 = inlined_call_operand.vmem [shape: f32[1,256], index: 5, kind: input, shape index: {}]   ;;  %s4342_s6 = inlined_call_operand.hbm [shape: f32[64,128], index: 6, kind: input, shape index: {}]   ;;  %s4343_s7 = inlined_call_operand.vmem [shape: f32[1,128], index: 7, kind: input, shape index: {}]   ;;  %s4344_s8 = inlined_call_operand.hbm [shape: f32[64,64], index: 8, kind: input, shape index: {}]   ;;  %s4345_s9 = inlined_call_operand.vmem [shape: f32[1,64], index: 9, kind: input, shape index: {}]   ;;  %s4346_s10 = inlined_call_operand.hbm [shape: f32[2,8,8], index: 10, kind: output, shape index: {}]  }
   0x1   :  { %16 = dma.hbm_to_smem %s4336_s0, 16, %s3600_s13, [#allocation5] }
   0x2   :  { %3588 = dma.done.wait [#allocation5], 16 }
   0x3   :  { %3589 = vsyncadd [#allocation5], 4294967280 }
   0x4   :  { %18 = sfence }
   0x5   :  { %19 = vsyncpa [#allocation8], 0 }
   0x6   :  { %20 = vsyncpa [#allocation11], 0 }
   0x7   :  { %21 = vsyncpa [#allocation14], 0 }
   0x8   :  { %22 = vsyncpa [#allocation17], 0 }
   0x9   :  { %23 = vsyncpa [#allocation9], 0  ;;  %s3601_s16 = smov [#allocation10]  }
   0xa   :  { %s41_s17 = sshll.u32 %s3601_s16, 4  ;;  %s42_s17 = int_to_ptr.vmem [resolvable:$true] %s41_s17 }
   0xb   :  { %s3456_s18 = scalar_lea.vmem %s42_s17, 2816  ;;  %p3461_p1 = scmp.lt.s32.totalorder %s42_s17, %s42_s17 }
   0xc   :  { %p3457_p0 = scmp.ne.s32.totalorder %s42_s17, %s3456_s18  ;;  %p3462_p2 = scmp.lt.s32.totalorder %s3456_s18, %s3456_s18 }
   0xe   :  { %p3463_p3 = por %p3462_p2, %p3461_p1 }
  0x10   :  { %p3464_p4 = pnand %p3463_p3, %p3457_p0 }
  0x12   :  { %3467 = shalt.err (!%p3464_p4)
}
  0x13   :  { %s3602_s19 = smov 256   ;;  %s3603_s0 = smov 16  }
  0x14   :  { %47 = dma.hbm_to_vmem [thread:$0]  %s4338_s2, 2816, %s42_s17, [#allocation11], %s3602_s19, %s3602_s19, %s3603_s0  }
  0x15   :  { %s3604_s22 = smov [#allocation13]   ;;  %s3605_s24 = smov [#allocation7]  }
  0x16   :  { %s65_s23 = sshll.u32 %s3604_s22, 4  ;;  %s29_s25 = sshll.u32 %s3605_s24, 4  ;;  %s66_s23 = int_to_ptr.vmem [resolvable:$true] %s65_s23  ;;  %s30_s25 = int_to_ptr.vmem [resolvable:$true] %s29_s25 }
  0x17   :  { %s3476_s26 = scalar_lea.vmem %s66_s23, 512  ;;  %p3481_p6 = scmp.lt.s32.totalorder %s66_s23, %s66_s23 }
  0x18   :  { %p3477_p5 = scmp.ne.s32.totalorder %s66_s23, %s3476_s26  ;;  %p3482_p7 = scmp.lt.s32.totalorder %s3476_s26, %s3476_s26 }
  0x1a   :  { %p3483_p8 = por %p3482_p7, %p3481_p6 }
  0x1c   :  { %p3484_p9 = pnand %p3483_p8, %p3477_p5 }
  0x1e   :  { %3487 = shalt.err (!%p3484_p9)
}
  0x1f   :  { %s3606_s27 = smov 128   ;;  %s3607_s28 = smov 8  }
  0x20   :  { %71 = dma.hbm_to_vmem [thread:$0]  %s4340_s4, 512, %s66_s23, [#allocation14], %s3606_s27, %s3606_s27, %s3607_s28  }
  0x21   :  { %s3496_s2 = scalar_lea.vmem %s30_s25, 256  ;;  %p3501_p11 = scmp.lt.s32.totalorder %s30_s25, %s30_s25 }
  0x22   :  { %p3497_p10 = scmp.ne.s32.totalorder %s30_s25, %s3496_s2  ;;  %p3502_p12 = scmp.lt.s32.totalorder %s3496_s2, %s3496_s2 }
  0x24   :  { %p3503_p13 = por %p3502_p12, %p3501_p11 }
  0x26   :  { %p3504_p0 = pnand %p3503_p13, %p3497_p10 }
  0x28   :  { %3507 = shalt.err (!%p3504_p0)
}
  0x29   :  { %35 = dma.hbm_to_vmem [thread:$0]  %s4337_s1, 256, %s30_s25, [#allocation8], %s3606_s27, %s3606_s27, %s3607_s28  }
  0x2a   :  { %s3608_s13 = smov [#allocation12]   ;;  %s3609_s15 = smov [#allocation15]  }
  0x2b   :  { %s53_s14 = sshll.u32 %s3608_s13, 4  ;;  %s79_s4 = sshll.u32 %s3609_s15, 4  ;;  %s54_s14 = int_to_ptr.vmem [resolvable:$true] %s53_s14  ;;  %s80_s4 = int_to_ptr.vmem [resolvable:$true] %s79_s4 }
  0x2c   :  { %s3516_s16 = scalar_lea.vmem %s54_s14, 512  ;;  %p3521_p2 = scmp.lt.s32.totalorder %s54_s14, %s54_s14 }
  0x2d   :  { %p3517_p1 = scmp.ne.s32.totalorder %s54_s14, %s3516_s16  ;;  %p3522_p3 = scmp.lt.s32.totalorder %s3516_s16, %s3516_s16 }
  0x2f   :  { %p3523_p4 = por %p3522_p3, %p3521_p2 }
  0x31   :  { %p3524_p5 = pnand %p3523_p4, %p3517_p1 }
  0x33   :  { %3527 = shalt.err (!%p3524_p5)
}
  0x34   :  { %59 = dma.hbm_to_vmem [thread:$0]  %s4339_s3, 512, %s54_s14, [#allocation11], %s3606_s27, %s3606_s27, %s3607_s28  }
  0x35   :  { %s3536_s1 = scalar_lea.vmem %s80_s4, 1024  ;;  %p3541_p7 = scmp.lt.s32.totalorder %s80_s4, %s80_s4 }
  0x36   :  { %p3537_p6 = scmp.ne.s32.totalorder %s80_s4, %s3536_s1  ;;  %p3542_p8 = scmp.lt.s32.totalorder %s3536_s1, %s3536_s1 }
  0x38   :  { %p3543_p9 = por %p3542_p8, %p3541_p7 }
  0x3a   :  { %p3544_p10 = pnand %p3543_p9, %p3537_p6 }
  0x3c   :  { %3547 = shalt.err (!%p3544_p10)
}
  0x3d   :  { %85 = dma.hbm_to_vmem [thread:$0]  %s4342_s6, 1024, %s80_s4, [#allocation14], %s3606_s27, %s3606_s27, %s3607_s28  }
  0x3e   :  { %s3610_s20 = smov [#allocation16]  }
  0x3f   :  { %s93_s21 = sshll.u32 %s3610_s20, 4  ;;  %s94_s21 = int_to_ptr.vmem [resolvable:$true] %s93_s21 }
  0x40   :  { %s3556_s22 = scalar_lea.vmem %s94_s21, 1024  ;;  %p3561_p12 = scmp.lt.s32.totalorder %s94_s21, %s94_s21 }
  0x41   :  { %p3557_p11 = scmp.ne.s32.totalorder %s94_s21, %s3556_s22  ;;  %p3562_p13 = scmp.lt.s32.totalorder %s3556_s22, %s3556_s22 }
  0x43   :  { %p3563_p0 = por %p3562_p13, %p3561_p12 }
  0x45   :  { %p3564_p1 = pnand %p3563_p0, %p3557_p11 }
  0x47   :  { %3567 = shalt.err (!%p3564_p1)
}
  0x48   :  { %99 = dma.hbm_to_vmem [thread:$0]  %s4344_s8, 1024, %s94_s21, [#allocation17], %s3606_s27, %s3606_s27, %s3607_s28  }
  0x49   :  { %3590 = dma.done.wait [#allocation8], 256  }
  0x4a   :  { %3591 = vsyncadd [#allocation8], 4294967040 }
  0x4b   :  { %3592 = dma.done.wait [#allocation11], 3328  }
  0x4c   :  { %3593 = vsyncadd [#allocation11], 4294963968 }
  0x4d   :  { %3594 = dma.done.wait [#allocation14], 1536  }
  0x4e   :  { %3595 = vsyncadd [#allocation14], 4294965760 }
  0x4f   :  { %3596 = dma.done.wait [#allocation17], 1024  }
  0x50   :  { %3597 = vsyncadd [#allocation17], 4294966272  ;;  %v3611_v0 = vmov 0.0   ;;  %vm3612_vm0 = vmmov 0   ;;  %vm163_vm1 = vcmask 1041408   ;;  %v141_v3 = vld [vmem:[#allocation10 + $0x98] sm:$0xff]  ;;  %v146_v33 = vlaneseq }
  0x51   :  { %3015 = vmatprep.subr.mxu1 %v3611_v0  ;;  %234 = vmatprep.mubr.f32.mxu0 %v3611_v0  ;;  %v143_v1 = vld [vmem:[#allocation10 + $0xa8] sm:$0x3]  ;;  %v142_v2 = vld [vmem:[#allocation10 + $0xa0] sm:$0x3]  ;;  %v140_v4 = vld [vmem:[#allocation10 + $0x90] sm:$0xff]  ;;  %vm156_vm2 = vcmask 670720  }
  0x52   :  { %3023 = vmatprep.mubr.msk.f32.mxu1 %vm3612_vm0, %v3611_v0  ;;  %2841 = vmatprep.subr.msk.mxu0 %vm163_vm1, %v143_v1  ;;  %v139_v5 = vld [vmem:[#allocation10 + $0x88] sm:$0xff]  ;;  %v138_v6 = vld [vmem:[#allocation10 + $0x80] sm:$0xff]  ;;  %v137_v7 = vld [vmem:[#allocation10 + $0x78] sm:$0xff]  ;;  %v3771_v34 = vshrl.u32 %v146_v33, 7  ;;  %s3614_s24 = smov 32   ;;  %s3615_s25 = smov 96  }
  0x53   :  { %2842 = vmatpush1.msk.msra.mxu0 %vm163_vm1, %v142_v2  ;;  %v136_v8 = vld [vmem:[#allocation10 + $0x70] sm:$0xff]  ;;  %v135_v9 = vld [vmem:[#allocation10 + $0x68] sm:$0xff]  ;;  %v134_v11 = vld [vmem:[#allocation10 + $0x60] sm:$0xff]  ;;  %s254_s26 = sld [smem:[#allocation6]]  ;;  %vm491_vm6 = vcmask 253952   ;;  %vm494_vm7 = vcmask 254977  }
  0x54   :  { %182 = vmatprep.subr.mxu0 %v141_v3  ;;  %v3712_v10 = vld [vmem:[#allocation12 + $0x18] sm:$0xff]  ;;  %v3715_v12 = vld [vmem:[#allocation12 + $0x10] sm:$0xff]  ;;  %v133_v13 = vld [vmem:[#allocation10 + $0x58] sm:$0xff]  ;;  %v3774_v36 = vsub.s32 0, %v3771_v34  ;;  %v152_v39 = vsub.s32 1, %v3771_v34  ;;  %s2845_s29 = sld [smem:[#allocation6 + $0x1]] }
  0x55   :  { %183 = vmatpush1.msra.mxu0 %v140_v4  ;;  %3016 = vmatpush3.msra.mxu1 %v3712_v10  ;;  %v3718_v14 = vld [vmem:[#allocation12 + $0x8] sm:$0xff]  ;;  %v132_v15 = vld [vmem:[#allocation10 + $0x50] sm:$0xff]  ;;  %v131_v16 = vld [vmem:[#allocation10 + $0x48] sm:$0xff]  ;;  %vm253_vm3 = vcmp.eq.s32.totalorder %v3771_v34, 0  ;;  %vm257_vm4 = vcmp.eq.s32.totalorder %v3771_v34, 1  ;;  %vm270_vm8 = vcmask 261120  }
  0x56   :  { %184 = vmatprep.subr.mxu0 %v139_v5  ;;  %3017 = vmatprep.subr.mxu1 %v3611_v0  ;;  %v3722_v17 = vld [vmem:[#allocation12] sm:$0xff]  ;;  %v130_v18 = vld [vmem:[#allocation10 + $0x40] sm:$0xff]  ;;  %v129_v19 = vld [vmem:[#allocation10 + $0x38] sm:$0xff]  ;;  %vm2164_vm1 = vcmask 523264   ;;  %s2474_s14 = sld [smem:[#allocation6]]  ;;  %s3616_s15 = smov [#allocation18]  }
  0x57   :  { %185 = vmatpush1.msra.mxu0 %v138_v6  ;;  %3018 = vmatpush3.msra.mxu1 %v3715_v12  ;;  %v128_v20 = vld [vmem:[#allocation10 + $0x30] sm:$0xff]  ;;  %v3727_v21 = vld [vmem:[#allocation13 + $0x18] sm:$0xff]  ;;  %v126_v23 = vld [vmem:[#allocation10 + $0x20] sm:$0xff]  ;;  %s2826_s4 = sshll.u32 %s3616_s15, 4  ;;  %s2827_s4 = int_to_ptr.vmem [resolvable:$true] %s2826_s4 }
  0x58   :  { %186 = vmatprep.subr.mxu0 %v137_v7  ;;  %3019 = vmatprep.subr.mxu1 %v3611_v0  ;;  %v127_v22 = vld [vmem:[#allocation10 + $0x28] sm:$0xff]  ;;  %v3731_v24 = vld [vmem:[#allocation13 + $0x10] sm:$0xff]  ;;  %v125_v25 = vld [vmem:[#allocation10 + $0x18] sm:$0xff]  ;;  %s3568_s16 = scalar_lea.vmem %s2827_s4, 256  ;;  %p3573_p3 = scmp.lt.s32.totalorder %s2827_s4, %s2827_s4 }
  0x59   :  { %187 = vmatpush1.msra.mxu0 %v136_v8  ;;  %3020 = vmatpush3.msra.mxu1 %v3718_v14  ;;  %v124_v26 = vld [vmem:[#allocation10 + $0x10] sm:$0xff]  ;;  %v3735_v27 = vld [vmem:[#allocation13 + $0x8] sm:$0xff]  ;;  %v123_v28 = vld [vmem:[#allocation10 + $0x8] sm:$0xff]  ;;  %p3569_p2 = scmp.ne.s32.totalorder %s2827_s4, %s3568_s16  ;;  %p3574_p4 = scmp.lt.s32.totalorder %s3568_s16, %s3568_s16 }
  0x5a   :  { %188 = vmatprep.subr.mxu0 %v135_v9  ;;  %3021 = vmatprep.subr.mxu1 %v3611_v0  ;;  %v122_v29 = vld [vmem:[#allocation10] sm:$0xff]  ;;  %v3739_v30 = vld [vmem:[#allocation13] sm:$0xff]  ;;  %v121_v32 = vld [vmem:[#allocation7 + $0x8] sm:$0xff] }
  0x5b   :  { %189 = vmatpush1.msra.mxu0 %v134_v11  ;;  %3022 = vmatpush3.msra.mxu1 %v3722_v17  ;;  %v120_v31 = vld [vmem:[#allocation7] sm:$0xff]  ;;  %p3575_p5 = por %p3574_p4, %p3573_p3 }
  0x5c   :  { %190 = vmatprep.subr.mxu0 %v133_v13  ;;  %3026 = vmatprep.subr.mxu1 %v3611_v0  ;;  %v144_v37 = vld [vmem:[%s4341_s5] sm:$0x3]  ;;  %s3613_s5 = smov 64  }
  0x5d   :  { %191 = vmatpush1.msra.mxu0 %v132_v15  ;;  %3024 = vmatmul.mubr.f32.vlgmr.msra.gmra.mxu1 %v3611_v0  ;;  %v149_v40 = vrot.slane %v144_v37, %v3774_v36  ;;  %v153_v41 = vrot.slane %v144_v37, %v152_v39  ;;  %p3576_p6 = pnand %p3575_p5, %p3569_p2 }
  0x5e   :  { %192 = vmatprep.subr.mxu0 %v131_v16  ;;  %3027 = vmatpush3.msra.mxu1 %v3727_v21 }
  0x5f   :  { %193 = vmatpush1.msra.mxu0 %v130_v18  ;;  %3028 = vmatprep.subr.mxu1 %v3611_v0 }
  0x60   :  { %194 = vmatprep.subr.mxu0 %v129_v19  ;;  %3029 = vmatpush3.msra.mxu1 %v3731_v24 }
  0x61   :  { %195 = vmatpush1.msra.mxu0 %v128_v20  ;;  %3030 = vmatprep.subr.mxu1 %v3611_v0 }
  0x62   :  { %196 = vmatprep.subr.mxu0 %v127_v22  ;;  %3031 = vmatpush3.msra.mxu1 %v3735_v27  ;;  %v255_v22 = vstv %s254_s26 }
  0x63   :  { %197 = vmatpush1.msra.mxu0 %v126_v23  ;;  %3032 = vmatprep.subr.mxu1 %v3611_v0 }
  0x64   :  { %198 = vmatprep.subr.mxu0 %v125_v25  ;;  %3033 = vmatpush3.msra.mxu1 %v3739_v30 }
  0x65   :  { %199 = vmatpush1.msra.mxu0 %v124_v26  ;;  %3034 = vmatprep.mubr.msk.f32.mxu1 %vm3612_vm0, %v3611_v0  ;;  %v256_v26 = vsel %vm253_vm3, %v255_v22, 0 }
  0x66   :  { %200 = vmatprep.subr.mxu0 %v123_v28  ;;  %3035 = vmatmul.mubr.f32.vlgmr.msra.gmra.mxu1 %v3611_v0  ;;  %v259_v28 = vstv %s2845_s29 }
  0x67   :  { %201 = vmatpush1.msra.mxu0 %v122_v29  ;;  %3037 = vmatprep.subr.mxu1 %v3611_v0 }
  0x68   :  { %2843 = vmatmul.mubr.msk.f32.vlgmr.msra.gmra.mxu0 %vm156_vm2, %v120_v31  ;;  %3048 = vmatprep.subr.mxu0 %v3611_v0 }
  0x69   :  { %240 = vmatprep.mubr.f32.mxu0 %v3611_v0  ;;  %3049 = vmatpush3.msra.mxu0 %v3727_v21 }
  0x6a   :  { %3038 = vmatpush3.msra.mxu1 %v3712_v10  ;;  %3050 = vmatprep.subr.mxu0 %v3611_v0 }
  0x6b   :  { %3051 = vmatpush3.msra.mxu0 %v3731_v24  ;;  %3039 = vmatprep.subr.mxu1 %v3611_v0 }
  0x6c   :  { %2844 = vmatmul.mubr.msk.f32.gmra.mxu0 %vm156_vm2, %v121_v32  ;;  %3052 = vmatprep.subr.mxu0 %v3611_v0  ;;  %v3794_v32 = vsel %vm257_vm4, %v259_v28, %v256_v26  ;;  %vm2480_vm2 = vcmask 64512  }
  0x6d   :  { %3040 = vmatpush3.msra.mxu1 %v3715_v12  ;;  %3053 = vmatpush3.msra.mxu0 %v3735_v27  ;;  %vm472_vm5 = vcmp.gt.s32.totalorder %v3794_v32, 7  ;;  %vm720_vm9 = vcmp.gt.s32.totalorder %v3794_v32, 6  ;;  %vm604_vm10 = vcmp.gt.s32.totalorder %v3794_v32, 1  ;;  %vm960_vm11 = vcmp.gt.s32.totalorder %v3794_v32, 5 }
  0x6e   :  { %3041 = vmatprep.subr.mxu1 %v3611_v0  ;;  %3054 = vmatprep.subr.mxu0 %v3611_v0  ;;  %vm844_vm12 = vcmp.gt.s32.totalorder %v3794_v32, 2  ;;  %vm1196_vm13 = vcmp.gt.s32.totalorder %v3794_v32, 4  ;;  %vm1084_vm14 = vcmp.gt.s32.totalorder %v3794_v32, 3  ;;  %vm369_vm15 = vcmp.gt.s32.totalorder %v3794_v32, 0  ;;  %v4242_v32 = vld [vmem:[#allocation16 + $0x10] sm:$0xff] }
  0x6f   :  { %3056 = vmatprep.mubr.msk.f32.mxu0 %vm3612_vm0, %v3611_v0  ;;  %3055 = vmatpush3.msra.mxu0 %v3739_v30 }
  0x70   :  { %3042 = vmatpush3.msra.mxu1 %v3718_v14  ;;  %3045 = vmatprep.mubr.msk.f32.mxu1 %vm3612_vm0, %v3611_v0 }
  0x71   :  { %3043 = vmatprep.subr.mxu1 %v3611_v0  ;;  %3070 = vmatprep.subr.mxu0 %v3611_v0 }
  0x72   :  { %3044 = vmatpush3.msra.mxu1 %v3722_v17 }
  0x73   :  { %3059 = vmatprep.subr.mxu1 %v3611_v0 }
 0x11d   :  { %v340_v35 = vpop.f32.mrf.mxu1 }
 0x11f   :  { %v3025_v38 = vpop.f32.mrf.mxu1 }
 0x126   :  { %v440_v44 = vpop.f32.mrf.mxu1 }
 0x127   :  { %v445_v54 = vrot.slane %v440_v44, 2 }
 0x128   :  { %v236_v42 = vpop.f32.mrf.mxu0  ;;  %v3036_v47 = vpop.f32.mrf.mxu1 }
 0x129   :  { %v237_v43 = vadd.f32 %v236_v42, %v149_v40 }
 0x12a   :  { %v238_v45 = vpop.f32.mrf.mxu0 }
 0x12b   :  { %247 = vst [vmem:[#allocation2 + $0x10] sm:$0xff] %v237_v43  ;;  %v239_v46 = vadd.f32 %v238_v45, %v153_v41 }
 0x12c   :  { %v242_v48 = vpop.f32.mrf.mxu0 }
 0x12d   :  { %248 = vst [vmem:[#allocation2] sm:$0xff] %v239_v46  ;;  %v243_v49 = vadd.f32 %v242_v48, %v149_v40 }
 0x12e   :  { %v244_v50 = vpop.f32.mrf.mxu0 }
 0x12f   :  { %249 = vst [vmem:[#allocation2 + $0x18] sm:$0xff] %v243_v49  ;;  %v245_v51 = vadd.f32 %v244_v50, %v153_v41 }
 0x131   :  { %250 = vst [vmem:[#allocation2 + $0x8] sm:$0xff] %v245_v51 }
 0x132   :  { %v269_v52 = vld [vmem:[#allocation2 + $0x10] sm:$0x3]  ;;  %v497_v49 = vld [vmem:[#allocation2 + $0x10] sm:$0xc] }
 0x133   :  { %v344_v53 = vadd.f32 %v340_v35, %v269_v52 }
 0x135   :  { %3304 = vtanh.f32 %v344_v53  ;;  %v2846_v59 = vmul.f32 -1.442695, %v344_v53 }
 0x138   :  { %v373_v55 = vld [vmem:[#allocation2 + $0x8] sm:$0xc0]  ;;  %v613_v44 = vld [vmem:[#allocation2 + $0x8] sm:$0x30] }
 0x139   :  { %v447_v56 = vadd.f32 %v445_v54, %v373_v55 }
 0x13b   :  { %3306 = vtanh.f32 %v447_v56  ;;  %v2847_v60 = vmul.f32 -1.442695, %v447_v56 }
 0x13c   :  { %3308 = vpow2.f32 %v2846_v59 }
 0x13d   :  { %3310 = vpow2.f32 %v2847_v60 }
 0x142   :  { %v3305_v57 = vpop.eup %3304 }
 0x143   :  { %354 = vrot.lane.b32.xlu1 %v3305_v57, %s3613_s5 }
 0x148   :  { %v3307_v58 = vpop.eup %3306 }
 0x149   :  { %457 = vrot.lane.b32.xlu0 %v3307_v58, %s3613_s5  ;;  %v3309_v61 = vpop.eup %3308 }
 0x14a   :  { %v348_v62 = vadd.f32 1.0, %v3309_v61  ;;  %v3311_v63 = vpop.eup %3310 }
 0x14b   :  { %v451_v1 = vadd.f32 1.0, %v3311_v63 }
 0x14c   :  { %3312 = vrcp.f32 %v348_v62 }
 0x14d   :  { %3314 = vrcp.f32 %v451_v1 }
 0x159   :  { %v3313_v2 = vpop.eup %3312 }
 0x15a   :  { %v3315_v5 = vpop.eup %3314  ;;  %v352_v13 = vmul.f32 0.0, %v3313_v2 }
 0x15b   :  { %v455_v8 = vmul.f32 0.0, %v3315_v5 }
 0x1b5   :  { %v355_v3 = vpop.permute.xlu1 %354 }
 0x1b6   :  { %v357_v4 = vmul.f32 %v3313_v2, %v355_v3 }
 0x1b8   :  { %359 = vrot.lane.b32.xlu1 %v357_v4, %s3614_s24 }
 0x1bb   :  { %v458_v6 = vpop.permute.xlu0 %457 }
 0x1bc   :  { %v460_v7 = vmul.f32 %v3315_v5, %v458_v6 }
 0x1be   :  { %462 = vrot.lane.b32.xlu0 %v460_v7, %s3614_s24 }
 0x22a   :  { %v360_v9 = vpop.permute.xlu1 %359 }
 0x22b   :  { %v3785_v16 = vadd.f32 %v360_v9, %v352_v13 }
 0x22d   :  { %v585_v6 = vrot.slane %v3785_v16, 6 }
 0x230   :  { %v463_v11 = vpop.permute.xlu0 %462 }
 0x231   :  { %v465_v15 = vadd.f32 %v463_v11, %v455_v8 }
 0x233   :  { %3316 = vtanh.f32 %v465_v15  ;;  %v476_v20 = vrot.slane %v465_v15, 6 }
 0x234   :  { %3318 = vtanh.f32 %v3785_v16 }
 0x240   :  { %v3317_v18 = vpop.eup %3316 }
 0x241   :  { %468 = vrot.lane.b32.xlu0 %v3317_v18, %s3613_s5  ;;  %v3319_v19 = vpop.eup %3318 }
 0x245   :  { %365 = vrot.lane.b32.xlu0 %v3319_v19, %s3613_s5 }
 0x249   :  { %477 = vrot.lane.b32.xlu0 %v476_v20, %s3615_s25 }
 0x2b3   :  { %v469_v23 = vpop.permute.xlu0 %468 }
 0x2b4   :  { %v471_v25 = vmul.f32 %v3315_v5, %v469_v23 }
 0x2b6   :  { %v482_v29 = vrot.slane %v471_v25, 6 }
 0x2b7   :  { %v366_v31 = vpop.permute.xlu0 %365 }
 0x2b8   :  { %483 = vrot.lane.b32.xlu1 %v482_v29, %s3614_s24  ;;  %v3797_v35 = vmul.f32 %v3313_v2, %v366_v31 }
 0x2bb   :  { %v478_v37 = vpop.permute.xlu0 %477 }
 0x2bc   :  { %v3801_v38 = vsel %vm472_vm5, %v478_v37, 0.0  ;;  %499 = vrot.lane.b32.xlu1 %v3797_v35, %s3614_s24 }
 0x2bd   :  { %v699_v34 = vrot.slane %v3801_v38, 4 }
 0x2bf   :  { %700 = vrot.lane.b32.xlu0 %v699_v34, %s3614_s24 }
 0x32a   :  { %v484_v39 = vpop.permute.xlu1 %483 }
 0x32b   :  { %v3809_v40 = vsel %vm472_vm5, %v484_v39, 0.0 }
 0x32c   :  { %493 = vst.msk [vmem:[#allocation4 + $0x7] sm:$0x1] %vm491_vm6, %v3809_v40  ;;  %3057 = vmatmul.mubr.msk.f32.vlgmr.msra.gmra.mxu0 %vm270_vm8, %v3809_v40 }
 0x32d   :  { %496 = vst.msk [vmem:[#allocation4 + $0xe] sm:$0x2] %vm494_vm7, %v3809_v40  ;;  %3071 = vmatpush3.msra.mxu0 %v3727_v21  ;;  %3078 = vmatprep.mubr.msk.f32.mxu0 %vm3612_vm0, %v3611_v0 }
 0x32e   :  { %v500_v41 = vpop.permute.xlu1 %499  ;;  %3072 = vmatprep.subr.mxu0 %v3611_v0 }
 0x32f   :  { %3046 = vmatmul.mubr.msk.f32.vlgmr.msra.gmra.mxu1 %vm270_vm8, %v500_v41  ;;  %3073 = vmatpush3.msra.mxu0 %v3731_v24 }
 0x330   :  { %3060 = vmatpush3.msra.mxu1 %v3712_v10  ;;  %3074 = vmatprep.subr.mxu0 %v3611_v0 }
 0x331   :  { %3061 = vmatprep.subr.mxu1 %v3611_v0  ;;  %3075 = vmatpush3.msra.mxu0 %v3735_v27  ;;  %v701_v3 = vpop.permute.xlu0 %700 }
 0x332   :  { %3062 = vmatpush3.msra.mxu1 %v3715_v12  ;;  %3076 = vmatprep.subr.mxu0 %v3611_v0 }
 0x333   :  { %3063 = vmatprep.subr.mxu1 %v3611_v0  ;;  %3077 = vmatpush3.msra.mxu0 %v3739_v30 }
 0x334   :  { %3064 = vmatpush3.msra.mxu1 %v3718_v14  ;;  %3067 = vmatprep.mubr.msk.f32.mxu1 %vm3612_vm0, %v3611_v0 }
 0x335   :  { %3065 = vmatprep.subr.mxu1 %v3611_v0  ;;  %3092 = vmatprep.subr.mxu0 %v3611_v0 }
 0x336   :  { %3066 = vmatpush3.msra.mxu1 %v3722_v17 }
 0x337   :  { %3081 = vmatprep.subr.mxu1 %v3611_v0 }
 0x3ec   :  { %v683_v42 = vpop.f32.mrf.mxu0 }
 0x3ed   :  { %v688_v43 = vrot.slane %v683_v42, 4  ;;  %v853_v42 = vld [vmem:[#allocation2 + $0x8] sm:$0xc] }
 0x3ee   :  { %v3058_v45 = vpop.f32.mrf.mxu0 }
 0x3ef   :  { %v690_v46 = vadd.f32 %v688_v43, %v613_v44  ;;  %v569_v47 = vpop.f32.mrf.mxu1 }
 0x3f0   :  { %v574_v48 = vrot.slane %v569_v47, 6  ;;  %v740_v47 = vld [vmem:[#allocation2 + $0x10] sm:$0x30] }
 0x3f1   :  { %3320 = vtanh.f32 %v690_v46  ;;  %v3047_v50 = vpop.f32.mrf.mxu1  ;;  %v2851_v54 = vmul.f32 -1.442695, %v690_v46 }
 0x3f2   :  { %v576_v51 = vadd.f32 %v574_v48, %v497_v49 }
 0x3f4   :  { %3322 = vtanh.f32 %v576_v51  ;;  %v2849_v55 = vmul.f32 -1.442695, %v576_v51 }
 0x3f5   :  { %3324 = vpow2.f32 %v2851_v54 }
 0x3f6   :  { %3326 = vpow2.f32 %v2849_v55 }
 0x3fe   :  { %v3321_v52 = vpop.eup %3320 }
 0x3ff   :  { %705 = vrot.lane.b32.xlu1 %v3321_v52, %s3613_s5 }
 0x401   :  { %v3323_v53 = vpop.eup %3322 }
 0x402   :  { %v3325_v56 = vpop.eup %3324 }
 0x403   :  { %589 = vrot.lane.b32.xlu1 %v3323_v53, %s3613_s5  ;;  %v694_v57 = vadd.f32 1.0, %v3325_v56  ;;  %v3327_v58 = vpop.eup %3326 }
 0x404   :  { %v580_v59 = vadd.f32 1.0, %v3327_v58 }
 0x405   :  { %3328 = vrcp.f32 %v694_v57 }
 0x406   :  { %3330 = vrcp.f32 %v580_v59 }
 0x412   :  { %v3329_v60 = vpop.eup %3328 }
 0x413   :  { %v3331_v63 = vpop.eup %3330  ;;  %v703_v4 = vmul.f32 %v3329_v60, %v701_v3 }
 0x414   :  { %v587_v8 = vmul.f32 %v3331_v63, %v585_v6 }
 0x471   :  { %v706_v61 = vpop.permute.xlu1 %705 }
 0x472   :  { %v708_v62 = vmul.f32 %v3329_v60, %v706_v61 }
 0x474   :  { %710 = vrot.lane.b32.xlu0 %v708_v62, %s3614_s24 }
 0x475   :  { %v590_v1 = vpop.permute.xlu1 %589 }
 0x476   :  { %v592_v2 = vmul.f32 %v3331_v63, %v590_v1 }
 0x478   :  { %594 = vrot.lane.b32.xlu1 %v592_v2, %s3614_s24 }
 0x4e6   :  { %v711_v5 = vpop.permute.xlu0 %710 }
 0x4e7   :  { %v713_v7 = vadd.f32 %v711_v5, %v703_v4 }
 0x4e9   :  { %3332 = vtanh.f32 %v713_v7  ;;  %v724_v16 = vrot.slane %v713_v7, 4 }
 0x4ea   :  { %v595_v9 = vpop.permute.xlu1 %594 }
 0x4eb   :  { %v3843_v11 = vadd.f32 %v595_v9, %v587_v8 }
 0x4ed   :  { %3334 = vtanh.f32 %v3843_v11  ;;  %v825_v4 = vrot.slane %v3843_v11, 6 }
 0x4f6   :  { %v3333_v13 = vpop.eup %3332 }
 0x4f7   :  { %716 = vrot.lane.b32.xlu0 %v3333_v13, %s3613_s5 }
 0x4fa   :  { %v3335_v15 = vpop.eup %3334 }
 0x4fb   :  { %600 = vrot.lane.b32.xlu1 %v3335_v15, %s3613_s5 }
 0x569   :  { %v717_v18 = vpop.permute.xlu0 %716 }
 0x56a   :  { %v719_v19 = vmul.f32 %v3329_v60, %v717_v18 }
 0x56c   :  { %v730_v20 = vrot.slane %v719_v19, 4 }
 0x56d   :  { %v601_v22 = vpop.permute.xlu1 %600 }
 0x56e   :  { %v603_v23 = vmul.f32 %v3331_v63, %v601_v22  ;;  %731 = vrot.lane.b32.xlu0 %v730_v20, %s3614_s24 }
 0x570   :  { %v608_v25 = vrot.slane %v603_v23, 2 }
 0x572   :  { %609 = vrot.lane.b32.xlu1 %v608_v25, %s3614_s24  ;;  %725 = vrot.lane.b32.xlu0 %v724_v16, %s3615_s25 }
 0x5e0   :  { %v732_v26 = vpop.permute.xlu0 %731 }
 0x5e1   :  { %v3855_v28 = vsel %vm720_vm9, %v732_v26, %v3809_v40  ;;  %v735_v29 = vsel %vm720_vm9, %v732_v26, 0.0 }
 0x5e2   :  { %737 = vst.msk [vmem:[#allocation4 + $0x6] sm:$0x1] %vm491_vm6, %v735_v29  ;;  %3079 = vmatmul.mubr.msk.f32.vlgmr.msra.gmra.mxu0 %vm270_vm8, %v3855_v28 }
 0x5e3   :  { %739 = vst.msk [vmem:[#allocation4 + $0xd] sm:$0x2] %vm494_vm7, %v735_v29  ;;  %3093 = vmatpush3.msra.mxu0 %v3727_v21  ;;  %3100 = vmatprep.mubr.msk.f32.mxu0 %vm3612_vm0, %v3611_v0 }
 0x5e4   :  { %v610_v31 = vpop.permute.xlu1 %609  ;;  %v726_v37 = vpop.permute.xlu0 %725  ;;  %3094 = vmatprep.subr.mxu0 %v3611_v0 }
 0x5e5   :  { %v612_v34 = vsel %vm604_vm10, %v610_v31, 0.0  ;;  %v3873_v39 = vsel %vm720_vm9, %v726_v37, %v3801_v38  ;;  %3068 = vmatmul.mubr.msk.f32.vlgmr.msra.gmra.mxu1 %vm270_vm8, %v610_v31  ;;  %3095 = vmatpush3.msra.mxu0 %v3731_v24 }
 0x5e6   :  { %736 = vst.msk [vmem:[#allocation3 + $0x1] sm:$0x1] %vm491_vm6, %v612_v34  ;;  %v939_v40 = vrot.slane %v3873_v39, 6  ;;  %3082 = vmatpush3.msra.mxu1 %v3712_v10  ;;  %3096 = vmatprep.subr.mxu0 %v3611_v0 }
 0x5e7   :  { %738 = vst.msk [vmem:[#allocation3 + $0x8] sm:$0x2] %vm494_vm7, %v612_v34  ;;  %3083 = vmatprep.subr.mxu1 %v3611_v0  ;;  %3097 = vmatpush3.msra.mxu0 %v3735_v27  ;;  %v1093_v34 = vld [vmem:[#allocation2 + $0x8] sm:$0x3] }
 0x5e8   :  { %940 = vrot.lane.b32.xlu0 %v939_v40, %s3614_s24  ;;  %3084 = vmatpush3.msra.mxu1 %v3715_v12 }
 0x5e9   :  { %3098 = vmatprep.subr.mxu0 %v3611_v0  ;;  %3085 = vmatprep.subr.mxu1 %v3611_v0 }
 0x5ea   :  { %3099 = vmatpush3.msra.mxu0 %v3739_v30  ;;  %3086 = vmatpush3.msra.mxu1 %v3718_v14 }
 0x5eb   :  { %3087 = vmatprep.subr.mxu1 %v3611_v0  ;;  %3089 = vmatprep.mubr.msk.f32.mxu1 %vm3612_vm0, %v3611_v0 }
 0x5ec   :  { %3088 = vmatpush3.msra.mxu1 %v3722_v17  ;;  %3114 = vmatprep.subr.mxu0 %v3611_v0 }
 0x5ed   :  { %3103 = vmatprep.subr.mxu1 %v3611_v0 }
 0x65a   :  { %v941_v1 = vpop.permute.xlu0 %940 }
 0x6a2   :  { %v923_v38 = vpop.f32.mrf.mxu0 }
 0x6a3   :  { %v928_v41 = vrot.slane %v923_v38, 6 }
 0x6a4   :  { %v3080_v43 = vpop.f32.mrf.mxu0 }
 0x6a5   :  { %v930_v44 = vadd.f32 %v928_v41, %v853_v42  ;;  %v809_v45 = vpop.f32.mrf.mxu1  ;;  %v980_v43 = vld [vmem:[#allocation2 + $0x10] sm:$0xc0] }
 0x6a6   :  { %v814_v46 = vrot.slane %v809_v45, 4 }
 0x6a7   :  { %3336 = vtanh.f32 %v930_v44  ;;  %v3069_v48 = vpop.f32.mrf.mxu1  ;;  %v2855_v52 = vmul.f32 -1.442695, %v930_v44 }
 0x6a8   :  { %v816_v49 = vadd.f32 %v814_v46, %v740_v47 }
 0x6aa   :  { %3338 = vtanh.f32 %v816_v49  ;;  %v2853_v53 = vmul.f32 -1.442695, %v816_v49 }
 0x6ab   :  { %3340 = vpow2.f32 %v2855_v52 }
 0x6ac   :  { %3342 = vpow2.f32 %v2853_v53 }
 0x6b4   :  { %v3337_v50 = vpop.eup %3336 }
 0x6b5   :  { %945 = vrot.lane.b32.xlu1 %v3337_v50, %s3613_s5 }
 0x6b7   :  { %v3339_v51 = vpop.eup %3338 }
 0x6b8   :  { %v3341_v54 = vpop.eup %3340 }
 0x6b9   :  { %829 = vrot.lane.b32.xlu1 %v3339_v51, %s3613_s5  ;;  %v934_v55 = vadd.f32 1.0, %v3341_v54  ;;  %v3343_v56 = vpop.eup %3342 }
 0x6ba   :  { %v820_v57 = vadd.f32 1.0, %v3343_v56 }
 0x6bb   :  { %3344 = vrcp.f32 %v934_v55 }
 0x6bc   :  { %3346 = vrcp.f32 %v820_v57 }
 0x6c8   :  { %v3345_v58 = vpop.eup %3344 }
 0x6c9   :  { %v3347_v61 = vpop.eup %3346  ;;  %v943_v2 = vmul.f32 %v3345_v58, %v941_v1 }
 0x6ca   :  { %v827_v6 = vmul.f32 %v3347_v61, %v825_v4 }
 0x727   :  { %v946_v59 = vpop.permute.xlu1 %945 }
 0x728   :  { %v948_v60 = vmul.f32 %v3345_v58, %v946_v59 }
 0x72a   :  { %950 = vrot.lane.b32.xlu0 %v948_v60, %s3614_s24 }
 0x72b   :  { %v830_v62 = vpop.permute.xlu1 %829 }
 0x72c   :  { %v832_v63 = vmul.f32 %v3347_v61, %v830_v62 }
 0x72e   :  { %834 = vrot.lane.b32.xlu1 %v832_v63, %s3614_s24 }
 0x79c   :  { %v951_v3 = vpop.permute.xlu0 %950 }
 0x79d   :  { %v953_v5 = vadd.f32 %v951_v3, %v943_v2 }
 0x79f   :  { %3348 = vtanh.f32 %v953_v5  ;;  %v964_v11 = vrot.slane %v953_v5, 2 }
 0x7a0   :  { %v835_v7 = vpop.permute.xlu1 %834 }
 0x7a1   :  { %v3901_v8 = vadd.f32 %v835_v7, %v827_v6 }
 0x7a3   :  { %3350 = vtanh.f32 %v3901_v8  ;;  %v1065_v1 = vrot.slane %v3901_v8, 6 }
 0x7ac   :  { %v3349_v9 = vpop.eup %3348 }
 0x7ad   :  { %956 = vrot.lane.b32.xlu0 %v3349_v9, %s3613_s5 }
 0x7b0   :  { %v3351_v13 = vpop.eup %3350 }
 0x7b1   :  { %840 = vrot.lane.b32.xlu1 %v3351_v13, %s3613_s5 }
 0x81f   :  { %v957_v15 = vpop.permute.xlu0 %956 }
 0x820   :  { %v959_v18 = vmul.f32 %v3345_v58, %v957_v15 }
 0x822   :  { %v970_v19 = vrot.slane %v959_v18, 2 }
 0x823   :  { %v841_v20 = vpop.permute.xlu1 %840 }
 0x824   :  { %v843_v22 = vmul.f32 %v3347_v61, %v841_v20  ;;  %971 = vrot.lane.b32.xlu0 %v970_v19, %s3614_s24 }
 0x826   :  { %v848_v23 = vrot.slane %v843_v22, 4 }
 0x828   :  { %849 = vrot.lane.b32.xlu1 %v848_v23, %s3614_s24  ;;  %965 = vrot.lane.b32.xlu0 %v964_v11, %s3615_s25 }
 0x896   :  { %v972_v16 = vpop.permute.xlu0 %971 }
 0x897   :  { %v3913_v25 = vsel %vm960_vm11, %v972_v16, %v3855_v28  ;;  %v975_v26 = vsel %vm960_vm11, %v972_v16, 0.0  ;;  %v1315_v16 = vld [vmem:[#allocation2] sm:$0xc0] }
 0x898   :  { %977 = vst.msk [vmem:[#allocation4 + $0x5] sm:$0x1] %vm491_vm6, %v975_v26  ;;  %3101 = vmatmul.mubr.msk.f32.vlgmr.msra.gmra.mxu0 %vm270_vm8, %v3913_v25 }
 0x899   :  { %979 = vst.msk [vmem:[#allocation4 + $0xc] sm:$0x2] %vm494_vm7, %v975_v26  ;;  %3115 = vmatpush3.msra.mxu0 %v3727_v21  ;;  %3122 = vmatprep.mubr.msk.f32.mxu0 %vm3612_vm0, %v3611_v0 }
 0x89a   :  { %v850_v29 = vpop.permute.xlu1 %849  ;;  %v966_v28 = vpop.permute.xlu0 %965  ;;  %3116 = vmatprep.subr.mxu0 %v3611_v0 }
 0x89b   :  { %v852_v31 = vsel %vm844_vm12, %v850_v29, 0.0  ;;  %3090 = vmatmul.mubr.msk.f32.vlgmr.msra.gmra.mxu1 %vm270_vm8, %v850_v29  ;;  %v968_v37 = vsel %vm960_vm11, %v966_v28, %v3873_v39  ;;  %3117 = vmatpush3.msra.mxu0 %v3731_v24  ;;  %v1213_v29 = vld [vmem:[#allocation2 + $0x18] sm:$0x3] }
 0x89c   :  { %976 = vst.msk [vmem:[#allocation3 + $0x2] sm:$0x1] %vm491_vm6, %v852_v31  ;;  %1176 = vrot.lane.b32.xlu0 %v968_v37, %s3614_s24  ;;  %3118 = vmatprep.subr.mxu0 %v3611_v0 }
 0x89d   :  { %978 = vst.msk [vmem:[#allocation3 + $0x9] sm:$0x2] %vm494_vm7, %v852_v31  ;;  %3119 = vmatpush3.msra.mxu0 %v3735_v27  ;;  %3104 = vmatpush3.msra.mxu1 %v3712_v10 }
 0x89e   :  { %3120 = vmatprep.subr.mxu0 %v3611_v0  ;;  %3105 = vmatprep.subr.mxu1 %v3611_v0 }
 0x89f   :  { %3121 = vmatpush3.msra.mxu0 %v3739_v30  ;;  %3106 = vmatpush3.msra.mxu1 %v3715_v12 }
 0x8a0   :  { %3107 = vmatprep.subr.mxu1 %v3611_v0  ;;  %3111 = vmatprep.mubr.msk.f32.mxu1 %vm3612_vm0, %v3611_v0 }
 0x8a1   :  { %3108 = vmatpush3.msra.mxu1 %v3718_v14  ;;  %3136 = vmatprep.subr.mxu0 %v3611_v0 }
 0x8a2   :  { %3109 = vmatprep.subr.mxu1 %v3611_v0 }
 0x8a3   :  { %3110 = vmatpush3.msra.mxu1 %v3722_v17 }
 0x8a4   :  { %3125 = vmatprep.subr.mxu1 %v3611_v0 }
 0x90e   :  { %v3957_v60 = vpop.permute.xlu0 %1176 }
 0x958   :  { %v1163_v39 = vpop.f32.mrf.mxu0 }
 0x959   :  { %v1167_v40 = vadd.f32 %v1163_v39, %v1093_v34 }
 0x95a   :  { %v3102_v38 = vpop.f32.mrf.mxu0 }
 0x95b   :  { %3352 = vtanh.f32 %v1167_v40  ;;  %v1049_v41 = vpop.f32.mrf.mxu1  ;;  %v2859_v48 = vmul.f32 -1.442695, %v1167_v40 }
 0x95c   :  { %v1054_v42 = vrot.slane %v1049_v41, 2 }
 0x95d   :  { %v3091_v44 = vpop.f32.mrf.mxu1 }
 0x95e   :  { %v1056_v45 = vadd.f32 %v1054_v42, %v980_v43 }
 0x960   :  { %3354 = vtanh.f32 %v1056_v45  ;;  %v2857_v49 = vmul.f32 -1.442695, %v1056_v45 }
 0x961   :  { %3356 = vpow2.f32 %v2859_v48 }
 0x962   :  { %3358 = vpow2.f32 %v2857_v49 }
 0x968   :  { %v3353_v46 = vpop.eup %3352 }
 0x969   :  { %1181 = vrot.lane.b32.xlu1 %v3353_v46, %s3613_s5 }
 0x96d   :  { %v3355_v47 = vpop.eup %3354 }
 0x96e   :  { %1069 = vrot.lane.b32.xlu1 %v3355_v47, %s3613_s5  ;;  %v3357_v50 = vpop.eup %3356 }
 0x96f   :  { %v1171_v51 = vadd.f32 1.0, %v3357_v50  ;;  %v3359_v52 = vpop.eup %3358 }
 0x970   :  { %v1060_v53 = vadd.f32 1.0, %v3359_v52 }
 0x971   :  { %3360 = vrcp.f32 %v1171_v51 }
 0x972   :  { %3362 = vrcp.f32 %v1060_v53 }
 0x97e   :  { %v3361_v54 = vpop.eup %3360 }
 0x97f   :  { %v3363_v57 = vpop.eup %3362  ;;  %v1179_v61 = vmul.f32 %v3361_v54, %v3957_v60 }
 0x980   :  { %v1067_v2 = vmul.f32 %v3363_v57, %v1065_v1 }
 0x9db   :  { %v1182_v55 = vpop.permute.xlu1 %1181 }
 0x9dc   :  { %v1184_v56 = vmul.f32 %v3361_v54, %v1182_v55 }
 0x9de   :  { %1186 = vrot.lane.b32.xlu0 %v1184_v56, %s3614_s24 }
 0x9e0   :  { %v1070_v58 = vpop.permute.xlu1 %1069 }
 0x9e1   :  { %v1072_v59 = vmul.f32 %v3363_v57, %v1070_v58 }
 0x9e3   :  { %1074 = vrot.lane.b32.xlu1 %v1072_v59, %s3614_s24 }
 0x9e7   :  { %1200 = vrot.lane.b32.xlu1 %v3913_v25, %s3615_s25 }
 0xa50   :  { %v1187_v62 = vpop.permute.xlu0 %1186 }
 0xa51   :  { %v3960_v63 = vadd.f32 %v1187_v62, %v1179_v61 }
 0xa53   :  { %3364 = vtanh.f32 %v3960_v63  ;;  %v1199_v48 = vsel %vm1196_vm13, %v3960_v63, %v3957_v60 }
 0xa54   :  { %v1403_v49 = vrot.slane %v1199_v48, 2 }
 0xa55   :  { %v1075_v3 = vpop.permute.xlu1 %1074 }
 0xa56   :  { %v3964_v4 = vadd.f32 %v1075_v3, %v1067_v2 }
 0xa58   :  { %3366 = vtanh.f32 %v3964_v4  ;;  %v1295_v52 = vrot.slane %v3964_v4, 6 }
 0xa59   :  { %v1201_v8 = vpop.permute.xlu1 %1200 }
 0xa60   :  { %v3365_v5 = vpop.eup %3364 }
 0xa61   :  { %1192 = vrot.lane.b32.xlu0 %v3365_v5, %s3613_s5 }
 0xa65   :  { %v3367_v6 = vpop.eup %3366 }
 0xa66   :  { %1080 = vrot.lane.b32.xlu0 %v3367_v6, %s3613_s5  ;;  %v4041_v6 = vld [vmem:[#allocation12 + $0x18] sm:$0xff] }
 0xad3   :  { %v1193_v7 = vpop.permute.xlu0 %1192 }
 0xad4   :  { %v3969_v9 = vmul.f32 %v3361_v54, %v1193_v7  ;;  %v4047_v7 = vld [vmem:[#allocation12 + $0x10] sm:$0xff] }
 0xad6   :  { %v1203_v13 = vsel %vm1196_vm13, %v3969_v9, %v1201_v8 }
 0xad7   :  { %1317 = vrot.lane.b32.xlu1 %v1203_v13, %s3614_s24 }
 0xad8   :  { %v1081_v15 = vpop.permute.xlu0 %1080 }
 0xad9   :  { %v1083_v18 = vmul.f32 %v3363_v57, %v1081_v15  ;;  %v1560_v15 = vld [vmem:[#allocation2] sm:$0x30] }
 0xadb   :  { %v1088_v19 = vrot.slane %v1083_v18, 6 }
 0xadd   :  { %1089 = vrot.lane.b32.xlu0 %v1088_v19, %s3614_s24 }
 0xb49   :  { %v3977_v20 = vpop.permute.xlu1 %1317 }
 0xb4a   :  { %3123 = vmatmul.mubr.msk.f32.vlgmr.msra.gmra.mxu0 %vm270_vm8, %v3977_v20 }
 0xb4b   :  { %3137 = vmatpush3.msra.mxu0 %v3727_v21  ;;  %3144 = vmatprep.mubr.msk.f32.mxu0 %vm3612_vm0, %v3611_v0 }
 0xb4c   :  { %3138 = vmatprep.subr.mxu0 %v3611_v0 }
 0xb4d   :  { %3139 = vmatpush3.msra.mxu0 %v3731_v24 }
 0xb4e   :  { %3140 = vmatprep.subr.mxu0 %v3611_v0 }
 0xb4f   :  { %v1090_v22 = vpop.permute.xlu0 %1089  ;;  %3141 = vmatpush3.msra.mxu0 %v3735_v27 }
 0xb50   :  { %v1092_v11 = vsel %vm1084_vm14, %v1090_v22, 0.0  ;;  %3112 = vmatmul.mubr.msk.f32.vlgmr.msra.gmra.mxu1 %vm270_vm8, %v1090_v22  ;;  %3142 = vmatprep.subr.mxu0 %v3611_v0  ;;  %v1447_v22 = vld [vmem:[#allocation2 + $0x18] sm:$0xc] }
 0xb51   :  { %1205 = vst.msk [vmem:[#allocation3 + $0x3] sm:$0x1] %vm491_vm6, %v1092_v11  ;;  %3126 = vmatpush3.msra.mxu1 %v3712_v10  ;;  %3143 = vmatpush3.msra.mxu0 %v3739_v30 }
 0xb52   :  { %1211 = vst.msk [vmem:[#allocation3 + $0xa] sm:$0x2] %vm494_vm7, %v1092_v11  ;;  %3127 = vmatprep.subr.mxu1 %v3611_v0  ;;  %3133 = vmatprep.mubr.msk.f32.mxu1 %vm3612_vm0, %v3611_v0 }
 0xb53   :  { %3128 = vmatpush3.msra.mxu1 %v3715_v12  ;;  %3158 = vmatprep.subr.mxu0 %v3611_v0 }
 0xb54   :  { %3129 = vmatprep.subr.mxu1 %v3611_v0 }
 0xb55   :  { %3130 = vmatpush3.msra.mxu1 %v3718_v14 }
 0xb56   :  { %3131 = vmatprep.subr.mxu1 %v3611_v0 }
 0xb57   :  { %3132 = vmatpush3.msra.mxu1 %v3722_v17 }
 0xb58   :  { %3147 = vmatprep.subr.mxu1 %v3611_v0 }
 0xc0a   :  { %v1387_v10 = vpop.f32.mrf.mxu0 }
 0xc0b   :  { %v1392_v23 = vrot.slane %v1387_v10, 2 }
 0xc0c   :  { %v3124_v25 = vpop.f32.mrf.mxu0 }
 0xc0d   :  { %v1394_v26 = vadd.f32 %v1392_v23, %v1315_v16 }
 0xc0f   :  { %3368 = vtanh.f32 %v1394_v26  ;;  %v2863_v17 = vmul.f32 -1.442695, %v1394_v26 }
 0xc10   :  { %v1282_v12 = vpop.f32.mrf.mxu1 }
 0xc11   :  { %v1286_v28 = vadd.f32 %v1282_v12, %v1213_v29 }
 0xc12   :  { %v3113_v31 = vpop.f32.mrf.mxu1 }
 0xc13   :  { %3370 = vtanh.f32 %v1286_v28  ;;  %v2861_v34 = vmul.f32 -1.442695, %v1286_v28 }
 0xc14   :  { %3372 = vpow2.f32 %v2863_v17 }
 0xc15   :  { %3374 = vpow2.f32 %v2861_v34 }
 0xc1c   :  { %v3369_v37 = vpop.eup %3368 }
 0xc1d   :  { %1407 = vrot.lane.b32.xlu1 %v3369_v37, %s3613_s5 }
 0xc20   :  { %v3371_v14 = vpop.eup %3370 }
 0xc21   :  { %1299 = vrot.lane.b32.xlu0 %v3371_v14, %s3613_s5  ;;  %v3373_v39 = vpop.eup %3372 }
 0xc22   :  { %v1398_v40 = vadd.f32 1.0, %v3373_v39  ;;  %v3375_v38 = vpop.eup %3374 }
 0xc23   :  { %v1290_v41 = vadd.f32 1.0, %v3375_v38 }
 0xc24   :  { %3376 = vrcp.f32 %v1398_v40 }
 0xc25   :  { %3378 = vrcp.f32 %v1290_v41 }
 0xc31   :  { %v3377_v42 = vpop.eup %3376 }
 0xc32   :  { %v3379_v45 = vpop.eup %3378  ;;  %v1405_v50 = vmul.f32 %v3377_v42, %v1403_v49 }
 0xc33   :  { %v1297_v54 = vmul.f32 %v3379_v45, %v1295_v52 }
 0xc8f   :  { %v1408_v43 = vpop.permute.xlu1 %1407 }
 0xc90   :  { %v1410_v44 = vmul.f32 %v3377_v42, %v1408_v43 }
 0xc92   :  { %1412 = vrot.lane.b32.xlu1 %v1410_v44, %s3614_s24 }
 0xc93   :  { %v1300_v46 = vpop.permute.xlu0 %1299 }
 0xc94   :  { %v1302_v47 = vmul.f32 %v3379_v45, %v1300_v46 }
 0xc96   :  { %1304 = vrot.lane.b32.xlu0 %v1302_v47, %s3614_s24 }
 0xd04   :  { %v1413_v51 = vpop.permute.xlu1 %1412 }
 0xd05   :  { %v1415_v53 = vadd.f32 %v1413_v51, %v1405_v50 }
 0xd07   :  { %3380 = vtanh.f32 %v1415_v53  ;;  %v1423_v1 = vrot.slane %v1415_v53, 6 }
 0xd08   :  { %v1305_v55 = vpop.permute.xlu0 %1304 }
 0xd09   :  { %v4016_v56 = vadd.f32 %v1305_v55, %v1297_v54 }
 0xd0b   :  { %3382 = vtanh.f32 %v4016_v56  ;;  %v1535_v44 = vrot.slane %v4016_v56, 6 }
 0xd14   :  { %v3381_v57 = vpop.eup %3380 }
 0xd15   :  { %1418 = vrot.lane.b32.xlu1 %v3381_v57, %s3613_s5 }
 0xd18   :  { %v3383_v58 = vpop.eup %3382 }
 0xd19   :  { %1310 = vrot.lane.b32.xlu0 %v3383_v58, %s3613_s5 }
 0xd87   :  { %v1419_v59 = vpop.permute.xlu1 %1418 }
 0xd88   :  { %v1421_v60 = vmul.f32 %v3377_v42, %v1419_v59 }
 0xd8a   :  { %v1432_v61 = vrot.slane %v1421_v60, 6 }
 0xd8b   :  { %v1311_v62 = vpop.permute.xlu0 %1310 }
 0xd8c   :  { %v4021_v63 = vmul.f32 %v3379_v45, %v1311_v62  ;;  %1433 = vrot.lane.b32.xlu1 %v1432_v61, %s3614_s24 }
 0xd8e   :  { %1449 = vrot.lane.b32.xlu0 %v4021_v63, %s3614_s24 }
 0xd90   :  { %1424 = vrot.lane.b32.xlu1 %v1423_v1, %s3615_s25 }
 0xd92   :  { %1427 = vrot.lane.b32.xlu0 %v1199_v48, %s3615_s25 }
 0xdfe   :  { %v1434_v2 = vpop.permute.xlu1 %1433 }
 0xdff   :  { %v4031_v3 = vsel %vm1084_vm14, %v1434_v2, %v3977_v20  ;;  %v1438_v4 = vsel %vm1084_vm14, %v1434_v2, 0.0 }
 0xe00   :  { %1444 = vst.msk [vmem:[#allocation4 + $0x3] sm:$0x1] %vm491_vm6, %v1438_v4  ;;  %3145 = vmatmul.mubr.msk.f32.vlgmr.msra.gmra.mxu0 %vm270_vm8, %v4031_v3  ;;  %v1450_v5 = vpop.permute.xlu0 %1449 }
 0xe01   :  { %1446 = vst.msk [vmem:[#allocation4 + $0xa] sm:$0x2] %vm494_vm7, %v1438_v4  ;;  %3134 = vmatmul.mubr.msk.f32.vlgmr.msra.gmra.mxu1 %vm270_vm8, %v1450_v5  ;;  %3159 = vmatpush3.msra.mxu0 %v3727_v21  ;;  %v4053_v21 = vld [vmem:[#allocation12 + $0x8] sm:$0xff]  ;;  %v3437_v4 = vld [vmem:[#allocation13 + $0x10] sm:$0xff] }
 0xe02   :  { %3148 = vmatpush3.msra.mxu1 %v4041_v6  ;;  %3160 = vmatprep.subr.mxu0 %v3611_v0  ;;  %v1425_v23 = vpop.permute.xlu1 %1424  ;;  %v3438_v5 = vld [vmem:[#allocation13 + $0x8] sm:$0xff] }
 0xe03   :  { %3149 = vmatprep.subr.mxu1 %v3611_v0  ;;  %3161 = vmatpush3.msra.mxu0 %v3731_v24  ;;  %v4060_v24 = vld [vmem:[#allocation12] sm:$0xff] }
 0xe04   :  { %3150 = vmatpush3.msra.mxu1 %v4047_v7  ;;  %3162 = vmatprep.subr.mxu0 %v3611_v0 }
 0xe05   :  { %3151 = vmatprep.subr.mxu1 %v3611_v0  ;;  %3163 = vmatpush3.msra.mxu0 %v3735_v27 }
 0xe06   :  { %3152 = vmatpush3.msra.mxu1 %v4053_v21  ;;  %3164 = vmatprep.subr.mxu0 %v3611_v0 }
 0xe07   :  { %3153 = vmatprep.subr.mxu1 %v3611_v0  ;;  %3155 = vmatprep.mubr.msk.f32.mxu1 %vm3612_vm0, %v3611_v0 }
 0xe08   :  { %3154 = vmatpush3.msra.mxu1 %v4060_v24  ;;  %3165 = vmatpush3.msra.mxu0 %v3739_v30  ;;  %v1428_v30 = vpop.permute.xlu0 %1427 }
 0xe09   :  { %3166 = vmatprep.mubr.msk.f32.mxu0 %vm3612_vm0, %v3611_v0  ;;  %3169 = vmatprep.subr.mxu1 %v3611_v0  ;;  %v4070_v25 = vsel %vm1084_vm14, %v1425_v23, %v1428_v30 }
 0xe0a   :  { %3180 = vmatprep.subr.mxu0 %v3611_v0  ;;  %v1646_v29 = vrot.slane %v4070_v25, 4 }
 0xec0   :  { %v1630_v27 = vpop.f32.mrf.mxu0 }
 0xec1   :  { %v1635_v8 = vrot.slane %v1630_v27, 4  ;;  %v1519_v13 = vpop.f32.mrf.mxu1 }
 0xec2   :  { %v1524_v18 = vrot.slane %v1519_v13, 6  ;;  %v3146_v19 = vpop.f32.mrf.mxu0  ;;  %v1684_v13 = vld [vmem:[#allocation2 + $0x18] sm:$0x30] }
 0xec3   :  { %v1637_v20 = vadd.f32 %v1635_v8, %v1560_v15  ;;  %v3135_v11 = vpop.f32.mrf.mxu1  ;;  %v1794_v15 = vld [vmem:[#allocation2] sm:$0xc] }
 0xec4   :  { %v1526_v10 = vadd.f32 %v1524_v18, %v1447_v22 }
 0xec5   :  { %3384 = vtanh.f32 %v1637_v20  ;;  %v2867_v12 = vmul.f32 -1.442695, %v1637_v20 }
 0xec6   :  { %3386 = vtanh.f32 %v1526_v10  ;;  %v2865_v28 = vmul.f32 -1.442695, %v1526_v10 }
 0xec7   :  { %3388 = vpow2.f32 %v2867_v12 }
 0xec8   :  { %3390 = vpow2.f32 %v2865_v28 }
 0xed2   :  { %v3385_v16 = vpop.eup %3384 }
 0xed3   :  { %v3387_v26 = vpop.eup %3386  ;;  %1652 = vrot.lane.b32.xlu1 %v3385_v16, %s3613_s5 }
 0xed4   :  { %1539 = vrot.lane.b32.xlu0 %v3387_v26, %s3613_s5  ;;  %v3389_v31 = vpop.eup %3388 }
 0xed5   :  { %v3391_v37 = vpop.eup %3390  ;;  %v1641_v14 = vadd.f32 1.0, %v3389_v31 }
 0xed6   :  { %v1530_v17 = vadd.f32 1.0, %v3391_v37 }
 0xed7   :  { %1647 = vrot.lane.b32.xlu1 %v1646_v29, %s3614_s24  ;;  %3392 = vrcp.f32 %v1641_v14 }
 0xed8   :  { %3394 = vrcp.f32 %v1530_v17 }
 0xee4   :  { %v3393_v34 = vpop.eup %3392 }
 0xee5   :  { %v3395_v40 = vpop.eup %3394 }
 0xee6   :  { %v1537_v47 = vmul.f32 %v3395_v40, %v1535_v44 }
 0xf45   :  { %v1653_v39 = vpop.permute.xlu1 %1652 }
 0xf46   :  { %v1655_v38 = vmul.f32 %v3393_v34, %v1653_v39  ;;  %v1540_v41 = vpop.permute.xlu0 %1539 }
 0xf47   :  { %v1542_v42 = vmul.f32 %v3395_v40, %v1540_v41 }
 0xf48   :  { %1657 = vrot.lane.b32.xlu0 %v1655_v38, %s3614_s24 }
 0xf49   :  { %1544 = vrot.lane.b32.xlu1 %v1542_v42, %s3614_s24  ;;  %v1648_v43 = vpop.permute.xlu1 %1647 }
 0xf4a   :  { %v1650_v45 = vmul.f32 %v3393_v34, %v1648_v43 }
 0xfba   :  { %v1658_v46 = vpop.permute.xlu0 %1657 }
 0xfbb   :  { %v1660_v48 = vadd.f32 %v1658_v46, %v1650_v45  ;;  %v1545_v49 = vpop.permute.xlu1 %1544 }
 0xfbc   :  { %v4079_v50 = vadd.f32 %v1545_v49, %v1537_v47 }
 0xfbd   :  { %3396 = vtanh.f32 %v1660_v48  ;;  %v1668_v59 = vrot.slane %v1660_v48, 4 }
 0xfbe   :  { %3398 = vtanh.f32 %v4079_v50  ;;  %v1769_v38 = vrot.slane %v4079_v50, 6 }
 0xfca   :  { %v3397_v51 = vpop.eup %3396 }
 0xfcb   :  { %v3399_v52 = vpop.eup %3398  ;;  %1663 = vrot.lane.b32.xlu0 %v3397_v51, %s3613_s5 }
 0xfcc   :  { %1550 = vrot.lane.b32.xlu1 %v3399_v52, %s3613_s5 }
0x103d   :  { %v1664_v53 = vpop.permute.xlu0 %1663 }
0x103e   :  { %v1666_v54 = vmul.f32 %v3393_v34, %v1664_v53  ;;  %v1551_v55 = vpop.permute.xlu1 %1550 }
0x103f   :  { %v1553_v56 = vmul.f32 %v3395_v40, %v1551_v55 }
0x1040   :  { %v1674_v57 = vrot.slane %v1666_v54, 4 }
0x1041   :  { %v1555_v58 = vrot.slane %v1553_v56, 2 }
0x1042   :  { %1675 = vrot.lane.b32.xlu0 %v1674_v57, %s3614_s24 }
0x1043   :  { %1556 = vrot.lane.b32.xlu1 %v1555_v58, %s3614_s24 }
0x1046   :  { %1669 = vrot.lane.b32.xlu0 %v1668_v59, %s3615_s25 }
0x10b4   :  { %v1676_v60 = vpop.permute.xlu0 %1675 }
0x10b5   :  { %v4090_v61 = vsel %vm844_vm12, %v1676_v60, %v4031_v3  ;;  %v1679_v62 = vsel %vm844_vm12, %v1676_v60, 0.0  ;;  %v1557_v1 = vpop.permute.xlu1 %1556  ;;  %v3436_v3 = vld [vmem:[#allocation13 + $0x18] sm:$0xff] }
0x10b6   :  { %1681 = vst.msk [vmem:[#allocation4 + $0x2] sm:$0x1] %vm491_vm6, %v1679_v62  ;;  %v1559_v2 = vsel %vm960_vm11, %v1557_v1, 0.0  ;;  %3156 = vmatmul.mubr.msk.f32.vlgmr.msra.gmra.mxu1 %vm270_vm8, %v1557_v1  ;;  %3167 = vmatmul.mubr.msk.f32.vlgmr.msra.gmra.mxu0 %vm270_vm8, %v4090_v61  ;;  %v1918_v1 = vld [vmem:[#allocation2 + $0x18] sm:$0xc0] }
0x10b7   :  { %1683 = vst.msk [vmem:[#allocation4 + $0x9] sm:$0x2] %vm494_vm7, %v1679_v62  ;;  %1682 = vst.msk [vmem:[#allocation3 + $0xc] sm:$0x2] %vm494_vm7, %v1559_v2  ;;  %3170 = vmatpush3.msra.mxu1 %v4041_v6  ;;  %3181 = vmatpush3.msra.mxu0 %v3436_v3  ;;  %v3439_v6 = vld [vmem:[#allocation13] sm:$0xff] }
0x10b8   :  { %1680 = vst.msk [vmem:[#allocation3 + $0x5] sm:$0x1] %vm491_vm6, %v1559_v2  ;;  %3171 = vmatprep.subr.mxu1 %v3611_v0  ;;  %3182 = vmatprep.subr.mxu0 %v3611_v0  ;;  %v1670_v22 = vpop.permute.xlu0 %1669  ;;  %v2028_v2 = vld [vmem:[#allocation2] sm:$0x3] }
0x10b9   :  { %3172 = vmatpush3.msra.mxu1 %v4047_v7  ;;  %3183 = vmatpush3.msra.mxu0 %v3437_v4  ;;  %v4122_v30 = vsel %vm844_vm12, %v1670_v22, %v4070_v25 }
0x10ba   :  { %3173 = vmatprep.subr.mxu1 %v3611_v0  ;;  %3184 = vmatprep.subr.mxu0 %v3611_v0  ;;  %v1880_v23 = vrot.slane %v4122_v30, 6 }
0x10bb   :  { %3174 = vmatpush3.msra.mxu1 %v4053_v21  ;;  %3185 = vmatpush3.msra.mxu0 %v3438_v5 }
0x10bc   :  { %3175 = vmatprep.subr.mxu1 %v3611_v0  ;;  %3177 = vmatprep.mubr.msk.f32.mxu1 %vm3612_vm0, %v3611_v0 }
0x10bd   :  { %3176 = vmatpush3.msra.mxu1 %v4060_v24  ;;  %3186 = vmatprep.subr.mxu0 %v3611_v0 }
0x10be   :  { %3187 = vmatpush3.msra.mxu0 %v3439_v6  ;;  %3188 = vmatprep.mubr.msk.f32.mxu0 %vm3612_vm0, %v3611_v0 }
0x10bf   :  { %3191 = vmatprep.subr.mxu1 %v3611_v0  ;;  %3210 = vmatprep.subr.mxu0 %v3611_v0 }
0x1176   :  { %v1753_v7 = vpop.f32.mrf.mxu1  ;;  %v1864_v21 = vpop.f32.mrf.mxu0 }
0x1177   :  { %v1758_v27 = vrot.slane %v1753_v7, 4  ;;  %v1869_v8 = vrot.slane %v1864_v21, 6 }
0x1178   :  { %v3157_v18 = vpop.f32.mrf.mxu1  ;;  %v3168_v19 = vpop.f32.mrf.mxu0 }
0x1179   :  { %v1760_v24 = vadd.f32 %v1758_v27, %v1684_v13  ;;  %v1871_v20 = vadd.f32 %v1869_v8, %v1794_v15 }
0x117b   :  { %3400 = vtanh.f32 %v1760_v24  ;;  %v2869_v16 = vmul.f32 -1.442695, %v1760_v24  ;;  %v2871_v26 = vmul.f32 -1.442695, %v1871_v20 }
0x117c   :  { %3402 = vtanh.f32 %v1871_v20 }
0x117d   :  { %3404 = vpow2.f32 %v2869_v16 }
0x117e   :  { %3406 = vpow2.f32 %v2871_v26 }
0x1188   :  { %v3401_v11 = vpop.eup %3400 }
0x1189   :  { %v3403_v10 = vpop.eup %3402  ;;  %1773 = vrot.lane.b32.xlu0 %v3401_v11, %s3613_s5 }
0x118a   :  { %1886 = vrot.lane.b32.xlu1 %v3403_v10, %s3613_s5  ;;  %v3405_v29 = vpop.eup %3404 }
0x118b   :  { %v3407_v12 = vpop.eup %3406  ;;  %v1764_v28 = vadd.f32 1.0, %v3405_v29 }
0x118c   :  { %v1875_v31 = vadd.f32 1.0, %v3407_v12 }
0x118d   :  { %3408 = vrcp.f32 %v1764_v28 }
0x118e   :  { %1881 = vrot.lane.b32.xlu1 %v1880_v23, %s3614_s24  ;;  %3410 = vrcp.f32 %v1875_v31 }
0x119a   :  { %v3409_v25 = vpop.eup %3408 }
0x119b   :  { %v3411_v14 = vpop.eup %3410  ;;  %v1771_v41 = vmul.f32 %v3409_v25, %v1769_v38 }
0x11fb   :  { %v1774_v37 = vpop.permute.xlu0 %1773 }
0x11fc   :  { %v1887_v17 = vpop.permute.xlu1 %1886  ;;  %v1776_v34 = vmul.f32 %v3409_v25, %v1774_v37 }
0x11fd   :  { %v1889_v39 = vmul.f32 %v3411_v14, %v1887_v17 }
0x11fe   :  { %1778 = vrot.lane.b32.xlu1 %v1776_v34, %s3614_s24 }
0x11ff   :  { %1891 = vrot.lane.b32.xlu0 %v1889_v39, %s3614_s24 }
0x1200   :  { %v1882_v40 = vpop.permute.xlu1 %1881 }
0x1201   :  { %v1884_v42 = vmul.f32 %v3411_v14, %v1882_v40  ;;  %v1204_v40 = vsel %vm1196_vm13, %v3969_v9, 0.0  ;;  %v4179_v9 = vld [vmem:[#allocation15 + $0x28] sm:$0xff] }
0x1270   :  { %v1779_v43 = vpop.permute.xlu1 %1778 }
0x1271   :  { %v1892_v44 = vpop.permute.xlu0 %1891  ;;  %v4131_v45 = vadd.f32 %v1779_v43, %v1771_v41  ;;  %v4171_v41 = vld [vmem:[#allocation15 + $0x38] sm:$0xff] }
0x1272   :  { %v1894_v46 = vadd.f32 %v1892_v44, %v1884_v42  ;;  %v4173_v42 = vld [vmem:[#allocation15 + $0x30] sm:$0xff] }
0x1273   :  { %3412 = vtanh.f32 %v4131_v45  ;;  %v2003_v12 = vrot.slane %v4131_v45, 6 }
0x1274   :  { %3414 = vtanh.f32 %v1894_v46  ;;  %v1902_v55 = vrot.slane %v1894_v46, 2 }
0x1280   :  { %v3413_v47 = vpop.eup %3412 }
0x1281   :  { %v3415_v48 = vpop.eup %3414  ;;  %1784 = vrot.lane.b32.xlu1 %v3413_v47, %s3613_s5 }
0x1282   :  { %1897 = vrot.lane.b32.xlu0 %v3415_v48, %s3613_s5 }
0x12f3   :  { %v1785_v49 = vpop.permute.xlu1 %1784 }
0x12f4   :  { %v1898_v51 = vpop.permute.xlu0 %1897  ;;  %v1787_v52 = vmul.f32 %v3409_v25, %v1785_v49  ;;  %v4184_v49 = vld [vmem:[#allocation15 + $0x20] sm:$0xff] }
0x12f5   :  { %v1900_v50 = vmul.f32 %v3411_v14, %v1898_v51  ;;  %v372_v51 = vsel %vm369_vm15, %v3797_v35, 0.0  ;;  %v4204_v35 = vld [vmem:[#allocation15 + $0x8] sm:$0xff] }
0x12f6   :  { %v1789_v53 = vrot.slane %v1787_v52, 4  ;;  %v1314_v52 = vsel %vm1196_vm13, %v4021_v63, 0.0  ;;  %v4210_v63 = vld [vmem:[#allocation15] sm:$0xff] }
0x12f7   :  { %v1908_v54 = vrot.slane %v1900_v50, 2  ;;  %v4195_v50 = vld [vmem:[#allocation15 + $0x18] sm:$0xff] }
0x12f8   :  { %1790 = vrot.lane.b32.xlu1 %v1789_v53, %s3614_s24  ;;  %v4200_v53 = vld [vmem:[#allocation15 + $0x10] sm:$0xff] }
0x12f9   :  { %1909 = vrot.lane.b32.xlu0 %v1908_v54, %s3614_s24  ;;  %v4213_v54 = vld [vmem:[#allocation16 + $0x38] sm:$0xff] }
0x12fd   :  { %1903 = vrot.lane.b32.xlu0 %v1902_v55, %s3615_s25  ;;  %v4215_v55 = vld [vmem:[#allocation16 + $0x30] sm:$0xff] }
0x136a   :  { %v1791_v56 = vpop.permute.xlu1 %1790 }
0x136b   :  { %v1910_v57 = vpop.permute.xlu0 %1909  ;;  %v1793_v58 = vsel %vm720_vm9, %v1791_v56, 0.0  ;;  %3178 = vmatmul.mubr.msk.f32.vlgmr.msra.gmra.mxu1 %vm270_vm8, %v1791_v56  ;;  %v4220_v56 = vld [vmem:[#allocation16 + $0x28] sm:$0xff] }
0x136c   :  { %v1912_v59 = vsel %vm604_vm10, %v1910_v57, %v4090_v61  ;;  %v1913_v60 = vsel %vm604_vm10, %v1910_v57, 0.0  ;;  %1914 = vst.msk [vmem:[#allocation3 + $0x6] sm:$0x1] %vm491_vm6, %v1793_v58  ;;  %3207 = vmatprep.mubr.msk.f32.mxu1 %vm3612_vm0, %v3611_v0  ;;  %3192 = vmatpush3.msra.mxu1 %v4171_v41 }
0x136d   :  { %1916 = vst.msk [vmem:[#allocation3 + $0xd] sm:$0x2] %vm494_vm7, %v1793_v58  ;;  %1917 = vst.msk [vmem:[#allocation4 + $0x8] sm:$0x2] %vm494_vm7, %v1913_v60  ;;  %3189 = vmatmul.mubr.msk.f32.vlgmr.msra.gmra.mxu0 %vm270_vm8, %v1912_v59  ;;  %3193 = vmatprep.subr.mxu1 %v3611_v0 }
0x136e   :  { %1915 = vst.msk [vmem:[#allocation4 + $0x1] sm:$0x1] %vm491_vm6, %v1913_v60  ;;  %3226 = vmatprep.mubr.msk.f32.mxu0 %vm3612_vm0, %v3611_v0  ;;  %3194 = vmatpush3.msra.mxu1 %v4173_v42  ;;  %v4228_v60 = vld [vmem:[#allocation16 + $0x20] sm:$0xff] }
0x136f   :  { %v1904_v8 = vpop.permute.xlu0 %1903  ;;  %3195 = vmatprep.subr.mxu1 %v3611_v0  ;;  %3211 = vmatpush3.msra.mxu0 %v4213_v54 }
0x1370   :  { %v1906_v13 = vsel %vm604_vm10, %v1904_v8, %v4122_v30  ;;  %3196 = vmatpush3.msra.mxu1 %v4179_v9  ;;  %3212 = vmatprep.subr.mxu0 %v3611_v0 }
0x1371   :  { %3197 = vmatprep.subr.mxu1 %v3611_v0  ;;  %3213 = vmatpush3.msra.mxu0 %v4215_v55 }
0x1372   :  { %3198 = vmatpush3.msra.mxu1 %v4184_v49  ;;  %3214 = vmatprep.subr.mxu0 %v3611_v0 }
0x1373   :  { %3199 = vmatprep.subr.mxu1 %v3611_v0  ;;  %3215 = vmatpush3.msra.mxu0 %v4220_v56 }
0x1374   :  { %3200 = vmatpush3.msra.mxu1 %v4195_v50  ;;  %3216 = vmatprep.subr.mxu0 %v3611_v0 }
0x1375   :  { %3201 = vmatprep.subr.mxu1 %v3611_v0  ;;  %3217 = vmatpush3.msra.mxu0 %v4228_v60 }
0x1376   :  { %3202 = vmatpush3.msra.mxu1 %v4200_v53  ;;  %3218 = vmatprep.subr.mxu0 %v3611_v0 }
0x1377   :  { %3203 = vmatprep.subr.mxu1 %v3611_v0 }
0x1378   :  { %3204 = vmatpush3.msra.mxu1 %v4204_v35 }
0x1379   :  { %3205 = vmatprep.subr.mxu1 %v3611_v0 }
0x137a   :  { %3206 = vmatpush3.msra.mxu1 %v4210_v63 }
0x137b   :  { %3229 = vmatprep.subr.mxu1 %v3611_v0 }
0x142b   :  { %v1987_v61 = vpop.f32.mrf.mxu1 }
0x142c   :  { %v1992_v62 = vrot.slane %v1987_v61, 2  ;;  %v4234_v61 = vld [vmem:[#allocation16 + $0x18] sm:$0xff] }
0x142d   :  { %v2098_v3 = vpop.f32.mrf.mxu0  ;;  %v3179_v4 = vpop.f32.mrf.mxu1  ;;  %3219 = vmatpush3.msra.mxu0 %v4234_v61 }
0x142e   :  { %v1994_v5 = vadd.f32 %v1992_v62, %v1918_v1  ;;  %v2102_v6 = vadd.f32 %v2098_v3, %v2028_v2  ;;  %3220 = vmatprep.subr.mxu0 %v3611_v0  ;;  %v4247_v4 = vld [vmem:[#allocation16 + $0x8] sm:$0xff] }
0x142f   :  { %v3190_v7 = vpop.f32.mrf.mxu0  ;;  %3221 = vmatpush3.msra.mxu0 %v4242_v32 }
0x1430   :  { %3416 = vtanh.f32 %v1994_v5  ;;  %v2873_v15 = vmul.f32 -1.442695, %v1994_v5  ;;  %v2875_v18 = vmul.f32 -1.442695, %v2102_v6  ;;  %3222 = vmatprep.subr.mxu0 %v3611_v0 }
0x1431   :  { %3418 = vtanh.f32 %v2102_v6  ;;  %3223 = vmatpush3.msra.mxu0 %v4247_v4 }
0x1432   :  { %3420 = vpow2.f32 %v2873_v15  ;;  %3224 = vmatprep.subr.mxu0 %v3611_v0 }
0x1433   :  { %3422 = vpow2.f32 %v2875_v18 }
0x143d   :  { %v3417_v21 = vpop.eup %3416 }
0x143e   :  { %v3419_v27 = vpop.eup %3418  ;;  %2007 = vrot.lane.b32.xlu0 %v3417_v21, %s3613_s5  ;;  %v2238_v21 = vld [vmem:[#allocation16] sm:$0xff] }
0x143f   :  { %2116 = vrot.lane.b32.xlu1 %v3419_v27, %s3613_s5  ;;  %v3421_v19 = vpop.eup %3420  ;;  %3225 = vmatpush3.msra.mxu0 %v2238_v21  ;;  %v2876_v27 = vld [vmem:[%s4343_s7] ss:$0 sm:$0xff] }
0x1440   :  { %v3423_v24 = vpop.eup %3422  ;;  %v1998_v20 = vadd.f32 1.0, %v3421_v19  ;;  %3239 = vmatprep.subr.mxu0 %v3611_v0 }
0x1441   :  { %v2106_v22 = vadd.f32 1.0, %v3423_v24 }
0x1442   :  { %3424 = vrcp.f32 %v1998_v20 }
0x1443   :  { %2111 = vrot.lane.b32.xlu1 %v1906_v13, %s3614_s24  ;;  %3426 = vrcp.f32 %v2106_v22  ;;  %v2319_v22 = vld [vmem:[%s4345_s9] sm:$0x1] }
0x144f   :  { %v3425_v11 = vpop.eup %3424 }
0x1450   :  { %v3427_v23 = vpop.eup %3426  ;;  %v2005_v28 = vmul.f32 %v3425_v11, %v2003_v12 }
0x14b0   :  { %v2008_v10 = vpop.permute.xlu0 %2007 }
0x14b1   :  { %v2117_v16 = vpop.permute.xlu1 %2116  ;;  %v2010_v26 = vmul.f32 %v3425_v11, %v2008_v10 }
0x14b2   :  { %v2119_v29 = vmul.f32 %v3427_v23, %v2117_v16 }
0x14b3   :  { %2012 = vrot.lane.b32.xlu1 %v2010_v26, %s3614_s24 }
0x14b4   :  { %2121 = vrot.lane.b32.xlu0 %v2119_v29, %s3614_s24 }
0x14b5   :  { %v2112_v30 = vpop.permute.xlu1 %2111 }
0x14b6   :  { %v2114_v31 = vmul.f32 %v3427_v23, %v2112_v30 }
0x1525   :  { %v2013_v25 = vpop.permute.xlu1 %2012 }
0x1526   :  { %v2122_v37 = vpop.permute.xlu0 %2121  ;;  %v2015_v14 = vadd.f32 %v2013_v25, %v2005_v28  ;;  %v2658_v28 = vld [vmem:[%s4345_s9] sm:$0x1]  ;;  %s2890_s9 = sld [smem:[#allocation6 + $0x1]] }
0x1527   :  { %v2124_v17 = vadd.f32 %v2122_v37, %v2114_v31  ;;  %v2141_v31 = vand.u32 127, %v146_v33  ;;  %v2475_v37 = vstv %s2474_s14 }
0x1528   :  { %3428 = vtanh.f32 %v2015_v14 }
0x1529   :  { %3430 = vtanh.f32 %v2124_v17 }
0x1535   :  { %v3429_v34 = vpop.eup %3428 }
0x1536   :  { %v3431_v39 = vpop.eup %3430  ;;  %2018 = vrot.lane.b32.xlu1 %v3429_v34, %s3613_s5 }
0x1537   :  { %2127 = vrot.lane.b32.xlu0 %v3431_v39, %s3613_s5 }
0x153b   :  { %1207 = vrot.lane.b32.xlu0 %v1204_v40, %s3614_s24 }
0x15a8   :  { %v2019_v38 = vpop.permute.xlu1 %2018 }
0x15a9   :  { %v2128_v43 = vpop.permute.xlu0 %2127  ;;  %v2021_v44 = vmul.f32 %v3425_v11, %v2019_v38 }
0x15aa   :  { %v2130_v45 = vmul.f32 %v3427_v23, %v2128_v43 }
0x15ab   :  { %v2023_v46 = vrot.slane %v2021_v44, 6 }
0x15ac   :  { %v2131_v47 = vsel %vm369_vm15, %v2130_v45, 0.0 }
0x15ad   :  { %v1208_v48 = vpop.permute.xlu0 %1207  ;;  %2134 = vrot.lane.b32.xlu1 %v2131_v47, %s3614_s24  ;;  %2024 = vrot.lane.b32.xlu0 %v2023_v46, %s3614_s24 }
0x15ae   :  { %1210 = vst.msk [vmem:[#allocation4 + $0x4] sm:$0x1] %vm491_vm6, %v1208_v48 }
0x15af   :  { %1212 = vst.msk [vmem:[#allocation4 + $0xb] sm:$0x2] %vm494_vm7, %v1208_v48 }
0x15b1   :  { %488 = vrot.lane.b32.xlu1 %v372_v51, %s3614_s24  ;;  %1440 = vrot.lane.b32.xlu0 %v1314_v52, %s3614_s24 }
0x161f   :  { %v2135_v57 = vpop.permute.xlu1 %2134  ;;  %v2025_v58 = vpop.permute.xlu0 %2024 }
0x1620   :  { %2137 = vst.msk [vmem:[#allocation4] sm:$0x1] %vm491_vm6, %v2135_v57  ;;  %v2027_v59 = vsel %vm472_vm5, %v2025_v58, 0.0 }
0x1621   :  { %2139 = vst.msk [vmem:[#allocation4 + $0x7] sm:$0x2] %vm494_vm7, %v2135_v57  ;;  %2138 = vst.msk [vmem:[#allocation3 + $0xe] sm:$0x2] %vm494_vm7, %v2027_v59 }
0x1622   :  { %2132 = vst.msk [vmem:[#allocation3 + $0x7] sm:$0x1] %vm491_vm6, %v2027_v59 }
0x1623   :  { %v489_v62 = vpop.permute.xlu1 %488  ;;  %v1441_v1 = vpop.permute.xlu0 %1440 }
0x1624   :  { %492 = vst.msk [vmem:[#allocation3] sm:$0x1] %vm491_vm6, %v489_v62  ;;  %1443 = vst.msk [vmem:[#allocation3 + $0x4] sm:$0x1] %vm491_vm6, %v1441_v1 }
0x1625   :  { %495 = vst.msk [vmem:[#allocation3 + $0x7] sm:$0x2] %vm494_vm7, %v489_v62  ;;  %1445 = vst.msk [vmem:[#allocation3 + $0xb] sm:$0x2] %vm494_vm7, %v1441_v1 }
0x1627   :  { %v2143_v3 = vld [vmem:[#allocation4] sm:$0xff] }
0x1628   :  { %v2483_v2 = vld [vmem:[#allocation4 + $0x8] sm:$0xff]  ;;  %2145 = vrot.lane.b32.xlu1 %v2143_v3, %s3614_s24 }
0x1629   :  { %2485 = vrot.lane.b32.xlu0 %v2483_v2, %s3614_s24 }
0x162b   :  { %v2142_v6 = vld [vmem:[#allocation3] sm:$0xff] }
0x162c   :  { %v2482_v19 = vld [vmem:[#allocation3 + $0x8] sm:$0xff] }
0x169a   :  { %v2146_v5 = vpop.permute.xlu1 %2145 }
0x169b   :  { %v2148_v7 = vsel %vm270_vm8, %v2142_v6, %v2146_v5  ;;  %v2486_v18 = vpop.permute.xlu0 %2485 }
0x169c   :  { %3208 = vmatmul.mubr.msk.f32.vlgmr.msra.gmra.mxu1 %vm2164_vm1, %v2148_v7  ;;  %v2488_v24 = vsel %vm270_vm8, %v2482_v19, %v2486_v18 }
0x169d   :  { %3231 = vmatprep.mubr.msk.f32.mxu1 %vm3612_vm0, %v3611_v0 }
0x175c   :  { %v2234_v8 = vpop.f32.mrf.mxu1 }
0x175d   :  { %v2235_v13 = vadd.f32 %v2876_v27, %v2234_v8 }
0x175e   :  { %v3209_v15 = vpop.f32.mrf.mxu1 }
0x175f   :  { %2320 = vrot.lane.b32.xlu1 %v2235_v13, %s3613_s5  ;;  %3227 = vmatmul.mubr.msk.f32.vlgmr.msra.gmra.mxu0 %vm2164_vm1, %v2235_v13 }
0x1760   :  { %3240 = vmatpush3.msra.mxu0 %v4171_v41  ;;  %3255 = vmatprep.mubr.msk.f32.mxu0 %vm3612_vm0, %v3611_v0 }
0x1761   :  { %3241 = vmatprep.subr.mxu0 %v3611_v0 }
0x1762   :  { %3242 = vmatpush3.msra.mxu0 %v4173_v42  ;;  %v2814_v42 = vstv %s2890_s9 }
0x1763   :  { %3243 = vmatprep.subr.mxu0 %v3611_v0  ;;  %vm2815_vm3 = vcmp.lt.s32.totalorder %v2141_v31, %v2814_v42 }
0x1764   :  { %3244 = vmatpush3.msra.mxu0 %v4179_v9 }
0x1765   :  { %3245 = vmatprep.subr.mxu0 %v3611_v0 }
0x1766   :  { %3246 = vmatpush3.msra.mxu0 %v4184_v49 }
0x1767   :  { %3247 = vmatprep.subr.mxu0 %v3611_v0 }
0x1768   :  { %3248 = vmatpush3.msra.mxu0 %v4195_v50 }
0x1769   :  { %3249 = vmatprep.subr.mxu0 %v3611_v0 }
0x176a   :  { %3250 = vmatpush3.msra.mxu0 %v4200_v53 }
0x176b   :  { %3251 = vmatprep.subr.mxu0 %v3611_v0 }
0x176c   :  { %3252 = vmatpush3.msra.mxu0 %v4204_v35 }
0x176d   :  { %3253 = vmatprep.subr.mxu0 %v3611_v0 }
0x176e   :  { %3254 = vmatpush3.msra.mxu0 %v4210_v63 }
0x176f   :  { %3256 = vmatmul.mubr.msk.f32.vlgmr.msra.gmra.mxu0 %vm2164_vm1, %v2488_v24  ;;  %3277 = vmatprep.subr.mxu0 %v3611_v0 }
0x1770   :  { %3279 = vmatprep.mubr.msk.f32.mxu0 %vm3612_vm0, %v3611_v0 }
0x17d1   :  { %v2321_v20 = vpop.permute.xlu1 %2320 }
0x17d2   :  { %3230 = vmatpush3.xpose.msk.msra.mxu1 %vm2164_vm1, %v2321_v20 }
0x17d3   :  { %3234 = vmatprep.subr.mxu1 %v3611_v0 }
0x17d5   :  { %3232 = vmatmul.mubr.msk.f32.vlgmr.msra.gmra.mxu1 %vm2164_vm1, %v2319_v22 }
0x17d6   :  { %3235 = vmatpush3.xpose.msk.msra.mxu1 %vm2164_vm1, %v2321_v20  ;;  %3236 = vmatprep.mubr.msk.f32.mxu1 %vm3612_vm0, %v3611_v0 }
0x17d7   :  { %3258 = vmatprep.subr.mxu1 %v3611_v0 }
0x181f   :  { %v2315_v11 = vpop.f32.mrf.mxu0 }
0x1820   :  { %3237 = vmatmul.mubr.msk.f32.vlgmr.msra.gmra.mxu1 %vm2164_vm1, %v2315_v11 }
0x1821   :  { %v3228_v10 = vpop.f32.mrf.mxu0  ;;  %3259 = vmatpush3.msra.mxu1 %v4213_v54  ;;  %3274 = vmatprep.mubr.msk.f32.mxu1 %vm3612_vm0, %v3611_v0 }
0x1822   :  { %3260 = vmatprep.subr.mxu1 %v3611_v0 }
0x1823   :  { %3261 = vmatpush3.msra.mxu1 %v4215_v55 }
0x1824   :  { %3262 = vmatprep.subr.mxu1 %v3611_v0 }
0x1825   :  { %3263 = vmatpush3.msra.mxu1 %v4220_v56 }
0x1826   :  { %3264 = vmatprep.subr.mxu1 %v3611_v0 }
0x1827   :  { %3265 = vmatpush3.msra.mxu1 %v4228_v60 }
0x1828   :  { %3266 = vmatprep.subr.mxu1 %v3611_v0 }
0x1829   :  { %3267 = vmatpush3.msra.mxu1 %v4234_v61 }
0x182a   :  { %3268 = vmatprep.subr.mxu1 %v3611_v0 }
0x182b   :  { %3269 = vmatpush3.msra.mxu1 %v4242_v32 }
0x182c   :  { %3270 = vmatprep.subr.mxu1 %v3611_v0 }
0x182d   :  { %3271 = vmatpush3.msra.mxu1 %v4247_v4 }
0x182e   :  { %3272 = vmatprep.subr.mxu1 %v3611_v0 }
0x182f   :  { %v2573_v23 = vpop.f32.mrf.mxu0  ;;  %3273 = vmatpush3.msra.mxu1 %v2238_v21 }
0x1830   :  { %v2574_v16 = vadd.f32 %v2876_v27, %v2573_v23  ;;  %3282 = vmatprep.subr.mxu1 %v3611_v0 }
0x1831   :  { %v3257_v26 = vpop.f32.mrf.mxu0 }
0x1832   :  { %2659 = vrot.lane.b32.xlu0 %v2574_v16, %s3613_s5  ;;  %3275 = vmatmul.mubr.msk.f32.vlgmr.msra.gmra.mxu1 %vm2164_vm1, %v2574_v16 }
0x1833   :  { %3284 = vmatprep.mubr.msk.f32.mxu1 %vm3612_vm0, %v3611_v0  ;;  %vm2476_vm0 = vcmp.lt.s32.totalorder %v2141_v31, %v2475_v37 }
0x1895   :  { %v2393_v29 = vpop.f32.mrf.mxu1 }
0x1896   :  { %v2400_v25 = vrot.slane %v2393_v29, %v3774_v36 }
0x1897   :  { %v3233_v30 = vpop.f32.mrf.mxu1 }
0x18a4   :  { %v2660_v12 = vpop.permute.xlu0 %2659 }
0x18a5   :  { %3278 = vmatpush3.xpose.msk.msra.mxu0 %vm2164_vm1, %v2660_v12  ;;  %3283 = vmatpush3.xpose.msk.msra.mxu1 %vm2164_vm1, %v2660_v12 }
0x18a8   :  { %3280 = vmatmul.mubr.msk.f32.vlgmr.msra.gmra.mxu0 %vm2164_vm1, %v2658_v28 }
0x18e0   :  { %v2470_v0 = vpop.f32.mrf.mxu1 }
0x18e1   :  { %v2471_v14 = vadd.f32 %v2470_v0, %v2400_v25 }
0x18e2   :  { %v3238_v17 = vpop.f32.mrf.mxu1 }
0x18e3   :  { %v2479_v34 = vsel %vm2476_vm0, %v2471_v14, -inf }
0x18e4   :  { %2481 = vst.msk [vmem:[#allocation18] sm:$0xff] %vm2480_vm2, %v2479_v34 }
0x18f2   :  { %v2654_v39 = vpop.f32.mrf.mxu1 }
0x18f3   :  { %3285 = vmatmul.mubr.msk.f32.vlgmr.msra.gmra.mxu1 %vm2164_vm1, %v2654_v39 }
0x18f4   :  { %v3276_v40 = vpop.f32.mrf.mxu1 }
0x1968   :  { %v2732_v38 = vpop.f32.mrf.mxu0 }
0x1969   :  { %v2739_v33 = vrot.slane %v2732_v38, %v3774_v36 }
0x196a   :  { %v3281_v41 = vpop.f32.mrf.mxu0 }
0x19b3   :  { %v2809_v43 = vpop.f32.mrf.mxu1 }
0x19b4   :  { %v2810_v44 = vadd.f32 %v2809_v43, %v2739_v33 }
0x19b5   :  { %v3286_v45 = vpop.f32.mrf.mxu1 }
0x19b6   :  { %v2818_v46 = vsel %vm2815_vm3, %v2810_v44, -inf }
0x19b7   :  { %2820 = vst.msk [vmem:[#allocation18 + $0x8] sm:$0xff] %vm2480_vm2, %v2818_v46 }
0x19b8   :  { %3579 = shalt.err (!%p3576_p6)
}
0x19b9   :  { %2832 = dma.vmem_to_hbm [thread:$0]  %s2827_s4, 256, %s4346_s10, [#allocation9], %s3606_s27, %s3606_s27, %s3607_s28  }
0x19ba   :  { %3598 = dma.done.wait [#allocation9], 256  }
0x19bb   :  { %3599 = vsyncadd [#allocation9], 4294967040 }
0x19bc   :  { %2836 = vsyncpa [#allocation8], 1 }
0x19bd   :  { %2837 = vsyncpa [#allocation11], 1 }
0x19be   :  { %2838 = vsyncpa [#allocation14], 1 }
0x19bf   :  { %2839 = vsyncpa [#allocation17], 1 }
0x19c0   :  { %2840 = vsyncpa [#allocation9], 1 }

</bundles_post_ra>
